<compile_context>
chip_gen: v7x
topology: tpu7x:2x2x1
jax: 0.10.0
libtpu: 0.0.40
codegen_flags: <defaults>
</compile_context>

<pallas_src>
import functools

import jax
import jax.numpy as jnp
from jax.experimental import pallas as pl
from jax.experimental.pallas import tpu as pltpu

BN_EPS = 1e-5          # nn.BatchNorm1d default eps
NORM_EPS = 1e-12       # F.normalize default eps


# ---------------------------------------------------------------------------
# Fused BYOL forward kernel
# ---------------------------------------------------------------------------
def _byol_fused_kernel(
    # inputs -----------------------------------------------------------------
    x1_ref, x2_ref,                                     # [B, in_dim] each
    enc_w_ref, enc_b_ref,                               # online encoder
    pjw1_ref, pjb1_ref, pjg_ref, pjbt_ref, pjw2_ref, pjb2_ref,   # online projector
    pdw1_ref, pdb1_ref, pdg_ref, pdbt_ref, pdw2_ref, pdb2_ref,   # online predictor
    tenc_w_ref, tenc_b_ref,                             # target encoder
    tpw1_ref, tpb1_ref, tpg_ref, tpbt_ref, tpw2_ref, tpb2_ref,   # target projector
    # outputs ----------------------------------------------------------------
    loss_ref,                                           # [1, 1]
    new_tenc_w_ref, new_tenc_b_ref,                     # EMA-updated target params
    new_tpw1_ref, new_tpb1_ref, new_tpg_ref, new_tpbt_ref,
    new_tpw2_ref, new_tpb2_ref,
    *, batch, momentum):

    f32 = jnp.float32
    bf16 = jnp.bfloat16
    m = f32(momentum)
    om = f32(1.0 - momentum)

    # ---- EMA of target weights (f32), written back in place (aliased) -------
    def ema(t_ref, o_ref, out_ref):
        val = m * t_ref[...] + om * o_ref[...]
        out_ref[...] = val
        return val

    t_enc_w = ema(tenc_w_ref, enc_w_ref, new_tenc_w_ref)
    t_enc_b = ema(tenc_b_ref, enc_b_ref, new_tenc_b_ref)
    tw1 = ema(tpw1_ref, pjw1_ref, new_tpw1_ref)
    tb1 = ema(tpb1_ref, pjb1_ref, new_tpb1_ref)
    tg  = ema(tpg_ref,  pjg_ref,  new_tpg_ref)
    tbt = ema(tpbt_ref, pjbt_ref, new_tpbt_ref)
    tw2 = ema(tpw2_ref, pjw2_ref, new_tpw2_ref)
    tb2 = ema(tpb2_ref, pjb2_ref, new_tpb2_ref)

    # ---- stack the two views in-kernel: [2B, in_dim] ------------------------
    x = jnp.concatenate([x1_ref[...], x2_ref[...]], axis=0)
    x_bf = x.astype(bf16)

    # ---- encoder: online + target fused along N (shared LHS x) --------------
    feat_dim = enc_w_ref.shape[1]
    enc_w_cat = jnp.concatenate([enc_w_ref[...], t_enc_w], axis=1).astype(bf16)
    feat_cat = jnp.dot(x_bf, enc_w_cat, preferred_element_type=f32)   # [2B, 2*feat]
    feat   = feat_cat[:, :feat_dim] + enc_b_ref[...]
    feat_t = feat_cat[:, feat_dim:] + t_enc_b

    # ---- BatchNorm1d (training batch stats) per view + ReLU, f32 ------------
    def bn_relu_per_view(h, gamma, beta):
        outs = []
        for h_v in (h[:batch], h[batch:]):
            mu = jnp.mean(h_v, axis=0, keepdims=True)
            hc = h_v - mu                                    # reuse for variance
            var = jnp.mean(hc * hc, axis=0, keepdims=True)   # biased var
            hn = hc * jax.lax.rsqrt(var + BN_EPS)
            outs.append(jnp.maximum(hn * gamma + beta, 0.0))
        return jnp.concatenate(outs, axis=0)

    # ---- MLPHead: Linear -> BN -> ReLU -> Linear (bf16 matmul, f32 acc) -----
    def mlp_head(z, w1, b1, gamma, beta, w2, b2):
        h = jnp.dot(z.astype(bf16), w1.astype(bf16),
                    preferred_element_type=f32) + b1
        hr = bn_relu_per_view(h, gamma, beta)
        return jnp.dot(hr.astype(bf16), w2.astype(bf16),
                       preferred_element_type=f32) + b2

    # ---- online branch (both views stacked into one [2B, .] batch) ----------
    z_on = mlp_head(feat,
                    pjw1_ref[...], pjb1_ref[...], pjg_ref[...], pjbt_ref[...],
                    pjw2_ref[...], pjb2_ref[...])
    p = mlp_head(z_on,
                 pdw1_ref[...], pdb1_ref[...], pdg_ref[...], pdbt_ref[...],
                 pdw2_ref[...], pdb2_ref[...])

    # ---- target branch (uses EMA'd weights already resident in vregs) -------
    z_t = mlp_head(feat_t, tw1, tb1, tg, tbt, tw2, tb2)

    # ---- negative cosine similarity, both terms fused ------------------------
    p1, p2 = p[:batch], p[batch:]
    z1_t, z2_t = z_t[:batch], z_t[batch:]

    def neg_cos(pv, zv):
        pz = jnp.sum(pv * zv, axis=1, keepdims=True)
        pp = jnp.sum(pv * pv, axis=1, keepdims=True)
        zz = jnp.sum(zv * zv, axis=1, keepdims=True)
        sim = pz * jax.lax.rsqrt(jnp.maximum(pp * zz, NORM_EPS * NORM_EPS))
        return -jnp.mean(sim, axis=0, keepdims=True)          # [1, 1]

    loss_ref[...] = (neg_cos(p1, z2_t) + neg_cos(p2, z1_t)) * 0.5
    # TODO(synk): BatchNorm1d running_mean/running_var/num_batches_tracked
    # buffers are not tracked/updated (only affects a later eval-mode use).


# ---------------------------------------------------------------------------
# Wrapper: single pallas_call, full arrays in VMEM (demo scale, no grid)
# ---------------------------------------------------------------------------
def byol_forward(params, x1, x2, momentum=0.996):
    B = x1.shape[0]
    x1f = x1.reshape(B, -1).astype(jnp.float32)
    x2f = x2.reshape(B, -1).astype(jnp.float32)

    enc = params["online_encoder"]
    pj = params["online_projector"]
    pd = params["online_predictor"]
    tenc = params["target_encoder"]
    tpj = params["target_projector"]

    operands = (x1f, x2f, *enc, *pj, *pd, *tenc, *tpj)

    # -- shapes for cost estimate / outputs ----------------------------------
    M = 2 * B
    in_dim = x1f.shape[1]
    feat = enc[0].shape[1]
    hid = pj[0].shape[1]
    proj = pj[4].shape[1]
    hid2 = pd[0].shape[1]

    def mm(mm_m, mm_k, mm_n):
        return 2 * mm_m * mm_k * mm_n

    flops = (mm(M, in_dim, 2 * feat)                       # fused encoder (online+target)
             + 2 * (mm(M, feat, hid) + mm(M, hid, proj))   # online + target projector
             + mm(M, proj, hid2) + mm(M, hid2, proj))      # predictor
    transcendentals = 2 * (2 * hid + hid2) + 2 * M         # BN rsqrt per view + loss rsqrt
    target_bytes = sum(int(a.size) * a.dtype.itemsize for a in (*tenc, *tpj))
    bytes_accessed = (sum(int(a.size) * a.dtype.itemsize for a in operands)
                      + target_bytes + 4)

    out_shape = (
        jax.ShapeDtypeStruct((1, 1), jnp.float32),          # loss
        *(jax.ShapeDtypeStruct(a.shape, a.dtype) for a in (*tenc, *tpj)),
    )

    vmem_spec = pl.BlockSpec(memory_space=pltpu.MemorySpace.VMEM)
    kernel = functools.partial(_byol_fused_kernel, batch=B, momentum=float(momentum))

    # operand indices 16..23 are the target params; alias them onto outputs 1..8
    io_aliases = {16 + i: 1 + i for i in range(8)}

    outs = pl.pallas_call(
        kernel,
        out_shape=out_shape,
        in_specs=[vmem_spec] * len(operands),
        out_specs=tuple([vmem_spec] * len(out_shape)),
        input_output_aliases=io_aliases,
        compiler_params=pltpu.CompilerParams(vmem_limit_bytes=64 * 1024 * 1024),
        cost_estimate=pl.CostEstimate(
            flops=int(flops),
            transcendentals=int(transcendentals),
            bytes_accessed=int(bytes_accessed)),
    )(*operands)

    loss = outs[0][0, 0]
    new_target = {
        "target_encoder": tuple(outs[1:3]),
        "target_projector": tuple(outs[3:9]),
    }
    return loss, new_target


# ---------------------------------------------------------------------------
# Parameter construction (deterministic, synthetic)
# ---------------------------------------------------------------------------
def _init_linear(key, d_in, d_out):
    kw, kb = jax.random.split(key)
    bound = 1.0 / jnp.sqrt(jnp.float32(d_in))
    w = jax.random.uniform(kw, (d_in, d_out), jnp.float32, -bound, bound)
    b = jax.random.uniform(kb, (1, d_out), jnp.float32, -bound, bound)
    return w, b


def _init_mlp_head(key, d_in, d_hidden, d_out):
    k1, k2 = jax.random.split(key)
    w1, b1 = _init_linear(k1, d_in, d_hidden)
    gamma = jnp.ones((1, d_hidden), jnp.float32)
    beta = jnp.zeros((1, d_hidden), jnp.float32)
    w2, b2 = _init_linear(k2, d_hidden, d_out)
    return (w1, b1, gamma, beta, w2, b2)


# ---------------------------------------------------------------------------
if __name__ == "__main__":
    # Small shapes consistent with the module (hidden_dim is a stand-in for 4096).
    B, C, H, W = 8, 4, 8, 8
    in_dim = C * H * W            # 256
    feature_dim = 128
    hidden_dim = 256
    proj_dim = 128

    key = jax.random.PRNGKey(0)
    k_enc, k_proj, k_pred, kx1, kx2 = jax.random.split(key, 5)

    # TODO(synk): backbone stand-in is flatten + Linear (the reference accepts an
    # arbitrary backbone module).
    online_encoder = _init_linear(k_enc, in_dim, feature_dim)
    online_projector = _init_mlp_head(k_proj, feature_dim, hidden_dim, proj_dim)
    online_predictor = _init_mlp_head(k_pred, proj_dim, hidden_dim // 2, proj_dim)

    params = {
        "online_encoder": online_encoder,
        "online_projector": online_projector,
        "online_predictor": online_predictor,
        # deepcopy of the online params, as in the reference __init__
        "target_encoder": jax.tree_util.tree_map(jnp.copy, online_encoder),
        "target_projector": jax.tree_util.tree_map(jnp.copy, online_projector),
    }

    x1 = jax.random.normal(kx1, (B, C, H, W), jnp.float32)
    x2 = jax.random.normal(kx2, (B, C, H, W), jnp.float32)

    fwd = jax.jit(functools.partial(byol_forward, momentum=0.996))
    loss, new_target = fwd(params, x1, x2)
    jax.block_until_ready((loss, new_target))

    assert loss.shape == () and loss.dtype == jnp.float32
    assert new_target["target_encoder"][0].shape == params["target_encoder"][0].shape
    assert new_target["target_projector"][0].shape == params["target_projector"][0].shape
    print("KERNEL_OK")
</pallas_src>

<mosaic_0001>
module attributes {stable_mosaic.version = 11 : i64} {
  func.func @_byol_fused_kernel(%arg0: memref<8x256xf32, #tpu.memory_space<vmem>>, %arg1: memref<8x256xf32, #tpu.memory_space<vmem>>, %arg2: memref<256x128xf32, #tpu.memory_space<vmem>>, %arg3: memref<1x128xf32, #tpu.memory_space<vmem>>, %arg4: memref<128x256xf32, #tpu.memory_space<vmem>>, %arg5: memref<1x256xf32, #tpu.memory_space<vmem>>, %arg6: memref<1x256xf32, #tpu.memory_space<vmem>>, %arg7: memref<1x256xf32, #tpu.memory_space<vmem>>, %arg8: memref<256x128xf32, #tpu.memory_space<vmem>>, %arg9: memref<1x128xf32, #tpu.memory_space<vmem>>, %arg10: memref<128x128xf32, #tpu.memory_space<vmem>>, %arg11: memref<1x128xf32, #tpu.memory_space<vmem>>, %arg12: memref<1x128xf32, #tpu.memory_space<vmem>>, %arg13: memref<1x128xf32, #tpu.memory_space<vmem>>, %arg14: memref<128x128xf32, #tpu.memory_space<vmem>>, %arg15: memref<1x128xf32, #tpu.memory_space<vmem>>, %arg16: memref<256x128xf32, #tpu.memory_space<vmem>>, %arg17: memref<1x128xf32, #tpu.memory_space<vmem>>, %arg18: memref<128x256xf32, #tpu.memory_space<vmem>>, %arg19: memref<1x256xf32, #tpu.memory_space<vmem>>, %arg20: memref<1x256xf32, #tpu.memory_space<vmem>>, %arg21: memref<1x256xf32, #tpu.memory_space<vmem>>, %arg22: memref<256x128xf32, #tpu.memory_space<vmem>>, %arg23: memref<1x128xf32, #tpu.memory_space<vmem>>, %arg24: memref<1x1xf32, #tpu.memory_space<vmem>>, %arg25: memref<256x128xf32, #tpu.memory_space<vmem>>, %arg26: memref<1x128xf32, #tpu.memory_space<vmem>>, %arg27: memref<128x256xf32, #tpu.memory_space<vmem>>, %arg28: memref<1x256xf32, #tpu.memory_space<vmem>>, %arg29: memref<1x256xf32, #tpu.memory_space<vmem>>, %arg30: memref<1x256xf32, #tpu.memory_space<vmem>>, %arg31: memref<256x128xf32, #tpu.memory_space<vmem>>, %arg32: memref<1x128xf32, #tpu.memory_space<vmem>>) attributes {dimension_semantics = [], scalar_prefetch = 0 : i64, scratch_operands = 0 : i64, tpu.core_type = #tpu.core_type<tc>} {
    %c0 = arith.constant 0 : index
    %c0_0 = arith.constant 0 : index
    %0 = vector.load %arg16[%c0, %c0_0] : memref<256x128xf32, #tpu.memory_space<vmem>>, vector<256x128xf32>
    %cst = arith.constant 0.995999991 : f32
    %1 = vector.broadcast %cst : f32 to vector<256x128xf32>
    %2 = arith.mulf %1, %0 : vector<256x128xf32>
    %c0_1 = arith.constant 0 : index
    %c0_2 = arith.constant 0 : index
    %3 = vector.load %arg2[%c0_1, %c0_2] : memref<256x128xf32, #tpu.memory_space<vmem>>, vector<256x128xf32>
    %cst_3 = arith.constant 4.000000e-03 : f32
    %4 = vector.broadcast %cst_3 : f32 to vector<256x128xf32>
    %5 = arith.mulf %4, %3 : vector<256x128xf32>
    %6 = arith.addf %2, %5 : vector<256x128xf32>
    %c0_4 = arith.constant 0 : index
    %c0_5 = arith.constant 0 : index
    %7 = vector.load %arg25[%c0_4, %c0_5] : memref<256x128xf32, #tpu.memory_space<vmem>>, vector<256x128xf32>
    tpu.vector_store %arg25[%c0_4, %c0_5], %6 {strides = array<i32>} : memref<256x128xf32, #tpu.memory_space<vmem>>, vector<256x128xf32>,
    %c0_6 = arith.constant 0 : index
    %c0_7 = arith.constant 0 : index
    %8 = vector.load %arg17[%c0_6, %c0_7] : memref<1x128xf32, #tpu.memory_space<vmem>>, vector<1x128xf32>
    %cst_8 = arith.constant 0.995999991 : f32
    %9 = vector.broadcast %cst_8 : f32 to vector<1x128xf32>
    %10 = arith.mulf %9, %8 : vector<1x128xf32>
    %c0_9 = arith.constant 0 : index
    %c0_10 = arith.constant 0 : index
    %11 = vector.load %arg3[%c0_9, %c0_10] : memref<1x128xf32, #tpu.memory_space<vmem>>, vector<1x128xf32>
    %cst_11 = arith.constant 4.000000e-03 : f32
    %12 = vector.broadcast %cst_11 : f32 to vector<1x128xf32>
    %13 = arith.mulf %12, %11 : vector<1x128xf32>
    %14 = arith.addf %10, %13 : vector<1x128xf32>
    %c0_12 = arith.constant 0 : index
    %c0_13 = arith.constant 0 : index
    %15 = vector.load %arg26[%c0_12, %c0_13] : memref<1x128xf32, #tpu.memory_space<vmem>>, vector<1x128xf32>
    tpu.vector_store %arg26[%c0_12, %c0_13], %14 {strides = array<i32>} : memref<1x128xf32, #tpu.memory_space<vmem>>, vector<1x128xf32>,
    %c0_14 = arith.constant 0 : index
    %c0_15 = arith.constant 0 : index
    %16 = vector.load %arg18[%c0_14, %c0_15] : memref<128x256xf32, #tpu.memory_space<vmem>>, vector<128x256xf32>
    %cst_16 = arith.constant 0.995999991 : f32
    %17 = vector.broadcast %cst_16 : f32 to vector<128x256xf32>
    %18 = arith.mulf %17, %16 : vector<128x256xf32>
    %c0_17 = arith.constant 0 : index
    %c0_18 = arith.constant 0 : index
    %19 = vector.load %arg4[%c0_17, %c0_18] : memref<128x256xf32, #tpu.memory_space<vmem>>, vector<128x256xf32>
    %cst_19 = arith.constant 4.000000e-03 : f32
    %20 = vector.broadcast %cst_19 : f32 to vector<128x256xf32>
    %21 = arith.mulf %20, %19 : vector<128x256xf32>
    %22 = arith.addf %18, %21 : vector<128x256xf32>
    %c0_20 = arith.constant 0 : index
    %c0_21 = arith.constant 0 : index
    %23 = vector.load %arg27[%c0_20, %c0_21] : memref<128x256xf32, #tpu.memory_space<vmem>>, vector<128x256xf32>
    tpu.vector_store %arg27[%c0_20, %c0_21], %22 {strides = array<i32>} : memref<128x256xf32, #tpu.memory_space<vmem>>, vector<128x256xf32>,
    %c0_22 = arith.constant 0 : index
    %c0_23 = arith.constant 0 : index
    %24 = vector.load %arg19[%c0_22, %c0_23] : memref<1x256xf32, #tpu.memory_space<vmem>>, vector<1x256xf32>
    %cst_24 = arith.constant 0.995999991 : f32
    %25 = vector.broadcast %cst_24 : f32 to vector<1x256xf32>
    %26 = arith.mulf %25, %24 : vector<1x256xf32>
    %c0_25 = arith.constant 0 : index
    %c0_26 = arith.constant 0 : index
    %27 = vector.load %arg5[%c0_25, %c0_26] : memref<1x256xf32, #tpu.memory_space<vmem>>, vector<1x256xf32>
    %cst_27 = arith.constant 4.000000e-03 : f32
    %28 = vector.broadcast %cst_27 : f32 to vector<1x256xf32>
    %29 = arith.mulf %28, %27 : vector<1x256xf32>
    %30 = arith.addf %26, %29 : vector<1x256xf32>
    %c0_28 = arith.constant 0 : index
    %c0_29 = arith.constant 0 : index
    %31 = vector.load %arg28[%c0_28, %c0_29] : memref<1x256xf32, #tpu.memory_space<vmem>>, vector<1x256xf32>
    tpu.vector_store %arg28[%c0_28, %c0_29], %30 {strides = array<i32>} : memref<1x256xf32, #tpu.memory_space<vmem>>, vector<1x256xf32>,
    %c0_30 = arith.constant 0 : index
    %c0_31 = arith.constant 0 : index
    %32 = vector.load %arg20[%c0_30, %c0_31] : memref<1x256xf32, #tpu.memory_space<vmem>>, vector<1x256xf32>
    %cst_32 = arith.constant 0.995999991 : f32
    %33 = vector.broadcast %cst_32 : f32 to vector<1x256xf32>
    %34 = arith.mulf %33, %32 : vector<1x256xf32>
    %c0_33 = arith.constant 0 : index
    %c0_34 = arith.constant 0 : index
    %35 = vector.load %arg6[%c0_33, %c0_34] : memref<1x256xf32, #tpu.memory_space<vmem>>, vector<1x256xf32>
    %cst_35 = arith.constant 4.000000e-03 : f32
    %36 = vector.broadcast %cst_35 : f32 to vector<1x256xf32>
    %37 = arith.mulf %36, %35 : vector<1x256xf32>
    %38 = arith.addf %34, %37 : vector<1x256xf32>
    %c0_36 = arith.constant 0 : index
    %c0_37 = arith.constant 0 : index
    %39 = vector.load %arg29[%c0_36, %c0_37] : memref<1x256xf32, #tpu.memory_space<vmem>>, vector<1x256xf32>
    tpu.vector_store %arg29[%c0_36, %c0_37], %38 {strides = array<i32>} : memref<1x256xf32, #tpu.memory_space<vmem>>, vector<1x256xf32>,
    %c0_38 = arith.constant 0 : index
    %c0_39 = arith.constant 0 : index
    %40 = vector.load %arg21[%c0_38, %c0_39] : memref<1x256xf32, #tpu.memory_space<vmem>>, vector<1x256xf32>
    %cst_40 = arith.constant 0.995999991 : f32
    %41 = vector.broadcast %cst_40 : f32 to vector<1x256xf32>
    %42 = arith.mulf %41, %40 : vector<1x256xf32>
    %c0_41 = arith.constant 0 : index
    %c0_42 = arith.constant 0 : index
    %43 = vector.load %arg7[%c0_41, %c0_42] : memref<1x256xf32, #tpu.memory_space<vmem>>, vector<1x256xf32>
    %cst_43 = arith.constant 4.000000e-03 : f32
    %44 = vector.broadcast %cst_43 : f32 to vector<1x256xf32>
    %45 = arith.mulf %44, %43 : vector<1x256xf32>
    %46 = arith.addf %42, %45 : vector<1x256xf32>
    %c0_44 = arith.constant 0 : index
    %c0_45 = arith.constant 0 : index
    %47 = vector.load %arg30[%c0_44, %c0_45] : memref<1x256xf32, #tpu.memory_space<vmem>>, vector<1x256xf32>
    tpu.vector_store %arg30[%c0_44, %c0_45], %46 {strides = array<i32>} : memref<1x256xf32, #tpu.memory_space<vmem>>, vector<1x256xf32>,
    %c0_46 = arith.constant 0 : index
    %c0_47 = arith.constant 0 : index
    %48 = vector.load %arg22[%c0_46, %c0_47] : memref<256x128xf32, #tpu.memory_space<vmem>>, vector<256x128xf32>
    %cst_48 = arith.constant 0.995999991 : f32
    %49 = vector.broadcast %cst_48 : f32 to vector<256x128xf32>
    %50 = arith.mulf %49, %48 : vector<256x128xf32>
    %c0_49 = arith.constant 0 : index
    %c0_50 = arith.constant 0 : index
    %51 = vector.load %arg8[%c0_49, %c0_50] : memref<256x128xf32, #tpu.memory_space<vmem>>, vector<256x128xf32>
    %cst_51 = arith.constant 4.000000e-03 : f32
    %52 = vector.broadcast %cst_51 : f32 to vector<256x128xf32>
    %53 = arith.mulf %52, %51 : vector<256x128xf32>
    %54 = arith.addf %50, %53 : vector<256x128xf32>
    %c0_52 = arith.constant 0 : index
    %c0_53 = arith.constant 0 : index
    %55 = vector.load %arg31[%c0_52, %c0_53] : memref<256x128xf32, #tpu.memory_space<vmem>>, vector<256x128xf32>
    tpu.vector_store %arg31[%c0_52, %c0_53], %54 {strides = array<i32>} : memref<256x128xf32, #tpu.memory_space<vmem>>, vector<256x128xf32>,
    %c0_54 = arith.constant 0 : index
    %c0_55 = arith.constant 0 : index
    %56 = vector.load %arg23[%c0_54, %c0_55] : memref<1x128xf32, #tpu.memory_space<vmem>>, vector<1x128xf32>
    %cst_56 = arith.constant 0.995999991 : f32
    %57 = vector.broadcast %cst_56 : f32 to vector<1x128xf32>
    %58 = arith.mulf %57, %56 : vector<1x128xf32>
    %c0_57 = arith.constant 0 : index
    %c0_58 = arith.constant 0 : index
    %59 = vector.load %arg9[%c0_57, %c0_58] : memref<1x128xf32, #tpu.memory_space<vmem>>, vector<1x128xf32>
    %cst_59 = arith.constant 4.000000e-03 : f32
    %60 = vector.broadcast %cst_59 : f32 to vector<1x128xf32>
    %61 = arith.mulf %60, %59 : vector<1x128xf32>
    %62 = arith.addf %58, %61 : vector<1x128xf32>
    %c0_60 = arith.constant 0 : index
    %c0_61 = arith.constant 0 : index
    %63 = vector.load %arg32[%c0_60, %c0_61] : memref<1x128xf32, #tpu.memory_space<vmem>>, vector<1x128xf32>
    tpu.vector_store %arg32[%c0_60, %c0_61], %62 {strides = array<i32>} : memref<1x128xf32, #tpu.memory_space<vmem>>, vector<1x128xf32>,
    %c0_62 = arith.constant 0 : index
    %c0_63 = arith.constant 0 : index
    %64 = vector.load %arg0[%c0_62, %c0_63] : memref<8x256xf32, #tpu.memory_space<vmem>>, vector<8x256xf32>
    %c0_64 = arith.constant 0 : index
    %c0_65 = arith.constant 0 : index
    %65 = vector.load %arg1[%c0_64, %c0_65] : memref<8x256xf32, #tpu.memory_space<vmem>>, vector<8x256xf32>
    %66 = tpu.concatenate %64, %65 in 0 : vector<8x256xf32>, vector<8x256xf32> -> vector<16x256xf32>
    %67 = arith.truncf %66 : vector<16x256xf32> to vector<16x256xbf16>
    %c0_66 = arith.constant 0 : index
    %c0_67 = arith.constant 0 : index
    %68 = vector.load %arg2[%c0_66, %c0_67] : memref<256x128xf32, #tpu.memory_space<vmem>>, vector<256x128xf32>
    %69 = tpu.concatenate %68, %6 in 1 : vector<256x128xf32>, vector<256x128xf32> -> vector<256x256xf32>
    %70 = arith.truncf %69 : vector<256x256xf32> to vector<256x256xbf16>
    %cst_68 = arith.constant dense<0.000000e+00> : vector<16x256xf32>
    %71 = tpu.matmul %67, %70, %cst_68 {dimension_numbers = #tpu.dot_dimension_numbers<[1], [0], [0], [1], [0, 0, 1, 1], [], []>} : vector<16x256xbf16>, vector<256x256xbf16>, vector<16x256xf32> -> vector<16x256xf32>
    %72 = vector.extract_strided_slice %71 {offsets = [0, 0], sizes = [16, 128], strides = [1, 1]} : vector<16x256xf32> to vector<16x128xf32>
    %c0_69 = arith.constant 0 : index
    %c0_70 = arith.constant 0 : index
    %73 = vector.load %arg3[%c0_69, %c0_70] : memref<1x128xf32, #tpu.memory_space<vmem>>, vector<1x128xf32>
    %74 = vector.broadcast %73 : vector<1x128xf32> to vector<16x128xf32>
    %75 = arith.addf %72, %74 : vector<16x128xf32>
    %76 = vector.extract_strided_slice %71 {offsets = [0, 128], sizes = [16, 128], strides = [1, 1]} : vector<16x256xf32> to vector<16x128xf32>
    %77 = vector.broadcast %14 : vector<1x128xf32> to vector<16x128xf32>
    %78 = arith.addf %76, %77 : vector<16x128xf32>
    %c0_71 = arith.constant 0 : index
    %c0_72 = arith.constant 0 : index
    %79 = vector.load %arg4[%c0_71, %c0_72] : memref<128x256xf32, #tpu.memory_space<vmem>>, vector<128x256xf32>
    %c0_73 = arith.constant 0 : index
    %c0_74 = arith.constant 0 : index
    %80 = vector.load %arg5[%c0_73, %c0_74] : memref<1x256xf32, #tpu.memory_space<vmem>>, vector<1x256xf32>
    %c0_75 = arith.constant 0 : index
    %c0_76 = arith.constant 0 : index
    %81 = vector.load %arg6[%c0_75, %c0_76] : memref<1x256xf32, #tpu.memory_space<vmem>>, vector<1x256xf32>
    %c0_77 = arith.constant 0 : index
    %c0_78 = arith.constant 0 : index
    %82 = vector.load %arg7[%c0_77, %c0_78] : memref<1x256xf32, #tpu.memory_space<vmem>>, vector<1x256xf32>
    %c0_79 = arith.constant 0 : index
    %c0_80 = arith.constant 0 : index
    %83 = vector.load %arg8[%c0_79, %c0_80] : memref<256x128xf32, #tpu.memory_space<vmem>>, vector<256x128xf32>
    %c0_81 = arith.constant 0 : index
    %c0_82 = arith.constant 0 : index
    %84 = vector.load %arg9[%c0_81, %c0_82] : memref<1x128xf32, #tpu.memory_space<vmem>>, vector<1x128xf32>
    %85 = arith.truncf %75 : vector<16x128xf32> to vector<16x128xbf16>
    %86 = arith.truncf %79 : vector<128x256xf32> to vector<128x256xbf16>
    %cst_83 = arith.constant dense<0.000000e+00> : vector<16x256xf32>
    %87 = tpu.matmul %85, %86, %cst_83 {dimension_numbers = #tpu.dot_dimension_numbers<[1], [0], [0], [1], [0, 0, 1, 1], [], []>} : vector<16x128xbf16>, vector<128x256xbf16>, vector<16x256xf32> -> vector<16x256xf32>
    %88 = vector.broadcast %80 : vector<1x256xf32> to vector<16x256xf32>
    %89 = arith.addf %87, %88 : vector<16x256xf32>
    %90 = vector.extract_strided_slice %89 {offsets = [0, 0], sizes = [8, 256], strides = [1, 1]} : vector<16x256xf32> to vector<8x256xf32>
    %91 = vector.extract_strided_slice %89 {offsets = [8, 0], sizes = [8, 256], strides = [1, 1]} : vector<16x256xf32> to vector<8x256xf32>
    %cst_84 = arith.constant dense<0.000000e+00> : vector<256xf32>
    %92 = vector.multi_reduction <add>, %90, %cst_84 [0] : vector<8x256xf32> to vector<256xf32>
    %93 = vector.shape_cast %92 : vector<256xf32> to vector<1x256xf32>
    %cst_85 = arith.constant 8.000000e+00 : f32
    %94 = vector.broadcast %cst_85 : f32 to vector<1x256xf32>
    %95 = arith.divf %93, %94 : vector<1x256xf32>
    %96 = vector.broadcast %95 : vector<1x256xf32> to vector<8x256xf32>
    %97 = arith.subf %90, %96 : vector<8x256xf32>
    %98 = arith.mulf %97, %97 : vector<8x256xf32>
    %cst_86 = arith.constant dense<0.000000e+00> : vector<256xf32>
    %99 = vector.multi_reduction <add>, %98, %cst_86 [0] : vector<8x256xf32> to vector<256xf32>
    %100 = vector.shape_cast %99 : vector<256xf32> to vector<1x256xf32>
    %cst_87 = arith.constant 8.000000e+00 : f32
    %101 = vector.broadcast %cst_87 : f32 to vector<1x256xf32>
    %102 = arith.divf %100, %101 : vector<1x256xf32>
    %cst_88 = arith.constant 9.99999974E-6 : f32
    %103 = vector.broadcast %cst_88 : f32 to vector<1x256xf32>
    %104 = arith.addf %102, %103 : vector<1x256xf32>
    %105 = math.rsqrt %104 : vector<1x256xf32>
    %106 = vector.broadcast %105 : vector<1x256xf32> to vector<8x256xf32>
    %107 = arith.mulf %97, %106 : vector<8x256xf32>
    %108 = vector.broadcast %81 : vector<1x256xf32> to vector<8x256xf32>
    %109 = arith.mulf %107, %108 : vector<8x256xf32>
    %110 = vector.broadcast %82 : vector<1x256xf32> to vector<8x256xf32>
    %111 = arith.addf %109, %110 : vector<8x256xf32>
    %cst_89 = arith.constant 0.000000e+00 : f32
    %112 = vector.broadcast %cst_89 : f32 to vector<8x256xf32>
    %113 = arith.maximumf %111, %112 : vector<8x256xf32>
    %cst_90 = arith.constant dense<0.000000e+00> : vector<256xf32>
    %114 = vector.multi_reduction <add>, %91, %cst_90 [0] : vector<8x256xf32> to vector<256xf32>
    %115 = vector.shape_cast %114 : vector<256xf32> to vector<1x256xf32>
    %cst_91 = arith.constant 8.000000e+00 : f32
    %116 = vector.broadcast %cst_91 : f32 to vector<1x256xf32>
    %117 = arith.divf %115, %116 : vector<1x256xf32>
    %118 = vector.broadcast %117 : vector<1x256xf32> to vector<8x256xf32>
    %119 = arith.subf %91, %118 : vector<8x256xf32>
    %120 = arith.mulf %119, %119 : vector<8x256xf32>
    %cst_92 = arith.constant dense<0.000000e+00> : vector<256xf32>
    %121 = vector.multi_reduction <add>, %120, %cst_92 [0] : vector<8x256xf32> to vector<256xf32>
    %122 = vector.shape_cast %121 : vector<256xf32> to vector<1x256xf32>
    %cst_93 = arith.constant 8.000000e+00 : f32
    %123 = vector.broadcast %cst_93 : f32 to vector<1x256xf32>
    %124 = arith.divf %122, %123 : vector<1x256xf32>
    %cst_94 = arith.constant 9.99999974E-6 : f32
    %125 = vector.broadcast %cst_94 : f32 to vector<1x256xf32>
    %126 = arith.addf %124, %125 : vector<1x256xf32>
    %127 = math.rsqrt %126 : vector<1x256xf32>
    %128 = vector.broadcast %127 : vector<1x256xf32> to vector<8x256xf32>
    %129 = arith.mulf %119, %128 : vector<8x256xf32>
    %130 = vector.broadcast %81 : vector<1x256xf32> to vector<8x256xf32>
    %131 = arith.mulf %129, %130 : vector<8x256xf32>
    %132 = vector.broadcast %82 : vector<1x256xf32> to vector<8x256xf32>
    %133 = arith.addf %131, %132 : vector<8x256xf32>
    %cst_95 = arith.constant 0.000000e+00 : f32
    %134 = vector.broadcast %cst_95 : f32 to vector<8x256xf32>
    %135 = arith.maximumf %133, %134 : vector<8x256xf32>
    %136 = tpu.concatenate %113, %135 in 0 : vector<8x256xf32>, vector<8x256xf32> -> vector<16x256xf32>
    %137 = arith.truncf %136 : vector<16x256xf32> to vector<16x256xbf16>
    %138 = arith.truncf %83 : vector<256x128xf32> to vector<256x128xbf16>
    %cst_96 = arith.constant dense<0.000000e+00> : vector<16x128xf32>
    %139 = tpu.matmul %137, %138, %cst_96 {dimension_numbers = #tpu.dot_dimension_numbers<[1], [0], [0], [1], [0, 0, 1, 1], [], []>} : vector<16x256xbf16>, vector<256x128xbf16>, vector<16x128xf32> -> vector<16x128xf32>
    %140 = vector.broadcast %84 : vector<1x128xf32> to vector<16x128xf32>
    %141 = arith.addf %139, %140 : vector<16x128xf32>
    %c0_97 = arith.constant 0 : index
    %c0_98 = arith.constant 0 : index
    %142 = vector.load %arg10[%c0_97, %c0_98] : memref<128x128xf32, #tpu.memory_space<vmem>>, vector<128x128xf32>
    %c0_99 = arith.constant 0 : index
    %c0_100 = arith.constant 0 : index
    %143 = vector.load %arg11[%c0_99, %c0_100] : memref<1x128xf32, #tpu.memory_space<vmem>>, vector<1x128xf32>
    %c0_101 = arith.constant 0 : index
    %c0_102 = arith.constant 0 : index
    %144 = vector.load %arg12[%c0_101, %c0_102] : memref<1x128xf32, #tpu.memory_space<vmem>>, vector<1x128xf32>
    %c0_103 = arith.constant 0 : index
    %c0_104 = arith.constant 0 : index
    %145 = vector.load %arg13[%c0_103, %c0_104] : memref<1x128xf32, #tpu.memory_space<vmem>>, vector<1x128xf32>
    %c0_105 = arith.constant 0 : index
    %c0_106 = arith.constant 0 : index
    %146 = vector.load %arg14[%c0_105, %c0_106] : memref<128x128xf32, #tpu.memory_space<vmem>>, vector<128x128xf32>
    %c0_107 = arith.constant 0 : index
    %c0_108 = arith.constant 0 : index
    %147 = vector.load %arg15[%c0_107, %c0_108] : memref<1x128xf32, #tpu.memory_space<vmem>>, vector<1x128xf32>
    %148 = arith.truncf %141 : vector<16x128xf32> to vector<16x128xbf16>
    %149 = arith.truncf %142 : vector<128x128xf32> to vector<128x128xbf16>
    %cst_109 = arith.constant dense<0.000000e+00> : vector<16x128xf32>
    %150 = tpu.matmul %148, %149, %cst_109 {dimension_numbers = #tpu.dot_dimension_numbers<[1], [0], [0], [1], [0, 0, 1, 1], [], []>} : vector<16x128xbf16>, vector<128x128xbf16>, vector<16x128xf32> -> vector<16x128xf32>
    %151 = vector.broadcast %143 : vector<1x128xf32> to vector<16x128xf32>
    %152 = arith.addf %150, %151 : vector<16x128xf32>
    %153 = vector.extract_strided_slice %152 {offsets = [0, 0], sizes = [8, 128], strides = [1, 1]} : vector<16x128xf32> to vector<8x128xf32>
    %154 = vector.extract_strided_slice %152 {offsets = [8, 0], sizes = [8, 128], strides = [1, 1]} : vector<16x128xf32> to vector<8x128xf32>
    %cst_110 = arith.constant dense<0.000000e+00> : vector<128xf32>
    %155 = vector.multi_reduction <add>, %153, %cst_110 [0] : vector<8x128xf32> to vector<128xf32>
    %156 = vector.shape_cast %155 : vector<128xf32> to vector<1x128xf32>
    %cst_111 = arith.constant 8.000000e+00 : f32
    %157 = vector.broadcast %cst_111 : f32 to vector<1x128xf32>
    %158 = arith.divf %156, %157 : vector<1x128xf32>
    %159 = vector.broadcast %158 : vector<1x128xf32> to vector<8x128xf32>
    %160 = arith.subf %153, %159 : vector<8x128xf32>
    %161 = arith.mulf %160, %160 : vector<8x128xf32>
    %cst_112 = arith.constant dense<0.000000e+00> : vector<128xf32>
    %162 = vector.multi_reduction <add>, %161, %cst_112 [0] : vector<8x128xf32> to vector<128xf32>
    %163 = vector.shape_cast %162 : vector<128xf32> to vector<1x128xf32>
    %cst_113 = arith.constant 8.000000e+00 : f32
    %164 = vector.broadcast %cst_113 : f32 to vector<1x128xf32>
    %165 = arith.divf %163, %164 : vector<1x128xf32>
    %cst_114 = arith.constant 9.99999974E-6 : f32
    %166 = vector.broadcast %cst_114 : f32 to vector<1x128xf32>
    %167 = arith.addf %165, %166 : vector<1x128xf32>
    %168 = math.rsqrt %167 : vector<1x128xf32>
    %169 = vector.broadcast %168 : vector<1x128xf32> to vector<8x128xf32>
    %170 = arith.mulf %160, %169 : vector<8x128xf32>
    %171 = vector.broadcast %144 : vector<1x128xf32> to vector<8x128xf32>
    %172 = arith.mulf %170, %171 : vector<8x128xf32>
    %173 = vector.broadcast %145 : vector<1x128xf32> to vector<8x128xf32>
    %174 = arith.addf %172, %173 : vector<8x128xf32>
    %cst_115 = arith.constant 0.000000e+00 : f32
    %175 = vector.broadcast %cst_115 : f32 to vector<8x128xf32>
    %176 = arith.maximumf %174, %175 : vector<8x128xf32>
    %cst_116 = arith.constant dense<0.000000e+00> : vector<128xf32>
    %177 = vector.multi_reduction <add>, %154, %cst_116 [0] : vector<8x128xf32> to vector<128xf32>
    %178 = vector.shape_cast %177 : vector<128xf32> to vector<1x128xf32>
    %cst_117 = arith.constant 8.000000e+00 : f32
    %179 = vector.broadcast %cst_117 : f32 to vector<1x128xf32>
    %180 = arith.divf %178, %179 : vector<1x128xf32>
    %181 = vector.broadcast %180 : vector<1x128xf32> to vector<8x128xf32>
    %182 = arith.subf %154, %181 : vector<8x128xf32>
    %183 = arith.mulf %182, %182 : vector<8x128xf32>
    %cst_118 = arith.constant dense<0.000000e+00> : vector<128xf32>
    %184 = vector.multi_reduction <add>, %183, %cst_118 [0] : vector<8x128xf32> to vector<128xf32>
    %185 = vector.shape_cast %184 : vector<128xf32> to vector<1x128xf32>
    %cst_119 = arith.constant 8.000000e+00 : f32
    %186 = vector.broadcast %cst_119 : f32 to vector<1x128xf32>
    %187 = arith.divf %185, %186 : vector<1x128xf32>
    %cst_120 = arith.constant 9.99999974E-6 : f32
    %188 = vector.broadcast %cst_120 : f32 to vector<1x128xf32>
    %189 = arith.addf %187, %188 : vector<1x128xf32>
    %190 = math.rsqrt %189 : vector<1x128xf32>
    %191 = vector.broadcast %190 : vector<1x128xf32> to vector<8x128xf32>
    %192 = arith.mulf %182, %191 : vector<8x128xf32>
    %193 = vector.broadcast %144 : vector<1x128xf32> to vector<8x128xf32>
    %194 = arith.mulf %192, %193 : vector<8x128xf32>
    %195 = vector.broadcast %145 : vector<1x128xf32> to vector<8x128xf32>
    %196 = arith.addf %194, %195 : vector<8x128xf32>
    %cst_121 = arith.constant 0.000000e+00 : f32
    %197 = vector.broadcast %cst_121 : f32 to vector<8x128xf32>
    %198 = arith.maximumf %196, %197 : vector<8x128xf32>
    %199 = tpu.concatenate %176, %198 in 0 : vector<8x128xf32>, vector<8x128xf32> -> vector<16x128xf32>
    %200 = arith.truncf %199 : vector<16x128xf32> to vector<16x128xbf16>
    %201 = arith.truncf %146 : vector<128x128xf32> to vector<128x128xbf16>
    %cst_122 = arith.constant dense<0.000000e+00> : vector<16x128xf32>
    %202 = tpu.matmul %200, %201, %cst_122 {dimension_numbers = #tpu.dot_dimension_numbers<[1], [0], [0], [1], [0, 0, 1, 1], [], []>} : vector<16x128xbf16>, vector<128x128xbf16>, vector<16x128xf32> -> vector<16x128xf32>
    %203 = vector.broadcast %147 : vector<1x128xf32> to vector<16x128xf32>
    %204 = arith.addf %202, %203 : vector<16x128xf32>
    %205 = arith.truncf %78 : vector<16x128xf32> to vector<16x128xbf16>
    %206 = arith.truncf %22 : vector<128x256xf32> to vector<128x256xbf16>
    %cst_123 = arith.constant dense<0.000000e+00> : vector<16x256xf32>
    %207 = tpu.matmul %205, %206, %cst_123 {dimension_numbers = #tpu.dot_dimension_numbers<[1], [0], [0], [1], [0, 0, 1, 1], [], []>} : vector<16x128xbf16>, vector<128x256xbf16>, vector<16x256xf32> -> vector<16x256xf32>
    %208 = vector.broadcast %30 : vector<1x256xf32> to vector<16x256xf32>
    %209 = arith.addf %207, %208 : vector<16x256xf32>
    %210 = vector.extract_strided_slice %209 {offsets = [0, 0], sizes = [8, 256], strides = [1, 1]} : vector<16x256xf32> to vector<8x256xf32>
    %211 = vector.extract_strided_slice %209 {offsets = [8, 0], sizes = [8, 256], strides = [1, 1]} : vector<16x256xf32> to vector<8x256xf32>
    %cst_124 = arith.constant dense<0.000000e+00> : vector<256xf32>
    %212 = vector.multi_reduction <add>, %210, %cst_124 [0] : vector<8x256xf32> to vector<256xf32>
    %213 = vector.shape_cast %212 : vector<256xf32> to vector<1x256xf32>
    %cst_125 = arith.constant 8.000000e+00 : f32
    %214 = vector.broadcast %cst_125 : f32 to vector<1x256xf32>
    %215 = arith.divf %213, %214 : vector<1x256xf32>
    %216 = vector.broadcast %215 : vector<1x256xf32> to vector<8x256xf32>
    %217 = arith.subf %210, %216 : vector<8x256xf32>
    %218 = arith.mulf %217, %217 : vector<8x256xf32>
    %cst_126 = arith.constant dense<0.000000e+00> : vector<256xf32>
    %219 = vector.multi_reduction <add>, %218, %cst_126 [0] : vector<8x256xf32> to vector<256xf32>
    %220 = vector.shape_cast %219 : vector<256xf32> to vector<1x256xf32>
    %cst_127 = arith.constant 8.000000e+00 : f32
    %221 = vector.broadcast %cst_127 : f32 to vector<1x256xf32>
    %222 = arith.divf %220, %221 : vector<1x256xf32>
    %cst_128 = arith.constant 9.99999974E-6 : f32
    %223 = vector.broadcast %cst_128 : f32 to vector<1x256xf32>
    %224 = arith.addf %222, %223 : vector<1x256xf32>
    %225 = math.rsqrt %224 : vector<1x256xf32>
    %226 = vector.broadcast %225 : vector<1x256xf32> to vector<8x256xf32>
    %227 = arith.mulf %217, %226 : vector<8x256xf32>
    %228 = vector.broadcast %38 : vector<1x256xf32> to vector<8x256xf32>
    %229 = arith.mulf %227, %228 : vector<8x256xf32>
    %230 = vector.broadcast %46 : vector<1x256xf32> to vector<8x256xf32>
    %231 = arith.addf %229, %230 : vector<8x256xf32>
    %cst_129 = arith.constant 0.000000e+00 : f32
    %232 = vector.broadcast %cst_129 : f32 to vector<8x256xf32>
    %233 = arith.maximumf %231, %232 : vector<8x256xf32>
    %cst_130 = arith.constant dense<0.000000e+00> : vector<256xf32>
    %234 = vector.multi_reduction <add>, %211, %cst_130 [0] : vector<8x256xf32> to vector<256xf32>
    %235 = vector.shape_cast %234 : vector<256xf32> to vector<1x256xf32>
    %cst_131 = arith.constant 8.000000e+00 : f32
    %236 = vector.broadcast %cst_131 : f32 to vector<1x256xf32>
    %237 = arith.divf %235, %236 : vector<1x256xf32>
    %238 = vector.broadcast %237 : vector<1x256xf32> to vector<8x256xf32>
    %239 = arith.subf %211, %238 : vector<8x256xf32>
    %240 = arith.mulf %239, %239 : vector<8x256xf32>
    %cst_132 = arith.constant dense<0.000000e+00> : vector<256xf32>
    %241 = vector.multi_reduction <add>, %240, %cst_132 [0] : vector<8x256xf32> to vector<256xf32>
    %242 = vector.shape_cast %241 : vector<256xf32> to vector<1x256xf32>
    %cst_133 = arith.constant 8.000000e+00 : f32
    %243 = vector.broadcast %cst_133 : f32 to vector<1x256xf32>
    %244 = arith.divf %242, %243 : vector<1x256xf32>
    %cst_134 = arith.constant 9.99999974E-6 : f32
    %245 = vector.broadcast %cst_134 : f32 to vector<1x256xf32>
    %246 = arith.addf %244, %245 : vector<1x256xf32>
    %247 = math.rsqrt %246 : vector<1x256xf32>
    %248 = vector.broadcast %247 : vector<1x256xf32> to vector<8x256xf32>
    %249 = arith.mulf %239, %248 : vector<8x256xf32>
    %250 = vector.broadcast %38 : vector<1x256xf32> to vector<8x256xf32>
    %251 = arith.mulf %249, %250 : vector<8x256xf32>
    %252 = vector.broadcast %46 : vector<1x256xf32> to vector<8x256xf32>
    %253 = arith.addf %251, %252 : vector<8x256xf32>
    %cst_135 = arith.constant 0.000000e+00 : f32
    %254 = vector.broadcast %cst_135 : f32 to vector<8x256xf32>
    %255 = arith.maximumf %253, %254 : vector<8x256xf32>
    %256 = tpu.concatenate %233, %255 in 0 : vector<8x256xf32>, vector<8x256xf32> -> vector<16x256xf32>
    %257 = arith.truncf %256 : vector<16x256xf32> to vector<16x256xbf16>
    %258 = arith.truncf %54 : vector<256x128xf32> to vector<256x128xbf16>
    %cst_136 = arith.constant dense<0.000000e+00> : vector<16x128xf32>
    %259 = tpu.matmul %257, %258, %cst_136 {dimension_numbers = #tpu.dot_dimension_numbers<[1], [0], [0], [1], [0, 0, 1, 1], [], []>} : vector<16x256xbf16>, vector<256x128xbf16>, vector<16x128xf32> -> vector<16x128xf32>
    %260 = vector.broadcast %62 : vector<1x128xf32> to vector<16x128xf32>
    %261 = arith.addf %259, %260 : vector<16x128xf32>
    %262 = vector.extract_strided_slice %204 {offsets = [0, 0], sizes = [8, 128], strides = [1, 1]} : vector<16x128xf32> to vector<8x128xf32>
    %263 = vector.extract_strided_slice %204 {offsets = [8, 0], sizes = [8, 128], strides = [1, 1]} : vector<16x128xf32> to vector<8x128xf32>
    %264 = vector.extract_strided_slice %261 {offsets = [0, 0], sizes = [8, 128], strides = [1, 1]} : vector<16x128xf32> to vector<8x128xf32>
    %265 = vector.extract_strided_slice %261 {offsets = [8, 0], sizes = [8, 128], strides = [1, 1]} : vector<16x128xf32> to vector<8x128xf32>
    %266 = arith.mulf %262, %265 : vector<8x128xf32>
    %cst_137 = arith.constant dense<0.000000e+00> : vector<8xf32>
    %267 = vector.multi_reduction <add>, %266, %cst_137 [1] : vector<8x128xf32> to vector<8xf32>
    %268 = vector.shape_cast %267 : vector<8xf32> to vector<8x1xf32>
    %269 = arith.mulf %262, %262 : vector<8x128xf32>
    %cst_138 = arith.constant dense<0.000000e+00> : vector<8xf32>
    %270 = vector.multi_reduction <add>, %269, %cst_138 [1] : vector<8x128xf32> to vector<8xf32>
    %271 = vector.shape_cast %270 : vector<8xf32> to vector<8x1xf32>
    %272 = arith.mulf %265, %265 : vector<8x128xf32>
    %cst_139 = arith.constant dense<0.000000e+00> : vector<8xf32>
    %273 = vector.multi_reduction <add>, %272, %cst_139 [1] : vector<8x128xf32> to vector<8xf32>
    %274 = vector.shape_cast %273 : vector<8xf32> to vector<8x1xf32>
    %275 = arith.mulf %271, %274 : vector<8x1xf32>
    %cst_140 = arith.constant 1.000000e-24 : f32
    %276 = vector.broadcast %cst_140 : f32 to vector<8x1xf32>
    %277 = arith.maximumf %275, %276 : vector<8x1xf32>
    %278 = math.rsqrt %277 : vector<8x1xf32>
    %279 = arith.mulf %268, %278 : vector<8x1xf32>
    %cst_141 = arith.constant dense<0.000000e+00> : vector<1xf32>
    %280 = vector.multi_reduction <add>, %279, %cst_141 [0] : vector<8x1xf32> to vector<1xf32>
    %281 = vector.shape_cast %280 : vector<1xf32> to vector<1x1xf32>
    %cst_142 = arith.constant 8.000000e+00 : f32
    %282 = vector.broadcast %cst_142 : f32 to vector<1x1xf32>
    %283 = arith.divf %281, %282 : vector<1x1xf32>
    %cst_143 = arith.constant 0.000000e+00 : f32
    %284 = vector.broadcast %cst_143 : f32 to vector<1x1xf32>
    %285 = arith.subf %284, %283 : vector<1x1xf32>
    %286 = arith.mulf %263, %264 : vector<8x128xf32>
    %cst_144 = arith.constant dense<0.000000e+00> : vector<8xf32>
    %287 = vector.multi_reduction <add>, %286, %cst_144 [1] : vector<8x128xf32> to vector<8xf32>
    %288 = vector.shape_cast %287 : vector<8xf32> to vector<8x1xf32>
    %289 = arith.mulf %263, %263 : vector<8x128xf32>
    %cst_145 = arith.constant dense<0.000000e+00> : vector<8xf32>
    %290 = vector.multi_reduction <add>, %289, %cst_145 [1] : vector<8x128xf32> to vector<8xf32>
    %291 = vector.shape_cast %290 : vector<8xf32> to vector<8x1xf32>
    %292 = arith.mulf %264, %264 : vector<8x128xf32>
    %cst_146 = arith.constant dense<0.000000e+00> : vector<8xf32>
    %293 = vector.multi_reduction <add>, %292, %cst_146 [1] : vector<8x128xf32> to vector<8xf32>
    %294 = vector.shape_cast %293 : vector<8xf32> to vector<8x1xf32>
    %295 = arith.mulf %291, %294 : vector<8x1xf32>
    %cst_147 = arith.constant 1.000000e-24 : f32
    %296 = vector.broadcast %cst_147 : f32 to vector<8x1xf32>
    %297 = arith.maximumf %295, %296 : vector<8x1xf32>
    %298 = math.rsqrt %297 : vector<8x1xf32>
    %299 = arith.mulf %288, %298 : vector<8x1xf32>
    %cst_148 = arith.constant dense<0.000000e+00> : vector<1xf32>
    %300 = vector.multi_reduction <add>, %299, %cst_148 [0] : vector<8x1xf32> to vector<1xf32>
    %301 = vector.shape_cast %300 : vector<1xf32> to vector<1x1xf32>
    %cst_149 = arith.constant 8.000000e+00 : f32
    %302 = vector.broadcast %cst_149 : f32 to vector<1x1xf32>
    %303 = arith.divf %301, %302 : vector<1x1xf32>
    %cst_150 = arith.constant 0.000000e+00 : f32
    %304 = vector.broadcast %cst_150 : f32 to vector<1x1xf32>
    %305 = arith.subf %304, %303 : vector<1x1xf32>
    %306 = arith.addf %285, %305 : vector<1x1xf32>
    %cst_151 = arith.constant 5.000000e-01 : f32
    %307 = vector.broadcast %cst_151 : f32 to vector<1x1xf32>
    %308 = arith.mulf %306, %307 : vector<1x1xf32>
    %c0_152 = arith.constant 0 : index
    %c0_153 = arith.constant 0 : index
    %309 = vector.load %arg24[%c0_152, %c0_153] : memref<1x1xf32, #tpu.memory_space<vmem>>, vector<1x1xf32>
    tpu.vector_store %arg24[%c0_152, %c0_153], %308 {strides = array<i32>} : memref<1x1xf32, #tpu.memory_space<vmem>>, vector<1x1xf32>,
    return
  }
}

</mosaic_0001>

<bundles_post_ra>
// kernel: byol_forward.1
= control target key start
LH: loop header
LB: loop body
LE: loop exit
PB: predicated region body
PF: predicated region fallthrough
CT: control target
= control target key end

     0   :  { %s3108_s6 = smov 1   ;;  %s3109_s10 = smov 2   ;;  %s4265_s0 = inlined_call_operand.smem [shape: u32[33], index: -1, kind: input, shape index: {}] }
   0x1   :  { %s3188_s5 = sld [smem:[%s4265_s0]]   ;;  %s3110_s14 = smov 3  }
   0x2   :  { %s3193_s9 = sld [smem:[%s4265_s0 + %s3108_s6]]   ;;  %s3111_s18 = smov 4  }
   0x3   :  { %s3198_s13 = sld [smem:[%s4265_s0 + %s3109_s10]]   ;;  %s3112_s22 = smov 5  }
   0x4   :  { %s3203_s17 = sld [smem:[%s4265_s0 + %s3110_s14]]   ;;  %s3113_s26 = smov 6  }
   0x5   :  { %s3208_s21 = sld [smem:[%s4265_s0 + %s3111_s18]]   ;;  %s3114_s30 = smov 7  }
   0x6   :  { %s3213_s25 = sld [smem:[%s4265_s0 + %s3112_s22]]   ;;  %s3115_s4 = smov 8  }
   0x7   :  { %s3218_s29 = sld [smem:[%s4265_s0 + %s3113_s26]]   ;;  %s3116_s10 = smov 9  }
   0x8   :  { %s3223_s3 = sld [smem:[%s4265_s0 + %s3114_s30]]   ;;  %s3117_s15 = smov 10  }
   0x9   :  { %s3228_s8 = sld [smem:[%s4265_s0 + %s3115_s4]]   ;;  %s3118_s20 = smov 11  }
   0xa   :  { %s3233_s14 = sld [smem:[%s4265_s0 + %s3116_s10]]   ;;  %s3119_s26 = smov 12  }
   0xb   :  { %s3238_s19 = sld [smem:[%s4265_s0 + %s3117_s15]]   ;;  %s3120_s1 = smov 13  }
   0xc   :  { %s3243_s24 = sld [smem:[%s4265_s0 + %s3118_s20]]   ;;  %s3121_s7 = smov 14  }
   0xd   :  { %4288 = sst [smem:[#allocation71_spill]] %s3218_s29  ;;  %s3122_s15 = smov 15  }
   0xe   :  { %s3248_s30 = sld [smem:[%s4265_s0 + %s3119_s26]]   ;;  %s3123_s22 = smov 16  }
   0xf   :  { %4289 = sst [smem:[#allocation72_spill]] %s3228_s8  ;;  %s3124_s28 = smov 17  }
  0x10   :  { %s3253_s6 = sld [smem:[%s4265_s0 + %s3120_s1]]  }
  0x11   :  { %4290 = sst [smem:[#allocation73_spill]] %s3238_s19 }
  0x12   :  { %s3258_s12 = sld [smem:[%s4265_s0 + %s3121_s7]]   ;;  %s3125_s7 = smov 18  }
  0x13   :  { %s3263_s20 = sld [smem:[%s4265_s0 + %s3122_s15]]   ;;  %s3126_s15 = smov 19  }
  0x14   :  { %4291 = sst [smem:[#allocation74_spill]] %s3248_s30 }
  0x15   :  { %s3268_s27 = sld [smem:[%s4265_s0 + %s3123_s22]]   ;;  %s3127_s22 = smov 20  }
  0x16   :  { %s3273_s4 = sld [smem:[%s4265_s0 + %s3124_s28]]   ;;  %s3128_s28 = smov 21  }
  0x17   :  { %s3283_s30 = sld [smem:[%s4265_s0 + %s3126_s15]]   ;;  %s3130_s15 = smov 23  }
  0x18   :  { %4292 = sst [smem:[#allocation75_spill]] %s3258_s12 }
  0x19   :  { %s3278_s12 = sld [smem:[%s4265_s0 + %s3125_s7]]   ;;  %s3129_s7 = smov 22  }
  0x1a   :  { %s3293_s19 = sld [smem:[%s4265_s0 + %s3128_s28]]   ;;  %s3132_s28 = smov 25  }
  0x1b   :  { %4293 = sst [smem:[#allocation76_spill]] %s3268_s27 }
  0x1c   :  { %s3288_s27 = sld [smem:[%s4265_s0 + %s3127_s22]]   ;;  %s3131_s22 = smov 24  }
  0x1d   :  { %s3303_s8 = sld [smem:[%s4265_s0 + %s3130_s15]]   ;;  %s3134_s15 = smov 27  }
  0x1e   :  { %s3313_s29 = sld [smem:[%s4265_s0 + %s3132_s28]]   ;;  %s3136_s28 = smov 29  }
  0x1f   :  { %4294 = sst [smem:[#allocation77_spill]] %s3278_s12 }
  0x20   :  { %s3298_s12 = sld [smem:[%s4265_s0 + %s3129_s7]]   ;;  %s3133_s7 = smov 26  }
  0x22   :  { %4295 = sst [smem:[#allocation78_spill]] %s3288_s27 }
  0x23   :  { %4297 = sst [smem:[#allocation80_spill]] %s3303_s8 }
  0x24   :  { %s3308_s27 = sld [smem:[%s4265_s0 + %s3131_s22]]   ;;  %s3135_s22 = smov 28  }
  0x25   :  { %4299 = sst [smem:[#allocation82_spill]] %s3313_s29 }
  0x26   :  { %4296 = sst [smem:[#allocation79_spill]] %s3298_s12 }
  0x27   :  { %s3318_s12 = sld [smem:[%s4265_s0 + %s3133_s7]]   ;;  %s3137_s7 = smov 30  }
  0x28   :  { %s3323_s8 = sld [smem:[%s4265_s0 + %s3134_s15]]   ;;  %s3138_s15 = smov 31  }
  0x29   :  { %s3333_s29 = sld [smem:[%s4265_s0 + %s3136_s28]]  }
  0x2a   :  { %4298 = sst [smem:[#allocation81_spill]] %s3308_s27 }
  0x2b   :  { %s3328_s27 = sld [smem:[%s4265_s0 + %s3135_s22]]   ;;  %s3139_s22 = smov 32  }
  0x2d   :  { %4300 = sst [smem:[#allocation83_spill]] %s3318_s12 }
  0x2e   :  { %4301 = sst [smem:[#allocation84_spill]] %s3323_s8 }
  0x2f   :  { %s3338_s12 = sld [smem:[%s4265_s0 + %s3137_s7]]  }
  0x30   :  { %s3343_s8 = sld [smem:[%s4265_s0 + %s3138_s15]]  }
  0x31   :  { %4302 = sst [smem:[#allocation85_spill]] %s3328_s27 }
  0x32   :  { %s3348_s27 = sld [smem:[%s4265_s0 + %s3139_s22]]  }
  0x33   :  { %71 = vsyncpa [#allocation3], 0 }
  0x34   :  { %72 = vsyncpa [#allocation6], 0 }
  0x35   :  { %73 = vsyncpa [#allocation9], 0 }
  0x36   :  { %74 = vsyncpa [#allocation12], 0 }
  0x37   :  { %75 = vsyncpa [#allocation15], 0 }
  0x38   :  { %76 = vsyncpa [#allocation18], 0 }
  0x39   :  { %77 = vsyncpa [#allocation21], 0 }
  0x3a   :  { %78 = vsyncpa [#allocation24], 0 }
  0x3b   :  { %79 = vsyncpa [#allocation27], 0 }
  0x3c   :  { %80 = vsyncpa [#allocation30], 0 }
  0x3d   :  { %81 = vsyncpa [#allocation33], 0 }
  0x3e   :  { %82 = vsyncpa [#allocation36], 0 }
  0x3f   :  { %83 = vsyncpa [#allocation39], 0 }
  0x40   :  { %84 = vsyncpa [#allocation4], 0 }
  0x41   :  { %85 = vsyncpa [#allocation42], 0 }
  0x42   :  { %86 = vsyncpa [#allocation45], 0 }
  0x43   :  { %87 = vsyncpa [#allocation48], 0 }
  0x44   :  { %88 = vsyncpa [#allocation51], 0  ;;  %s3140_s0 = smov [#allocation5]   ;;  %s3141_s1 = smov [#allocation8]  }
  0x45   :  { %s105_s28 = sshll.u32 %s3140_s0, 4  ;;  %s127_s2 = sshll.u32 %s3141_s1, 4  ;;  %s106_s28 = int_to_ptr.vmem [resolvable:$true] %s105_s28  ;;  %s128_s2 = int_to_ptr.vmem [resolvable:$true] %s127_s2 }
  0x46   :  { %s2346_s7 = scalar_lea.hbm %s3193_s9, 256 }
  0x47   :  { %p2347_p0 = scmp.ne.s32.totalorder %s3193_s9, %s2346_s7  ;;  %p2350_p1 = scmp.lt.u32.totalorder %s2346_s7, %s3193_s9 }
  0x49   :  { %p2352_p2 = pnand %p2350_p1, %p2347_p0 }
  0x4b   :  { %2355 = shalt.err (!%p2352_p2)
}
  0x4c   :  { %s2356_s10 = scalar_lea.vmem %s106_s28, 256  ;;  %p2361_p4 = scmp.lt.s32.totalorder %s106_s28, %s106_s28 }
  0x4d   :  { %p2357_p3 = scmp.ne.s32.totalorder %s106_s28, %s2356_s10  ;;  %p2362_p5 = scmp.lt.s32.totalorder %s2356_s10, %s2356_s10 }
  0x4f   :  { %p2363_p6 = por %p2362_p5, %p2361_p4 }
  0x51   :  { %p2364_p7 = pnand %p2363_p6, %p2357_p3 }
  0x53   :  { %2367 = shalt.err (!%p2364_p7)
}
  0x54   :  { %108 = dma.hbm_to_vmem [thread:$0]  %s3193_s9, 256, %s106_s28, [#allocation6]  }
  0x55   :  { %s2368_s11 = scalar_lea.hbm %s3203_s17, 16 }
  0x56   :  { %p2369_p8 = scmp.ne.s32.totalorder %s3203_s17, %s2368_s11  ;;  %p2372_p9 = scmp.lt.u32.totalorder %s2368_s11, %s3203_s17 }
  0x58   :  { %p2374_p10 = pnand %p2372_p9, %p2369_p8 }
  0x5a   :  { %2377 = shalt.err (!%p2374_p10)
}
  0x5b   :  { %s2378_s15 = scalar_lea.vmem %s128_s2, 16  ;;  %s2382_s16 = scalar_lea.vmem %s128_s2, 32 }
  0x5c   :  { %p2379_p11 = scmp.ne.s32.totalorder %s128_s2, %s2378_s15  ;;  %p2383_p12 = scmp.lt.s32.totalorder %s128_s2, %s128_s2 }
  0x5d   :  { %p2384_p13 = scmp.lt.s32.totalorder %s2382_s16, %s2378_s15 }
  0x5f   :  { %p2385_p0 = por %p2384_p13, %p2383_p12 }
  0x61   :  { %p2386_p1 = pnand %p2385_p0, %p2379_p11 }
  0x63   :  { %2389 = shalt.err (!%p2386_p1)
}
  0x64   :  { %130 = dma.hbm_to_vmem [thread:$0]  %s3203_s17, 16, %s128_s2, [#allocation9]  }
  0x65   :  { %s3142_s18 = smov [#allocation11]   ;;  %s3143_s22 = smov [#allocation14]  }
  0x66   :  { %s149_s9 = sshll.u32 %s3142_s18, 4  ;;  %s169_s23 = sshll.u32 %s3143_s22, 4  ;;  %s150_s9 = int_to_ptr.vmem [resolvable:$true] %s149_s9  ;;  %s170_s23 = int_to_ptr.vmem [resolvable:$true] %s169_s23 }
  0x67   :  { %s2390_s26 = scalar_lea.hbm %s3213_s25, 32 }
  0x68   :  { %p2391_p2 = scmp.ne.s32.totalorder %s3213_s25, %s2390_s26  ;;  %p2394_p3 = scmp.lt.u32.totalorder %s2390_s26, %s3213_s25 }
  0x6a   :  { %p2396_p4 = pnand %p2394_p3, %p2391_p2 }
  0x6c   :  { %2399 = shalt.err (!%p2396_p4)
}
  0x6d   :  { %s2400_s0 = scalar_lea.vmem %s150_s9, 32  ;;  %p2405_p6 = scmp.lt.s32.totalorder %s150_s9, %s150_s9 }
  0x6e   :  { %p2401_p5 = scmp.ne.s32.totalorder %s150_s9, %s2400_s0  ;;  %p2406_p7 = scmp.lt.s32.totalorder %s2400_s0, %s2400_s0 }
  0x70   :  { %p2407_p8 = por %p2406_p7, %p2405_p6 }
  0x72   :  { %p2408_p9 = pnand %p2407_p8, %p2401_p5 }
  0x74   :  { %2411 = shalt.err (!%p2408_p9)
}
  0x75   :  { %152 = dma.hbm_to_vmem [thread:$0]  %s3213_s25, 32, %s150_s9, [#allocation12]  }
  0x76   :  { %s2412_s17 = scalar_lea.hbm %s3223_s3, 32 }
  0x77   :  { %p2413_p10 = scmp.ne.s32.totalorder %s3223_s3, %s2412_s17  ;;  %p2416_p11 = scmp.lt.u32.totalorder %s2412_s17, %s3223_s3 }
  0x79   :  { %p2418_p12 = pnand %p2416_p11, %p2413_p10 }
  0x7b   :  { %2421 = shalt.err (!%p2418_p12)
}
  0x7c   :  { %s2422_s28 = scalar_lea.vmem %s170_s23, 32  ;;  %p2427_p0 = scmp.lt.s32.totalorder %s170_s23, %s170_s23 }
  0x7d   :  { %p2423_p13 = scmp.ne.s32.totalorder %s170_s23, %s2422_s28  ;;  %p2428_p1 = scmp.lt.s32.totalorder %s2422_s28, %s2422_s28 }
  0x7f   :  { %p2429_p2 = por %p2428_p1, %p2427_p0 }
  0x81   :  { %p2430_p3 = pnand %p2429_p2, %p2423_p13 }
  0x83   :  { %2433 = shalt.err (!%p2430_p3)
}
  0x84   :  { %172 = dma.hbm_to_vmem [thread:$0]  %s3223_s3, 32, %s170_s23, [#allocation15]  }
  0x85   :  { %s3144_s1 = smov [#allocation17]   ;;  %s3145_s25 = smov [#allocation20]  }
  0x86   :  { %s191_s2 = sshll.u32 %s3144_s1, 4  ;;  %s213_s7 = sshll.u32 %s3145_s25, 4  ;;  %s192_s2 = int_to_ptr.vmem [resolvable:$true] %s191_s2  ;;  %s214_s7 = int_to_ptr.vmem [resolvable:$true] %s213_s7 }
  0x87   :  { %s2434_s10 = scalar_lea.hbm %s3233_s14, 16 }
  0x88   :  { %p2435_p4 = scmp.ne.s32.totalorder %s3233_s14, %s2434_s10  ;;  %p2438_p5 = scmp.lt.u32.totalorder %s2434_s10, %s3233_s14 }
  0x8a   :  { %p2440_p6 = pnand %p2438_p5, %p2435_p4 }
  0x8c   :  { %2443 = shalt.err (!%p2440_p6)
}
  0x8d   :  { %s2444_s11 = scalar_lea.vmem %s192_s2, 16  ;;  %s2448_s15 = scalar_lea.vmem %s192_s2, 32 }
  0x8e   :  { %p2445_p7 = scmp.ne.s32.totalorder %s192_s2, %s2444_s11  ;;  %p2449_p8 = scmp.lt.s32.totalorder %s192_s2, %s192_s2 }
  0x8f   :  { %p2450_p9 = scmp.lt.s32.totalorder %s2448_s15, %s2444_s11 }
  0x91   :  { %p2451_p10 = por %p2450_p9, %p2449_p8 }
  0x93   :  { %p2452_p11 = pnand %p2451_p10, %p2445_p7 }
  0x95   :  { %2455 = shalt.err (!%p2452_p11)
}
  0x96   :  { %194 = dma.hbm_to_vmem [thread:$0]  %s3233_s14, 16, %s192_s2, [#allocation18]  }
  0x97   :  { %s2456_s3 = scalar_lea.hbm %s3243_s24, 16 }
  0x98   :  { %p2457_p12 = scmp.ne.s32.totalorder %s3243_s24, %s2456_s3  ;;  %p2460_p13 = scmp.lt.u32.totalorder %s2456_s3, %s3243_s24 }
  0x9a   :  { %p2462_p0 = pnand %p2460_p13, %p2457_p12 }
  0x9c   :  { %2465 = shalt.err (!%p2462_p0)
}
  0x9d   :  { %s2466_s16 = scalar_lea.vmem %s214_s7, 16  ;;  %s2470_s18 = scalar_lea.vmem %s214_s7, 32 }
  0x9e   :  { %p2467_p1 = scmp.ne.s32.totalorder %s214_s7, %s2466_s16  ;;  %p2471_p2 = scmp.lt.s32.totalorder %s214_s7, %s214_s7 }
  0x9f   :  { %p2472_p3 = scmp.lt.s32.totalorder %s2470_s18, %s2466_s16 }
  0xa1   :  { %p2473_p4 = por %p2472_p3, %p2471_p2 }
  0xa3   :  { %p2474_p5 = pnand %p2473_p4, %p2467_p1 }
  0xa5   :  { %2477 = shalt.err (!%p2474_p5)
}
  0xa6   :  { %216 = dma.hbm_to_vmem [thread:$0]  %s3243_s24, 16, %s214_s7, [#allocation21]  }
  0xa7   :  { %s3146_s9 = smov [#allocation23]   ;;  %s3147_s22 = smov [#allocation26]  }
  0xa8   :  { %s233_s14 = sshll.u32 %s3146_s9, 4  ;;  %s255_s23 = sshll.u32 %s3147_s22, 4  ;;  %s234_s14 = int_to_ptr.vmem [resolvable:$true] %s233_s14  ;;  %s256_s23 = int_to_ptr.vmem [resolvable:$true] %s255_s23 }
  0xa9   :  { %s2478_s26 = scalar_lea.hbm %s3253_s6, 16 }
  0xaa   :  { %p2479_p6 = scmp.ne.s32.totalorder %s3253_s6, %s2478_s26  ;;  %p2482_p7 = scmp.lt.u32.totalorder %s2478_s26, %s3253_s6 }
  0xac   :  { %p2484_p8 = pnand %p2482_p7, %p2479_p6 }
  0xae   :  { %2487 = shalt.err (!%p2484_p8)
}
  0xaf   :  { %s2488_s0 = scalar_lea.vmem %s234_s14, 16  ;;  %s2492_s17 = scalar_lea.vmem %s234_s14, 32 }
  0xb0   :  { %p2489_p9 = scmp.ne.s32.totalorder %s234_s14, %s2488_s0  ;;  %p2493_p10 = scmp.lt.s32.totalorder %s234_s14, %s234_s14 }
  0xb1   :  { %p2494_p11 = scmp.lt.s32.totalorder %s2492_s17, %s2488_s0 }
  0xb3   :  { %p2495_p12 = por %p2494_p11, %p2493_p10 }
  0xb5   :  { %p2496_p13 = pnand %p2495_p12, %p2489_p9 }
  0xb7   :  { %2499 = shalt.err (!%p2496_p13)
}
  0xb8   :  { %236 = dma.hbm_to_vmem [thread:$0]  %s3253_s6, 16, %s234_s14, [#allocation24]  }
  0xb9   :  { %s2500_s24 = scalar_lea.hbm %s3263_s20, 16 }
  0xba   :  { %p2501_p0 = scmp.ne.s32.totalorder %s3263_s20, %s2500_s24  ;;  %p2504_p1 = scmp.lt.u32.totalorder %s2500_s24, %s3263_s20 }
  0xbc   :  { %p2506_p2 = pnand %p2504_p1, %p2501_p0 }
  0xbe   :  { %2509 = shalt.err (!%p2506_p2)
}
  0xbf   :  { %s2510_s28 = scalar_lea.vmem %s256_s23, 16  ;;  %s2514_s1 = scalar_lea.vmem %s256_s23, 32 }
  0xc0   :  { %p2511_p3 = scmp.ne.s32.totalorder %s256_s23, %s2510_s28  ;;  %p2515_p4 = scmp.lt.s32.totalorder %s256_s23, %s256_s23 }
  0xc1   :  { %p2516_p5 = scmp.lt.s32.totalorder %s2514_s1, %s2510_s28 }
  0xc3   :  { %p2517_p6 = por %p2516_p5, %p2515_p4 }
  0xc5   :  { %p2518_p7 = pnand %p2517_p6, %p2511_p3 }
  0xc7   :  { %2521 = shalt.err (!%p2518_p7)
}
  0xc8   :  { %258 = dma.hbm_to_vmem [thread:$0]  %s3263_s20, 16, %s256_s23, [#allocation27]  }
  0xc9   :  { %s3148_s2 = smov [#allocation29]   ;;  %s3149_s25 = smov [#allocation32]  }
  0xca   :  { %s277_s6 = sshll.u32 %s3148_s2, 4  ;;  %s299_s7 = sshll.u32 %s3149_s25, 4  ;;  %s278_s6 = int_to_ptr.vmem [resolvable:$true] %s277_s6  ;;  %s300_s7 = int_to_ptr.vmem [resolvable:$true] %s299_s7 }
  0xcb   :  { %s2522_s10 = scalar_lea.hbm %s3273_s4, 16 }
  0xcc   :  { %p2523_p8 = scmp.ne.s32.totalorder %s3273_s4, %s2522_s10  ;;  %p2526_p9 = scmp.lt.u32.totalorder %s2522_s10, %s3273_s4 }
  0xce   :  { %p2528_p10 = pnand %p2526_p9, %p2523_p8 }
  0xd0   :  { %2531 = shalt.err (!%p2528_p10)
}
  0xd1   :  { %s2532_s11 = scalar_lea.vmem %s278_s6, 16  ;;  %s2536_s15 = scalar_lea.vmem %s278_s6, 32 }
  0xd2   :  { %p2533_p11 = scmp.ne.s32.totalorder %s278_s6, %s2532_s11  ;;  %p2537_p12 = scmp.lt.s32.totalorder %s278_s6, %s278_s6 }
  0xd3   :  { %p2538_p13 = scmp.lt.s32.totalorder %s2536_s15, %s2532_s11 }
  0xd5   :  { %p2539_p0 = por %p2538_p13, %p2537_p12 }
  0xd7   :  { %p2540_p1 = pnand %p2539_p0, %p2533_p11 }
  0xd9   :  { %2543 = shalt.err (!%p2540_p1)
}
  0xda   :  { %280 = dma.hbm_to_vmem [thread:$0]  %s3273_s4, 16, %s278_s6, [#allocation30]  }
  0xdb   :  { %s2544_s20 = scalar_lea.hbm %s3283_s30, 32 }
  0xdc   :  { %p2545_p2 = scmp.ne.s32.totalorder %s3283_s30, %s2544_s20  ;;  %p2548_p3 = scmp.lt.u32.totalorder %s2544_s20, %s3283_s30 }
  0xde   :  { %p2550_p4 = pnand %p2548_p3, %p2545_p2 }
  0xe0   :  { %2553 = shalt.err (!%p2550_p4)
}
  0xe1   :  { %s2554_s3 = scalar_lea.vmem %s300_s7, 32  ;;  %p2559_p6 = scmp.lt.s32.totalorder %s300_s7, %s300_s7 }
  0xe2   :  { %p2555_p5 = scmp.ne.s32.totalorder %s300_s7, %s2554_s3  ;;  %p2560_p7 = scmp.lt.s32.totalorder %s2554_s3, %s2554_s3 }
  0xe4   :  { %p2561_p8 = por %p2560_p7, %p2559_p6 }
  0xe6   :  { %p2562_p9 = pnand %p2561_p8, %p2555_p5 }
  0xe8   :  { %2565 = shalt.err (!%p2562_p9)
}
  0xe9   :  { %302 = dma.hbm_to_vmem [thread:$0]  %s3283_s30, 32, %s300_s7, [#allocation33]  }
  0xea   :  { %s3150_s16 = smov [#allocation35]   ;;  %s3151_s4 = smov [#allocation2]  }
  0xeb   :  { %s319_s18 = sshll.u32 %s3150_s16, 4  ;;  %s95_s9 = sshll.u32 %s3151_s4, 4  ;;  %s320_s18 = int_to_ptr.vmem [resolvable:$true] %s319_s18  ;;  %s96_s9 = int_to_ptr.vmem [resolvable:$true] %s95_s9 }
  0xec   :  { %s2566_s14 = scalar_lea.hbm %s3293_s19, 32 }
  0xed   :  { %p2567_p10 = scmp.ne.s32.totalorder %s3293_s19, %s2566_s14  ;;  %p2570_p11 = scmp.lt.u32.totalorder %s2566_s14, %s3293_s19 }
  0xef   :  { %p2572_p12 = pnand %p2570_p11, %p2567_p10 }
  0xf1   :  { %2575 = shalt.err (!%p2572_p12)
}
  0xf2   :  { %s2576_s22 = scalar_lea.vmem %s320_s18, 32  ;;  %p2581_p0 = scmp.lt.s32.totalorder %s320_s18, %s320_s18 }
  0xf3   :  { %p2577_p13 = scmp.ne.s32.totalorder %s320_s18, %s2576_s22  ;;  %p2582_p1 = scmp.lt.s32.totalorder %s2576_s22, %s2576_s22 }
  0xf5   :  { %p2583_p2 = por %p2582_p1, %p2581_p0 }
  0xf7   :  { %p2584_p3 = pnand %p2583_p2, %p2577_p13 }
  0xf9   :  { %2587 = shalt.err (!%p2584_p3)
}
  0xfa   :  { %322 = dma.hbm_to_vmem [thread:$0]  %s3293_s19, 32, %s320_s18, [#allocation36]  }
  0xfb   :  { %s2588_s30 = scalar_lea.hbm %s3188_s5, 256 }
  0xfc   :  { %p2589_p4 = scmp.ne.s32.totalorder %s3188_s5, %s2588_s30  ;;  %p2592_p5 = scmp.lt.u32.totalorder %s2588_s30, %s3188_s5 }
  0xfe   :  { %p2594_p6 = pnand %p2592_p5, %p2589_p4 }
 0x100   :  { %2597 = shalt.err (!%p2594_p6)
}
 0x101   :  { %s2598_s23 = scalar_lea.vmem %s96_s9, 256  ;;  %p2603_p8 = scmp.lt.s32.totalorder %s96_s9, %s96_s9 }
 0x102   :  { %p2599_p7 = scmp.ne.s32.totalorder %s96_s9, %s2598_s23  ;;  %p2604_p9 = scmp.lt.s32.totalorder %s2598_s23, %s2598_s23 }
 0x104   :  { %p2605_p10 = por %p2604_p9, %p2603_p8 }
 0x106   :  { %p2606_p11 = pnand %p2605_p10, %p2599_p7 }
 0x108   :  { %2609 = shalt.err (!%p2606_p11)
}
 0x109   :  { %98 = dma.hbm_to_vmem [thread:$0]  %s3188_s5, 256, %s96_s9, [#allocation3]  }
 0x10a   :  { %s3152_s26 = smov [#allocation7]   ;;  %s2610_s19 = scalar_lea.hbm %s3198_s13, 4096 }
 0x10b   :  { %s114_s0 = sshll.u32 %s3152_s26, 4  ;;  %p2611_p12 = scmp.ne.s32.totalorder %s3198_s13, %s2610_s19  ;;  %s115_s0 = int_to_ptr.vmem [resolvable:$true] %s114_s0 }
 0x10c   :  { %p2614_p13 = scmp.lt.u32.totalorder %s2610_s19, %s3198_s13 }
 0x10e   :  { %p2616_p0 = pnand %p2614_p13, %p2611_p12 }
 0x110   :  { %2619 = shalt.err (!%p2616_p0)
}
 0x111   :  { %s2620_s17 = scalar_lea.vmem %s115_s0, 4096  ;;  %p2625_p2 = scmp.lt.s32.totalorder %s115_s0, %s115_s0 }
 0x112   :  { %p2621_p1 = scmp.ne.s32.totalorder %s115_s0, %s2620_s17  ;;  %p2626_p3 = scmp.lt.s32.totalorder %s2620_s17, %s2620_s17 }
 0x114   :  { %p2627_p4 = por %p2626_p3, %p2625_p2 }
 0x116   :  { %p2628_p5 = pnand %p2627_p4, %p2621_p1 }
 0x118   :  { %2631 = shalt.err (!%p2628_p5)
}
 0x119   :  { %s3153_s24 = smov 128   ;;  %s3154_s5 = smov 8  }
 0x11a   :  { %120 = dma.hbm_to_vmem [thread:$0]  %s3198_s13, 4096, %s115_s0, [#allocation6], %s3153_s24, %s3153_s24, %s3154_s5  }
 0x11b   :  { %s3155_s28 = smov [#allocation10]   ;;  %s2632_s2 = scalar_lea.hbm %s3208_s21, 4096 }
 0x11c   :  { %s136_s1 = sshll.u32 %s3155_s28, 4  ;;  %p2633_p6 = scmp.ne.s32.totalorder %s3208_s21, %s2632_s2  ;;  %s137_s1 = int_to_ptr.vmem [resolvable:$true] %s136_s1 }
 0x11d   :  { %p2636_p7 = scmp.lt.u32.totalorder %s2632_s2, %s3208_s21 }
 0x11f   :  { %p2638_p8 = pnand %p2636_p7, %p2633_p6 }
 0x121   :  { %2641 = shalt.err (!%p2638_p8)
}
 0x122   :  { %s2642_s6 = scalar_lea.vmem %s137_s1, 4096  ;;  %p2647_p10 = scmp.lt.s32.totalorder %s137_s1, %s137_s1 }
 0x123   :  { %p2643_p9 = scmp.ne.s32.totalorder %s137_s1, %s2642_s6  ;;  %p2648_p11 = scmp.lt.s32.totalorder %s2642_s6, %s2642_s6 }
 0x125   :  { %p2649_p12 = por %p2648_p11, %p2647_p10 }
 0x127   :  { %p2650_p13 = pnand %p2649_p12, %p2643_p9 }
 0x129   :  { %2653 = shalt.err (!%p2650_p13)
}
 0x12a   :  { %s3156_s25 = smov 256   ;;  %s4303_s7 = sld [smem:[#allocation71_spill]] }
 0x12b   :  { %s3157_s13 = smov 16   ;;  %s3158_s10 = smov [#allocation13]  }
 0x12c   :  { %142 = dma.hbm_to_vmem [thread:$0]  %s3208_s21, 4096, %s137_s1, [#allocation9], %s3156_s25, %s3156_s25, %s3157_s13  }
 0x12d   :  { %s159_s11 = sshll.u32 %s3158_s10, 4  ;;  %s3159_s15 = smov [#allocation16]   ;;  %s160_s11 = int_to_ptr.vmem [resolvable:$true] %s159_s11 }
 0x12e   :  { %s178_s20 = sshll.u32 %s3159_s15, 4  ;;  %s3412_s20 = int_to_ptr.vmem [resolvable:$true] %s178_s20 }
 0x130   :  { %s2654_s3 = scalar_lea.hbm %s4303_s7, 32 }
 0x131   :  { %p2655_p0 = scmp.ne.s32.totalorder %s4303_s7, %s2654_s3  ;;  %p2658_p1 = scmp.lt.u32.totalorder %s2654_s3, %s4303_s7 }
 0x133   :  { %p2660_p2 = pnand %p2658_p1, %p2655_p0 }
 0x135   :  { %2663 = shalt.err (!%p2660_p2)
}
 0x136   :  { %s2664_s16 = scalar_lea.vmem %s160_s11, 32  ;;  %p2669_p4 = scmp.lt.s32.totalorder %s160_s11, %s160_s11 }
 0x137   :  { %p2665_p3 = scmp.ne.s32.totalorder %s160_s11, %s2664_s16  ;;  %p2670_p5 = scmp.lt.s32.totalorder %s2664_s16, %s2664_s16 }
 0x139   :  { %p2671_p6 = por %p2670_p5, %p2669_p4 }
 0x13b   :  { %p2672_p7 = pnand %p2671_p6, %p2665_p3 }
 0x13d   :  { %2675 = shalt.err (!%p2672_p7)
}
 0x13e   :  { %s4304_s21 = sld [smem:[#allocation72_spill]] }
 0x13f   :  { %162 = dma.hbm_to_vmem [thread:$0]  %s4303_s7, 32, %s160_s11, [#allocation12]  }
 0x144   :  { %s2676_s18 = scalar_lea.hbm %s4304_s21, 4096 }
 0x145   :  { %p2677_p8 = scmp.ne.s32.totalorder %s4304_s21, %s2676_s18  ;;  %p2680_p9 = scmp.lt.u32.totalorder %s2676_s18, %s4304_s21 }
 0x147   :  { %p2682_p10 = pnand %p2680_p9, %p2677_p8 }
 0x149   :  { %2685 = shalt.err (!%p2682_p10)
}
 0x14a   :  { %s2686_s4 = scalar_lea.vmem %s3412_s20, 4096  ;;  %p2691_p12 = scmp.lt.s32.totalorder %s3412_s20, %s3412_s20 }
 0x14b   :  { %p2687_p11 = scmp.ne.s32.totalorder %s3412_s20, %s2686_s4  ;;  %p2692_p13 = scmp.lt.s32.totalorder %s2686_s4, %s2686_s4 }
 0x14d   :  { %p2693_p0 = por %p2692_p13, %p2691_p12 }
 0x14f   :  { %p2694_p1 = pnand %p2693_p0, %p2687_p11 }
 0x151   :  { %2697 = shalt.err (!%p2694_p1)
}
 0x152   :  { %s4305_s9 = sld [smem:[#allocation73_spill]]  ;;  %s3160_s14 = smov [#allocation19]  }
 0x153   :  { %184 = dma.hbm_to_vmem [thread:$0]  %s4304_s21, 4096, %s3412_s20, [#allocation15], %s3153_s24, %s3153_s24, %s3154_s5  }
 0x154   :  { %s200_s22 = sshll.u32 %s3160_s14, 4  ;;  %s3161_s30 = smov [#allocation22]   ;;  %s201_s22 = int_to_ptr.vmem [resolvable:$true] %s200_s22 }
 0x155   :  { %s223_s23 = sshll.u32 %s3161_s30, 4  ;;  %s224_s23 = int_to_ptr.vmem [resolvable:$true] %s223_s23 }
 0x158   :  { %s2698_s26 = scalar_lea.hbm %s4305_s9, 2048 }
 0x159   :  { %p2699_p2 = scmp.ne.s32.totalorder %s4305_s9, %s2698_s26  ;;  %p2702_p3 = scmp.lt.u32.totalorder %s2698_s26, %s4305_s9 }
 0x15b   :  { %p2704_p4 = pnand %p2702_p3, %p2699_p2 }
 0x15d   :  { %2707 = shalt.err (!%p2704_p4)
}
 0x15e   :  { %s2708_s0 = scalar_lea.vmem %s201_s22, 2048  ;;  %p2713_p6 = scmp.lt.s32.totalorder %s201_s22, %s201_s22 }
 0x15f   :  { %p2709_p5 = scmp.ne.s32.totalorder %s201_s22, %s2708_s0  ;;  %p2714_p7 = scmp.lt.s32.totalorder %s2708_s0, %s2708_s0 }
 0x161   :  { %p2715_p8 = por %p2714_p7, %p2713_p6 }
 0x163   :  { %p2716_p9 = pnand %p2715_p8, %p2709_p5 }
 0x165   :  { %2719 = shalt.err (!%p2716_p9)
}
 0x166   :  { %s4306_s19 = sld [smem:[#allocation74_spill]] }
 0x167   :  { %206 = dma.hbm_to_vmem [thread:$0]  %s4305_s9, 2048, %s201_s22, [#allocation18], %s3153_s24, %s3153_s24, %s3154_s5  }
 0x16c   :  { %s2720_s17 = scalar_lea.hbm %s4306_s19, 16 }
 0x16d   :  { %p2721_p10 = scmp.ne.s32.totalorder %s4306_s19, %s2720_s17  ;;  %p2724_p11 = scmp.lt.u32.totalorder %s2720_s17, %s4306_s19 }
 0x16f   :  { %p2726_p12 = pnand %p2724_p11, %p2721_p10 }
 0x171   :  { %2729 = shalt.err (!%p2726_p12)
}
 0x172   :  { %s2730_s28 = scalar_lea.vmem %s224_s23, 16  ;;  %s2734_s1 = scalar_lea.vmem %s224_s23, 32 }
 0x173   :  { %p2731_p13 = scmp.ne.s32.totalorder %s224_s23, %s2730_s28  ;;  %p2735_p0 = scmp.lt.s32.totalorder %s224_s23, %s224_s23 }
 0x174   :  { %p2736_p1 = scmp.lt.s32.totalorder %s2734_s1, %s2730_s28 }
 0x176   :  { %p2737_p2 = por %p2736_p1, %p2735_p0 }
 0x178   :  { %p2738_p3 = pnand %p2737_p2, %p2731_p13 }
 0x17a   :  { %2741 = shalt.err (!%p2738_p3)
}
 0x17b   :  { %s4307_s2 = sld [smem:[#allocation75_spill]]  ;;  %s3162_s6 = smov [#allocation25]  }
 0x17c   :  { %226 = dma.hbm_to_vmem [thread:$0]  %s4306_s19, 16, %s224_s23, [#allocation21]  }
 0x17d   :  { %s242_s7 = sshll.u32 %s3162_s6, 4  ;;  %s3163_s10 = smov [#allocation28]   ;;  %s243_s7 = int_to_ptr.vmem [resolvable:$true] %s242_s7 }
 0x17e   :  { %s264_s11 = sshll.u32 %s3163_s10, 4  ;;  %s3441_s11 = int_to_ptr.vmem [resolvable:$true] %s264_s11 }
 0x181   :  { %s2742_s15 = scalar_lea.hbm %s4307_s2, 2048 }
 0x182   :  { %p2743_p4 = scmp.ne.s32.totalorder %s4307_s2, %s2742_s15  ;;  %p2746_p5 = scmp.lt.u32.totalorder %s2742_s15, %s4307_s2 }
 0x184   :  { %p2748_p6 = pnand %p2746_p5, %p2743_p4 }
 0x186   :  { %2751 = shalt.err (!%p2748_p6)
}
 0x187   :  { %s2752_s20 = scalar_lea.vmem %s243_s7, 2048  ;;  %p2757_p8 = scmp.lt.s32.totalorder %s243_s7, %s243_s7 }
 0x188   :  { %p2753_p7 = scmp.ne.s32.totalorder %s243_s7, %s2752_s20  ;;  %p2758_p9 = scmp.lt.s32.totalorder %s2752_s20, %s2752_s20 }
 0x18a   :  { %p2759_p10 = por %p2758_p9, %p2757_p8 }
 0x18c   :  { %p2760_p11 = pnand %p2759_p10, %p2753_p7 }
 0x18e   :  { %2763 = shalt.err (!%p2760_p11)
}
 0x18f   :  { %s4308_s3 = sld [smem:[#allocation76_spill]] }
 0x190   :  { %248 = dma.hbm_to_vmem [thread:$0]  %s4307_s2, 2048, %s243_s7, [#allocation24], %s3153_s24, %s3153_s24, %s3154_s5  }
 0x195   :  { %s2764_s16 = scalar_lea.hbm %s4308_s3, 4096 }
 0x196   :  { %p2765_p12 = scmp.ne.s32.totalorder %s4308_s3, %s2764_s16  ;;  %p2768_p13 = scmp.lt.u32.totalorder %s2764_s16, %s4308_s3 }
 0x198   :  { %p2770_p0 = pnand %p2768_p13, %p2765_p12 }
 0x19a   :  { %2773 = shalt.err (!%p2770_p0)
}
 0x19b   :  { %s2774_s21 = scalar_lea.vmem %s3441_s11, 4096  ;;  %p2779_p2 = scmp.lt.s32.totalorder %s3441_s11, %s3441_s11 }
 0x19c   :  { %p2775_p1 = scmp.ne.s32.totalorder %s3441_s11, %s2774_s21  ;;  %p2780_p3 = scmp.lt.s32.totalorder %s2774_s21, %s2774_s21 }
 0x19e   :  { %p2781_p4 = por %p2780_p3, %p2779_p2 }
 0x1a0   :  { %p2782_p5 = pnand %p2781_p4, %p2775_p1 }
 0x1a2   :  { %2785 = shalt.err (!%p2782_p5)
}
 0x1a3   :  { %s4309_s18 = sld [smem:[#allocation77_spill]]  ;;  %s3164_s4 = smov [#allocation31]  }
 0x1a4   :  { %270 = dma.hbm_to_vmem [thread:$0]  %s4308_s3, 4096, %s3441_s11, [#allocation27], %s3153_s24, %s3153_s24, %s3154_s5  }
 0x1a5   :  { %s286_s9 = sshll.u32 %s3164_s4, 4  ;;  %s3165_s14 = smov [#allocation34]   ;;  %s287_s9 = int_to_ptr.vmem [resolvable:$true] %s286_s9 }
 0x1a6   :  { %s309_s22 = sshll.u32 %s3165_s14, 4  ;;  %s310_s22 = int_to_ptr.vmem [resolvable:$true] %s309_s22 }
 0x1a9   :  { %s2786_s30 = scalar_lea.hbm %s4309_s18, 4096 }
 0x1aa   :  { %p2787_p6 = scmp.ne.s32.totalorder %s4309_s18, %s2786_s30  ;;  %p2790_p7 = scmp.lt.u32.totalorder %s2786_s30, %s4309_s18 }
 0x1ac   :  { %p2792_p8 = pnand %p2790_p7, %p2787_p6 }
 0x1ae   :  { %2795 = shalt.err (!%p2792_p8)
}
 0x1af   :  { %s2796_s23 = scalar_lea.vmem %s287_s9, 4096  ;;  %p2801_p10 = scmp.lt.s32.totalorder %s287_s9, %s287_s9 }
 0x1b0   :  { %p2797_p9 = scmp.ne.s32.totalorder %s287_s9, %s2796_s23  ;;  %p2802_p11 = scmp.lt.s32.totalorder %s2796_s23, %s2796_s23 }
 0x1b2   :  { %p2803_p12 = por %p2802_p11, %p2801_p10 }
 0x1b4   :  { %p2804_p13 = pnand %p2803_p12, %p2797_p9 }
 0x1b6   :  { %2807 = shalt.err (!%p2804_p13)
}
 0x1b7   :  { %s4310_s26 = sld [smem:[#allocation78_spill]] }
 0x1b8   :  { %292 = dma.hbm_to_vmem [thread:$0]  %s4309_s18, 4096, %s287_s9, [#allocation30], %s3156_s25, %s3156_s25, %s3157_s13  }
 0x1bd   :  { %s2808_s0 = scalar_lea.hbm %s4310_s26, 32 }
 0x1be   :  { %p2809_p0 = scmp.ne.s32.totalorder %s4310_s26, %s2808_s0  ;;  %p2812_p1 = scmp.lt.u32.totalorder %s2808_s0, %s4310_s26 }
 0x1c0   :  { %p2814_p2 = pnand %p2812_p1, %p2809_p0 }
 0x1c2   :  { %2817 = shalt.err (!%p2814_p2)
}
 0x1c3   :  { %s2818_s19 = scalar_lea.vmem %s310_s22, 32  ;;  %p2823_p4 = scmp.lt.s32.totalorder %s310_s22, %s310_s22 }
 0x1c4   :  { %p2819_p3 = scmp.ne.s32.totalorder %s310_s22, %s2818_s19  ;;  %p2824_p5 = scmp.lt.s32.totalorder %s2818_s19, %s2818_s19 }
 0x1c6   :  { %p2825_p6 = por %p2824_p5, %p2823_p4 }
 0x1c8   :  { %p2826_p7 = pnand %p2825_p6, %p2819_p3 }
 0x1ca   :  { %2829 = shalt.err (!%p2826_p7)
}
 0x1cb   :  { %s4311_s17 = sld [smem:[#allocation79_spill]]  ;;  %s3166_s28 = smov [#allocation37]  }
 0x1cc   :  { %312 = dma.hbm_to_vmem [thread:$0]  %s4310_s26, 32, %s310_s22, [#allocation33]  }
 0x1cd   :  { %s328_s1 = sshll.u32 %s3166_s28, 4  ;;  %s3167_s2 = smov [#allocation38]   ;;  %s329_s1 = int_to_ptr.vmem [resolvable:$true] %s328_s1 }
 0x1ce   :  { %s341_s6 = sshll.u32 %s3167_s2, 4  ;;  %s342_s6 = int_to_ptr.vmem [resolvable:$true] %s341_s6 }
 0x1d1   :  { %s2830_s7 = scalar_lea.hbm %s4311_s17, 4096 }
 0x1d2   :  { %p2831_p8 = scmp.ne.s32.totalorder %s4311_s17, %s2830_s7  ;;  %p2834_p9 = scmp.lt.u32.totalorder %s2830_s7, %s4311_s17 }
 0x1d4   :  { %p2836_p10 = pnand %p2834_p9, %p2831_p8 }
 0x1d6   :  { %2839 = shalt.err (!%p2836_p10)
}
 0x1d7   :  { %s2840_s10 = scalar_lea.vmem %s329_s1, 4096  ;;  %p2845_p12 = scmp.lt.s32.totalorder %s329_s1, %s329_s1 }
 0x1d8   :  { %p2841_p11 = scmp.ne.s32.totalorder %s329_s1, %s2840_s10  ;;  %p2846_p13 = scmp.lt.s32.totalorder %s2840_s10, %s2840_s10 }
 0x1da   :  { %p2847_p0 = por %p2846_p13, %p2845_p12 }
 0x1dc   :  { %p2848_p1 = pnand %p2847_p0, %p2841_p11 }
 0x1de   :  { %2851 = shalt.err (!%p2848_p1)
}
 0x1df   :  { %s4312_s11 = sld [smem:[#allocation80_spill]] }
 0x1e0   :  { %334 = dma.hbm_to_vmem [thread:$0]  %s4311_s17, 4096, %s329_s1, [#allocation36], %s3153_s24, %s3153_s24, %s3154_s5  }
 0x1e5   :  { %s2852_s15 = scalar_lea.hbm %s4312_s11, 16 }
 0x1e6   :  { %p2853_p2 = scmp.ne.s32.totalorder %s4312_s11, %s2852_s15  ;;  %p2856_p3 = scmp.lt.u32.totalorder %s2852_s15, %s4312_s11 }
 0x1e8   :  { %p2858_p4 = pnand %p2856_p3, %p2853_p2 }
 0x1ea   :  { %2861 = shalt.err (!%p2858_p4)
}
 0x1eb   :  { %s2862_s20 = scalar_lea.vmem %s342_s6, 16  ;;  %s2866_s3 = scalar_lea.vmem %s342_s6, 32 }
 0x1ec   :  { %p2863_p5 = scmp.ne.s32.totalorder %s342_s6, %s2862_s20  ;;  %p2867_p6 = scmp.lt.s32.totalorder %s342_s6, %s342_s6 }
 0x1ed   :  { %p2868_p7 = scmp.lt.s32.totalorder %s2866_s3, %s2862_s20 }
 0x1ef   :  { %p2869_p8 = por %p2868_p7, %p2867_p6 }
 0x1f1   :  { %p2870_p9 = pnand %p2869_p8, %p2863_p5 }
 0x1f3   :  { %2873 = shalt.err (!%p2870_p9)
}
 0x1f4   :  { %344 = dma.hbm_to_vmem [thread:$0]  %s4312_s11, 16, %s342_s6, [#allocation39]  }
 0x1f5   :  { %3072 = dma.done.wait [#allocation3], 256  }
 0x1f6   :  { %3073 = vsyncadd [#allocation3], 4294967040 }
 0x1f7   :  { %3074 = dma.done.wait [#allocation6], 4352  }
 0x1f8   :  { %3075 = vsyncadd [#allocation6], 4294962944 }
 0x1f9   :  { %3076 = dma.done.wait [#allocation9], 4112  }
 0x1fa   :  { %3077 = vsyncadd [#allocation9], 4294963184 }
 0x1fb   :  { %3078 = dma.done.wait [#allocation12], 64  }
 0x1fc   :  { %3079 = vsyncadd [#allocation12], 4294967232 }
 0x1fd   :  { %3080 = dma.done.wait [#allocation15], 4128  }
 0x1fe   :  { %3081 = vsyncadd [#allocation15], 4294963168 }
 0x1ff   :  { %3082 = dma.done.wait [#allocation18], 2064  }
 0x200   :  { %3083 = vsyncadd [#allocation18], 4294965232 }
 0x201   :  { %3084 = dma.done.wait [#allocation21], 32  }
 0x202   :  { %3085 = vsyncadd [#allocation21], 4294967264 }
 0x203   :  { %3086 = dma.done.wait [#allocation24], 2064  }
 0x204   :  { %3087 = vsyncadd [#allocation24], 4294965232 }
 0x205   :  { %3088 = dma.done.wait [#allocation27], 4112  }
 0x206   :  { %3089 = vsyncadd [#allocation27], 4294963184 }
 0x207   :  { %3090 = dma.done.wait [#allocation30], 4112  }
 0x208   :  { %3091 = vsyncadd [#allocation30], 4294963184 }
 0x209   :  { %3092 = dma.done.wait [#allocation33], 64  }
 0x20a   :  { %3093 = vsyncadd [#allocation33], 4294967232 }
 0x20b   :  { %3094 = dma.done.wait [#allocation36], 4128  }
 0x20c   :  { %3095 = vsyncadd [#allocation36], 4294963168 }
 0x20d   :  { %3096 = dma.done.wait [#allocation39], 16  }
 0x20e   :  { %3097 = vsyncadd [#allocation39], 4294967280  ;;  %v418_v0 = vld [vmem:[#allocation28] sm:$0xff]  ;;  %v419_v1 = vld [vmem:[#allocation28 + $0x8] sm:$0xff]  ;;  %vm3170_vm0 = vmmov 0   ;;  %s3171_s16 = smov [#allocation41]  }
 0x20f   :  { %v482_v2 = vld [vmem:[#allocation7] sm:$0xff]  ;;  %v450_v3 = vmul.f32 0.996, %v418_v0  ;;  %v451_v4 = vmul.f32 0.996, %v419_v1  ;;  %v483_v5 = vld [vmem:[#allocation7 + $0x8] sm:$0xff] }
 0x210   :  { %v420_v6 = vld [vmem:[#allocation28 + $0x10] sm:$0xff]  ;;  %v514_v7 = vmul.f32 0.004, %v482_v2  ;;  %v515_v8 = vmul.f32 0.004, %v483_v5  ;;  %v421_v9 = vld [vmem:[#allocation28 + $0x18] sm:$0xff]  ;;  %v1066_v21 = vpack.c.bf16 %v483_v5, %v482_v2 }
 0x211   :  { %v3484_v10 = vld [vmem:[#allocation7 + $0x10] sm:$0xff]  ;;  %v452_v11 = vmul.f32 0.996, %v420_v6  ;;  %v453_v12 = vmul.f32 0.996, %v421_v9  ;;  %v3486_v13 = vld [vmem:[#allocation7 + $0x18] sm:$0xff] }
 0x212   :  { %v422_v14 = vld [vmem:[#allocation28 + $0x20] sm:$0xff]  ;;  %v546_v15 = vadd.f32 %v514_v7, %v450_v3  ;;  %v547_v16 = vadd.f32 %v515_v8, %v451_v4  ;;  %v516_v17 = vmul.f32 0.004, %v3484_v10  ;;  %v517_v18 = vmul.f32 0.004, %v3486_v13  ;;  %v423_v19 = vld [vmem:[#allocation28 + $0x28] sm:$0xff] }
 0x213   :  { %v3490_v20 = vld [vmem:[#allocation7 + $0x20] sm:$0xff]  ;;  %v454_v22 = vmul.f32 0.996, %v422_v14  ;;  %v455_v23 = vmul.f32 0.996, %v423_v19  ;;  %v3492_v24 = vld [vmem:[#allocation7 + $0x28] sm:$0xff]  ;;  %v1068_v42 = vpack.c.bf16 %v3486_v13, %v3484_v10 }
 0x214   :  { %v424_v25 = vld [vmem:[#allocation28 + $0x30] sm:$0xff]  ;;  %578 = vst [vmem:[#allocation41] sm:$0xff] %v546_v15  ;;  %579 = vst [vmem:[#allocation41 + $0x8] sm:$0xff] %v547_v16  ;;  %v1067_v26 = vpack.c.bf16 %v547_v16, %v546_v15  ;;  %v548_v27 = vadd.f32 %v516_v17, %v452_v11  ;;  %v549_v28 = vadd.f32 %v517_v18, %v453_v12  ;;  %v518_v29 = vmul.f32 0.004, %v3490_v20  ;;  %v425_v30 = vld [vmem:[#allocation28 + $0x38] sm:$0xff] }
 0x215   :  { %v3495_v31 = vld [vmem:[#allocation7 + $0x30] sm:$0xff]  ;;  %v3497_v32 = vld [vmem:[#allocation7 + $0x38] sm:$0xff]  ;;  %v519_v33 = vmul.f32 0.004, %v3492_v24  ;;  %v456_v34 = vmul.f32 0.996, %v424_v25  ;;  %v1070_v1 = vpack.c.bf16 %v3492_v24, %v3490_v20 }
 0x216   :  { %v457_v35 = vmul.f32 0.996, %v425_v30  ;;  %1098 = vmatprep.subr.bf16.mxu0 %v1067_v26  ;;  %580 = vst [vmem:[#allocation41 + $0x10] sm:$0xff] %v548_v27  ;;  %581 = vst [vmem:[#allocation41 + $0x18] sm:$0xff] %v549_v28  ;;  %v1069_v36 = vpack.c.bf16 %v549_v28, %v548_v27  ;;  %v550_v37 = vadd.f32 %v518_v29, %v454_v22  ;;  %v520_v38 = vmul.f32 0.004, %v3495_v31 }
 0x217   :  { %v521_v39 = vmul.f32 0.004, %v3497_v32  ;;  %v426_v40 = vld [vmem:[#allocation28 + $0x40] sm:$0xff]  ;;  %v427_v41 = vld [vmem:[#allocation28 + $0x48] sm:$0xff]  ;;  %1099 = vmatpush1.bf16.msra.mxu0 %v1066_v21  ;;  %v551_v43 = vadd.f32 %v519_v33, %v455_v23  ;;  %v3506_v47 = vld [vmem:[#allocation7 + $0x48] sm:$0xff]  ;;  %v1072_v20 = vpack.c.bf16 %v3497_v32, %v3495_v31  ;;  %s1984_s21 = sshll.u32 %s3171_s16, 4  ;;  %s1985_s21 = int_to_ptr.vmem [resolvable:$true] %s1984_s21 }
 0x218   :  { %v458_v44 = vmul.f32 0.996, %v426_v40  ;;  %v459_v45 = vmul.f32 0.996, %v427_v41  ;;  %v3504_v46 = vld [vmem:[#allocation7 + $0x40] sm:$0xff]  ;;  %1100 = vmatprep.subr.bf16.mxu0 %v1069_v36  ;;  %582 = vst [vmem:[#allocation41 + $0x20] sm:$0xff] %v550_v37  ;;  %v552_v48 = vadd.f32 %v520_v38, %v456_v34  ;;  %p2879_p11 = scmp.lt.s32.totalorder %s1985_s21, %s1985_s21 }
 0x219   :  { %v553_v49 = vadd.f32 %v521_v39, %v457_v35  ;;  %v522_v50 = vmul.f32 0.004, %v3504_v46  ;;  %v523_v51 = vmul.f32 0.004, %v3506_v47  ;;  %v428_v52 = vld [vmem:[#allocation28 + $0x50] sm:$0xff]  ;;  %v429_v53 = vld [vmem:[#allocation28 + $0x58] sm:$0xff]  ;;  %v1071_v54 = vpack.c.bf16 %v551_v43, %v550_v37 }
 0x21a   :  { %583 = vst [vmem:[#allocation41 + $0x28] sm:$0xff] %v551_v43  ;;  %v460_v55 = vmul.f32 0.996, %v428_v52  ;;  %v461_v56 = vmul.f32 0.996, %v429_v53  ;;  %v3510_v57 = vld [vmem:[#allocation7 + $0x50] sm:$0xff]  ;;  %v1074_v36 = vpack.c.bf16 %v3506_v47, %v3504_v46 }
 0x21b   :  { %v3512_v58 = vld [vmem:[#allocation7 + $0x58] sm:$0xff]  ;;  %584 = vst [vmem:[#allocation41 + $0x30] sm:$0xff] %v552_v48  ;;  %585 = vst [vmem:[#allocation41 + $0x38] sm:$0xff] %v553_v49  ;;  %v3514_v59 = vadd.f32 %v522_v50, %v458_v44  ;;  %v3516_v60 = vadd.f32 %v523_v51, %v459_v45  ;;  %v524_v61 = vmul.f32 0.004, %v3510_v57  ;;  %v3519_v0 = vld [vmem:[#allocation7 + $0x60] sm:$0xff]  ;;  %1101 = vmatpush1.bf16.msra.mxu0 %v1068_v42 }
 0x21c   :  { %v430_v62 = vld [vmem:[#allocation28 + $0x60] sm:$0xff]  ;;  %v431_v63 = vld [vmem:[#allocation28 + $0x68] sm:$0xff]  ;;  %v525_v2 = vmul.f32 0.004, %v3512_v58  ;;  %1102 = vmatprep.subr.bf16.mxu0 %v1071_v54  ;;  %v1073_v5 = vpack.c.bf16 %v553_v49, %v552_v48  ;;  %v3528_v7 = vld [vmem:[#allocation7 + $0x68] sm:$0xff]  ;;  %s3172_s18 = smov [#allocation44]  }
 0x21d   :  { %v462_v3 = vmul.f32 0.996, %v430_v62  ;;  %v463_v4 = vmul.f32 0.996, %v431_v63  ;;  %586 = vst [vmem:[#allocation41 + $0x40] sm:$0xff] %v3514_v59  ;;  %587 = vst [vmem:[#allocation41 + $0x48] sm:$0xff] %v3516_v60  ;;  %v3526_v6 = vadd.f32 %v524_v61, %v460_v55  ;;  %v1075_v21 = vpack.c.bf16 %v3516_v60, %v3514_v59 }
 0x21e   :  { %v526_v8 = vmul.f32 0.004, %v3519_v0  ;;  %v432_v9 = vld [vmem:[#allocation28 + $0x70] sm:$0xff]  ;;  %v433_v10 = vld [vmem:[#allocation28 + $0x78] sm:$0xff]  ;;  %v3531_v11 = vadd.f32 %v525_v2, %v461_v56  ;;  %v527_v12 = vmul.f32 0.004, %v3528_v7  ;;  %v1076_v63 = vpack.c.bf16 %v3512_v58, %v3510_v57 }
 0x21f   :  { %v464_v13 = vmul.f32 0.996, %v432_v9  ;;  %v3534_v14 = vld [vmem:[#allocation7 + $0x70] sm:$0xff]  ;;  %v3536_v15 = vld [vmem:[#allocation7 + $0x78] sm:$0xff]  ;;  %588 = vst [vmem:[#allocation41 + $0x50] sm:$0xff] %v3526_v6  ;;  %1103 = vmatpush1.bf16.msra.mxu0 %v1070_v1  ;;  %v3550_v25 = vld [vmem:[#allocation7 + $0x80] sm:$0xff] }
 0x220   :  { %v3539_v16 = vadd.f32 %v526_v8, %v462_v3  ;;  %v465_v17 = vmul.f32 0.996, %v433_v10  ;;  %v528_v18 = vmul.f32 0.004, %v3534_v14  ;;  %v529_v19 = vmul.f32 0.004, %v3536_v15  ;;  %1104 = vmatprep.subr.bf16.mxu0 %v1073_v5 }
 0x221   :  { %589 = vst [vmem:[#allocation41 + $0x58] sm:$0xff] %v3531_v11  ;;  %v3548_v22 = vadd.f32 %v527_v12, %v463_v4  ;;  %v434_v23 = vld [vmem:[#allocation28 + $0x80] sm:$0xff]  ;;  %v435_v24 = vld [vmem:[#allocation28 + $0x88] sm:$0xff]  ;;  %v3557_v30 = vld [vmem:[#allocation7 + $0x88] sm:$0xff]  ;;  %v530_v32 = vmul.f32 0.004, %v3550_v25  ;;  %v1077_v47 = vpack.c.bf16 %v3531_v11, %v3526_v6 }
 0x222   :  { %590 = vst [vmem:[#allocation41 + $0x60] sm:$0xff] %v3539_v16  ;;  %v3553_v26 = vadd.f32 %v528_v18, %v464_v13  ;;  %v3555_v27 = vadd.f32 %v529_v19, %v465_v17  ;;  %v466_v28 = vmul.f32 0.996, %v434_v23  ;;  %v467_v29 = vmul.f32 0.996, %v435_v24  ;;  %v436_v31 = vld [vmem:[#allocation28 + $0x90] sm:$0xff] }
 0x223   :  { %591 = vst [vmem:[#allocation41 + $0x68] sm:$0xff] %v3548_v22  ;;  %v531_v33 = vmul.f32 0.004, %v3557_v30  ;;  %v437_v34 = vld [vmem:[#allocation28 + $0x98] sm:$0xff]  ;;  %v468_v37 = vmul.f32 0.996, %v436_v31  ;;  %1105 = vmatpush1.bf16.msra.mxu0 %v1072_v20  ;;  %v1079_v6 = vpack.c.bf16 %v3548_v22, %v3539_v16  ;;  %v1078_v23 = vpack.c.bf16 %v3528_v7, %v3519_v0 }
 0x224   :  { %v3562_v35 = vld [vmem:[#allocation7 + $0x90] sm:$0xff]  ;;  %592 = vst [vmem:[#allocation41 + $0x70] sm:$0xff] %v3553_v26  ;;  %593 = vst [vmem:[#allocation41 + $0x78] sm:$0xff] %v3555_v27  ;;  %v469_v38 = vmul.f32 0.996, %v437_v34  ;;  %v3568_v39 = vld [vmem:[#allocation7 + $0x98] sm:$0xff]  ;;  %v3570_v41 = vadd.f32 %v530_v32, %v466_v28  ;;  %1106 = vmatprep.subr.bf16.mxu0 %v1075_v21  ;;  %v1081_v34 = vpack.c.bf16 %v3555_v27, %v3553_v26 }
 0x225   :  { %v438_v40 = vld [vmem:[#allocation28 + $0xa0] sm:$0xff]  ;;  %v3572_v42 = vadd.f32 %v531_v33, %v467_v29  ;;  %v532_v43 = vmul.f32 0.004, %v3562_v35  ;;  %v533_v44 = vmul.f32 0.004, %v3568_v39  ;;  %v439_v45 = vld [vmem:[#allocation28 + $0xa8] sm:$0xff] }
 0x226   :  { %v3576_v46 = vld [vmem:[#allocation7 + $0xa0] sm:$0xff]  ;;  %v470_v48 = vmul.f32 0.996, %v438_v40  ;;  %v471_v49 = vmul.f32 0.996, %v439_v45  ;;  %v3580_v50 = vld [vmem:[#allocation7 + $0xa8] sm:$0xff]  ;;  %v1080_v45 = vpack.c.bf16 %v3536_v15, %v3534_v14 }
 0x227   :  { %v440_v51 = vld [vmem:[#allocation28 + $0xb0] sm:$0xff]  ;;  %594 = vst [vmem:[#allocation41 + $0x80] sm:$0xff] %v3570_v41  ;;  %595 = vst [vmem:[#allocation41 + $0x88] sm:$0xff] %v3572_v42  ;;  %v3584_v52 = vadd.f32 %v532_v43, %v468_v37  ;;  %v3586_v53 = vadd.f32 %v533_v44, %v469_v38  ;;  %v534_v54 = vmul.f32 0.004, %v3576_v46  ;;  %v441_v55 = vld [vmem:[#allocation28 + $0xb8] sm:$0xff]  ;;  %1107 = vmatpush1.bf16.msra.mxu0 %v1074_v36 }
 0x228   :  { %v3589_v56 = vld [vmem:[#allocation7 + $0xb0] sm:$0xff]  ;;  %v3591_v59 = vld [vmem:[#allocation7 + $0xb8] sm:$0xff]  ;;  %v535_v60 = vmul.f32 0.004, %v3580_v50  ;;  %v472_v61 = vmul.f32 0.996, %v440_v51  ;;  %1108 = vmatprep.subr.bf16.mxu0 %v1077_v47  ;;  %v1083_v14 = vpack.c.bf16 %v3572_v42, %v3570_v41 }
 0x229   :  { %v473_v62 = vmul.f32 0.996, %v441_v55  ;;  %596 = vst [vmem:[#allocation41 + $0x90] sm:$0xff] %v3584_v52  ;;  %597 = vst [vmem:[#allocation41 + $0x98] sm:$0xff] %v3586_v53  ;;  %v3598_v1 = vadd.f32 %v534_v54, %v470_v48  ;;  %v536_v2 = vmul.f32 0.004, %v3589_v56 }
 0x22a   :  { %v537_v3 = vmul.f32 0.004, %v3591_v59  ;;  %v442_v4 = vld [vmem:[#allocation28 + $0xc0] sm:$0xff]  ;;  %v443_v5 = vld [vmem:[#allocation28 + $0xc8] sm:$0xff]  ;;  %v3604_v8 = vadd.f32 %v535_v60, %v471_v49  ;;  %v3608_v10 = vld [vmem:[#allocation7 + $0xc8] sm:$0xff]  ;;  %s2006_s4 = sshll.u32 %s3172_s18, 4  ;;  %s4206_s4 = int_to_ptr.vmem [resolvable:$true] %s2006_s4 }
 0x22b   :  { %v474_v9 = vmul.f32 0.996, %v442_v4  ;;  %v475_v57 = vmul.f32 0.996, %v443_v5  ;;  %v3606_v58 = vld [vmem:[#allocation7 + $0xc0] sm:$0xff]  ;;  %598 = vst [vmem:[#allocation41 + $0xa0] sm:$0xff] %v3598_v1  ;;  %v3611_v11 = vadd.f32 %v536_v2, %v472_v61  ;;  %1109 = vmatpush1.bf16.msra.mxu0 %v1076_v63 }
 0x22c   :  { %v3613_v12 = vadd.f32 %v537_v3, %v473_v62  ;;  %v538_v13 = vmul.f32 0.004, %v3606_v58  ;;  %v539_v17 = vmul.f32 0.004, %v3608_v10  ;;  %v444_v18 = vld [vmem:[#allocation28 + $0xd0] sm:$0xff]  ;;  %v445_v16 = vld [vmem:[#allocation28 + $0xd8] sm:$0xff]  ;;  %1110 = vmatprep.subr.bf16.mxu0 %v1079_v6 }
 0x22d   :  { %599 = vst [vmem:[#allocation41 + $0xa8] sm:$0xff] %v3604_v8  ;;  %v476_v19 = vmul.f32 0.996, %v444_v18  ;;  %v477_v20 = vmul.f32 0.996, %v445_v16  ;;  %v3618_v21 = vld [vmem:[#allocation7 + $0xd0] sm:$0xff] }
 0x22e   :  { %v3620_v22 = vld [vmem:[#allocation7 + $0xd8] sm:$0xff]  ;;  %600 = vst [vmem:[#allocation41 + $0xb0] sm:$0xff] %v3611_v11  ;;  %601 = vst [vmem:[#allocation41 + $0xb8] sm:$0xff] %v3613_v12  ;;  %v3626_v24 = vadd.f32 %v538_v13, %v474_v9  ;;  %v3628_v28 = vadd.f32 %v539_v17, %v475_v57  ;;  %v540_v29 = vmul.f32 0.004, %v3618_v21  ;;  %v3631_v33 = vld [vmem:[#allocation7 + $0xe0] sm:$0xff]  ;;  %v1082_v57 = vpack.c.bf16 %v3557_v30, %v3550_v25 }
 0x22f   :  { %v446_v31 = vld [vmem:[#allocation28 + $0xe0] sm:$0xff]  ;;  %v447_v32 = vld [vmem:[#allocation28 + $0xe8] sm:$0xff]  ;;  %v541_v0 = vmul.f32 0.004, %v3620_v22  ;;  %v3640_v38 = vld [vmem:[#allocation7 + $0xe8] sm:$0xff]  ;;  %1111 = vmatpush1.bf16.msra.mxu0 %v1078_v23  ;;  %s2874_s9 = scalar_lea.vmem %s1985_s21, 4096 }
 0x230   :  { %v478_v7 = vmul.f32 0.996, %v446_v31  ;;  %v479_v36 = vmul.f32 0.996, %v447_v32  ;;  %602 = vst [vmem:[#allocation41 + $0xc0] sm:$0xff] %v3626_v24  ;;  %603 = vst [vmem:[#allocation41 + $0xc8] sm:$0xff] %v3628_v28  ;;  %v3638_v37 = vadd.f32 %v540_v29, %v476_v19  ;;  %1112 = vmatprep.subr.bf16.mxu0 %v1081_v34  ;;  %v1085_v19 = vpack.c.bf16 %v3586_v53, %v3584_v52  ;;  %p2875_p10 = scmp.ne.s32.totalorder %s1985_s21, %s2874_s9  ;;  %p2880_p12 = scmp.lt.s32.totalorder %s2874_s9, %s2874_s9 }
 0x231   :  { %v542_v40 = vmul.f32 0.004, %v3631_v33  ;;  %v448_v43 = vld [vmem:[#allocation28 + $0xf0] sm:$0xff]  ;;  %v449_v44 = vld [vmem:[#allocation28 + $0xf8] sm:$0xff]  ;;  %v3645_v26 = vadd.f32 %v541_v0, %v477_v20  ;;  %v543_v27 = vmul.f32 0.004, %v3640_v38  ;;  %v1084_v52 = vpack.c.bf16 %v3568_v39, %v3562_v35 }
 0x232   :  { %v480_v47 = vmul.f32 0.996, %v448_v43  ;;  %v3648_v48 = vld [vmem:[#allocation7 + $0xf0] sm:$0xff]  ;;  %v3650_v49 = vld [vmem:[#allocation7 + $0xf8] sm:$0xff]  ;;  %604 = vst [vmem:[#allocation41 + $0xd0] sm:$0xff] %v3638_v37  ;;  %v1029_v61 = vld [vmem:[#allocation2 + $0x8] sm:$0xff]  ;;  %v1087_v0 = vpack.c.bf16 %v3604_v8, %v3598_v1  ;;  %v1086_v35 = vpack.c.bf16 %v3580_v50, %v3576_v46  ;;  %v1089_v1 = vpack.c.bf16 %v3613_v12, %v3611_v11  ;;  %p2881_p13 = por %p2880_p12, %p2879_p11 }
 0x233   :  { %v3653_v51 = vadd.f32 %v542_v40, %v478_v7  ;;  %v481_v54 = vmul.f32 0.996, %v449_v44  ;;  %v544_v55 = vmul.f32 0.004, %v3648_v48  ;;  %v545_v60 = vmul.f32 0.004, %v3650_v49  ;;  %1113 = vmatpush1.bf16.msra.mxu0 %v1080_v45 }
 0x234   :  { %605 = vst [vmem:[#allocation41 + $0xd8] sm:$0xff] %v3645_v26  ;;  %v3660_v15 = vadd.f32 %v543_v27, %v479_v36  ;;  %v1031_v62 = vld [vmem:[#allocation5 + $0x8] sm:$0xff]  ;;  %v3667_v4 = vld [vmem:[#allocation10 + $0x8] sm:$0xff]  ;;  %v3674_v42 = vld [vmem:[#allocation10] sm:$0xff]  ;;  %1114 = vmatprep.subr.bf16.mxu0 %v1083_v14  ;;  %v1088_v46 = vpack.c.bf16 %v3591_v59, %v3589_v56  ;;  %v1091_v11 = vpack.c.bf16 %v3628_v28, %v3626_v24  ;;  %p2882_p0 = pnand %p2881_p13, %p2875_p10 }
 0x235   :  { %606 = vst [vmem:[#allocation41 + $0xe0] sm:$0xff] %v3653_v51  ;;  %v3663_v63 = vadd.f32 %v544_v55, %v480_v47  ;;  %v3665_v2 = vadd.f32 %v545_v60, %v481_v54  ;;  %v1033_v3 = vpack.c.bf16 %v1031_v62, %v1029_v61  ;;  %v3669_v5 = vld [vmem:[#allocation10 + $0x18] sm:$0xff]  ;;  %v3676_v6 = vld [vmem:[#allocation10 + $0x10] sm:$0xff]  ;;  %v3678_v9 = vld [vmem:[#allocation10 + $0x28] sm:$0xff]  ;;  %v1090_v56 = vpack.c.bf16 %v3608_v10, %v3606_v58 }
 0x236   :  { %607 = vst [vmem:[#allocation41 + $0xe8] sm:$0xff] %v3660_v15  ;;  %v1228_v41 = vpack.c.bf16 %v3669_v5, %v3667_v4  ;;  %v1227_v13 = vpack.c.bf16 %v3676_v6, %v3674_v42  ;;  %v3686_v17 = vld [vmem:[#allocation10 + $0x38] sm:$0xff]  ;;  %v3688_v18 = vld [vmem:[#allocation10 + $0x20] sm:$0xff]  ;;  %v3690_v16 = vld [vmem:[#allocation10 + $0x30] sm:$0xff]  ;;  %v1093_v24 = vpack.c.bf16 %v3645_v26, %v3638_v37  ;;  %v1092_v58 = vpack.c.bf16 %v3620_v22, %v3618_v21 }
 0x237   :  { %608 = vst [vmem:[#allocation41 + $0xf0] sm:$0xff] %v3663_v63  ;;  %609 = vst [vmem:[#allocation41 + $0xf8] sm:$0xff] %v3665_v2  ;;  %1130 = vmatprep.mubr.bf16.mxu0 %v1033_v3  ;;  %v1230_v25 = vpack.c.bf16 %v3686_v17, %v3678_v9  ;;  %v3696_v30 = vld [vmem:[#allocation10 + $0x48] sm:$0xff]  ;;  %v3698_v20 = vld [vmem:[#allocation10 + $0x58] sm:$0xff]  ;;  %v1229_v23 = vpack.c.bf16 %v3690_v16, %v3688_v18  ;;  %1115 = vmatpush1.bf16.msra.mxu0 %v1082_v57 }
 0x238   :  { %1254 = vmatprep.subr.bf16.mxu1 %v1228_v41  ;;  %v1232_v29 = vpack.c.bf16 %v3698_v20, %v3696_v30  ;;  %v3704_v31 = vld [vmem:[#allocation10 + $0x40] sm:$0xff]  ;;  %v3706_v32 = vld [vmem:[#allocation10 + $0x50] sm:$0xff]  ;;  %v3710_v53 = vld [vmem:[#allocation10 + $0x68] sm:$0xff]  ;;  %1116 = vmatprep.subr.bf16.mxu0 %v1085_v19  ;;  %v1095_v10 = vpack.c.bf16 %v3660_v15, %v3653_v51  ;;  %v1094_v37 = vpack.c.bf16 %v3640_v38, %v3631_v33 }
 0x239   :  { %1255 = vmatpush1.bf16.msra.mxu1 %v1227_v13  ;;  %v3712_v34 = vld [vmem:[#allocation10 + $0x78] sm:$0xff]  ;;  %v1231_v7 = vpack.c.bf16 %v3706_v32, %v3704_v31  ;;  %v3720_v40 = vld [vmem:[#allocation10 + $0x60] sm:$0xff]  ;;  %v3722_v43 = vld [vmem:[#allocation10 + $0x70] sm:$0xff]  ;;  %v1097_v26 = vpack.c.bf16 %v3665_v2, %v3663_v63  ;;  %v1096_v3 = vpack.c.bf16 %v3650_v49, %v3648_v48 }
 0x23a   :  { %1256 = vmatprep.subr.bf16.mxu1 %v1230_v25  ;;  %v1234_v36 = vpack.c.bf16 %v3712_v34, %v3710_v53  ;;  %v3726_v39 = vld [vmem:[#allocation10 + $0x88] sm:$0xff]  ;;  %v3728_v44 = vld [vmem:[#allocation10 + $0x98] sm:$0xff]  ;;  %v1233_v8 = vpack.c.bf16 %v3722_v43, %v3720_v40  ;;  %v3736_v27 = vld [vmem:[#allocation10 + $0x80] sm:$0xff] }
 0x23b   :  { %1117 = vmatpush1.bf16.msra.mxu0 %v1084_v52  ;;  %v1236_v45 = vpack.c.bf16 %v3728_v44, %v3726_v39  ;;  %v3738_v47 = vld [vmem:[#allocation10 + $0x90] sm:$0xff]  ;;  %v3742_v50 = vld [vmem:[#allocation10 + $0xa8] sm:$0xff]  ;;  %v3744_v54 = vld [vmem:[#allocation10 + $0xb8] sm:$0xff]  ;;  %v4282_v52 = vmov 0  }
 0x23c   :  { %1118 = vmatprep.subr.bf16.mxu0 %v1087_v0  ;;  %v1235_v12 = vpack.c.bf16 %v3738_v47, %v3736_v27  ;;  %v1238_v55 = vpack.c.bf16 %v3744_v54, %v3742_v50  ;;  %v3752_v60 = vld [vmem:[#allocation10 + $0xa0] sm:$0xff]  ;;  %v3754_v14 = vld [vmem:[#allocation10 + $0xb0] sm:$0xff]  ;;  %v3758_v59 = vld [vmem:[#allocation10 + $0xc8] sm:$0xff]  ;;  %1286 = vmatprep.mubr.bf16.mxu1 %v4282_v52  ;;  %v4281_v0 = vlaneseq }
 0x23d   :  { %1257 = vmatpush1.bf16.msra.mxu1 %v1229_v23  ;;  %v3760_v61 = vld [vmem:[#allocation10 + $0xd8] sm:$0xff]  ;;  %v1237_v28 = vpack.c.bf16 %v3754_v14, %v3752_v60  ;;  %v1030_v21 = vld [vmem:[#allocation5] sm:$0xff]  ;;  %v3778_v19 = vld [vmem:[#allocation10 + $0xc0] sm:$0xff] }
 0x23e   :  { %1258 = vmatprep.subr.bf16.mxu1 %v1232_v29  ;;  %v1240_v62 = vpack.c.bf16 %v3760_v61, %v3758_v59  ;;  %v1028_v41 = vld [vmem:[#allocation2] sm:$0xff]  ;;  %v610_v51 = vld [vmem:[#allocation29] sm:$0x1]  ;;  %v3784_v48 = vld [vmem:[#allocation10 + $0xe8] sm:$0xff] }
 0x23f   :  { %1119 = vmatpush1.bf16.msra.mxu0 %v1086_v35  ;;  %v1032_v22 = vpack.c.bf16 %v1030_v21, %v1028_v41  ;;  %v612_v15 = vld [vmem:[#allocation8] sm:$0x1]  ;;  %v611_v57 = vmul.f32 0.996, %v610_v51  ;;  %v3780_v33 = vld [vmem:[#allocation10 + $0xd0] sm:$0xff]  ;;  %v3790_v25 = vld [vmem:[#allocation10 + $0xe0] sm:$0xff] }
 0x240   :  { %1120 = vmatprep.subr.bf16.mxu0 %v1089_v1  ;;  %v613_v13 = vmul.f32 0.004, %v612_v15  ;;  %v1239_v38 = vpack.c.bf16 %v3780_v33, %v3778_v19  ;;  %v3786_v49 = vld [vmem:[#allocation10 + $0xf8] sm:$0xff]  ;;  %v3792_v23 = vld [vmem:[#allocation10 + $0xf0] sm:$0xff] }
 0x241   :  { %1259 = vmatpush1.bf16.msra.mxu1 %v1231_v7  ;;  %v1242_v2 = vpack.c.bf16 %v3786_v49, %v3784_v48  ;;  %4313 = vst [vmem:[#allocation86_spill] sm:$0xff] %v3792_v23  ;;  %v1241_v29 = vpack.c.bf16 %v3792_v23, %v3790_v25  ;;  %v3798_v7 = vshrl.u32 %v4281_v0, 7  ;;  %v1211_v21 = vld [vmem:[#allocation16 + $0x90] sm:$0xff] }
 0x242   :  { %1260 = vmatprep.subr.bf16.mxu1 %v1234_v36  ;;  %v614_v63 = vadd.f32 %v613_v13, %v611_v57  ;;  %v1195_v15 = vld [vmem:[#allocation16 + $0x10] sm:$0xff]  ;;  %v1196_v57 = vld [vmem:[#allocation16 + $0x18] sm:$0xff] }
 0x243   :  { %1121 = vmatpush1.bf16.msra.mxu0 %v1088_v46  ;;  %v3801_v36 = vsub.s32 0, %v3798_v7  ;;  %v1411_v13 = vpack.c.bf16 %v1196_v57, %v1195_v15  ;;  %v1204_v15 = vld [vmem:[#allocation16 + $0x58] sm:$0xff] }
 0x244   :  { %1122 = vmatprep.subr.bf16.mxu0 %v1091_v11  ;;  %615 = vst [vmem:[#allocation43] sm:$0x1] %v614_v63 }
 0x245   :  { %1261 = vmatpush1.bf16.msra.mxu1 %v1233_v8  ;;  %v1154_v35 = vrot.slane %v614_v63, %v3801_v36  ;;  %v2142_v8 = vld [vmem:[#allocation8] ss:$0 sm:$0xff]  ;;  %v1214_v63 = vld [vmem:[#allocation16 + $0xa8] sm:$0xff] }
 0x246   :  { %1262 = vmatprep.subr.bf16.mxu1 %v1236_v45 }
 0x247   :  { %1123 = vmatpush1.bf16.msra.mxu0 %v1090_v56 }
 0x248   :  { %1124 = vmatprep.subr.bf16.mxu0 %v1093_v24 }
 0x249   :  { %1263 = vmatpush1.bf16.msra.mxu1 %v1235_v12 }
 0x24a   :  { %1264 = vmatprep.subr.bf16.mxu1 %v1238_v55 }
 0x24b   :  { %1125 = vmatpush1.bf16.msra.mxu0 %v1092_v58  ;;  %v1209_v58 = vld [vmem:[#allocation16 + $0x80] sm:$0xff] }
 0x24c   :  { %1126 = vmatprep.subr.bf16.mxu0 %v1095_v10  ;;  %v1210_v10 = vld [vmem:[#allocation16 + $0x88] sm:$0xff] }
 0x24d   :  { %1265 = vmatpush1.bf16.msra.mxu1 %v1237_v28 }
 0x24e   :  { %1266 = vmatprep.subr.bf16.mxu1 %v1240_v62 }
 0x24f   :  { %1127 = vmatpush1.bf16.msra.mxu0 %v1094_v37  ;;  %v1418_v37 = vpack.c.bf16 %v1210_v10, %v1209_v58  ;;  %v1218_v58 = vld [vmem:[#allocation16 + $0xc8] sm:$0xff] }
 0x250   :  { %1128 = vmatprep.subr.bf16.mxu0 %v1097_v26  ;;  %v1193_v26 = vld [vmem:[#allocation16] sm:$0xff] }
 0x251   :  { %1267 = vmatpush1.bf16.msra.mxu1 %v1239_v38  ;;  %v1213_v38 = vld [vmem:[#allocation16 + $0xa0] sm:$0xff] }
 0x252   :  { %1268 = vmatprep.subr.bf16.mxu1 %v1242_v2  ;;  %v1420_v2 = vpack.c.bf16 %v1214_v63, %v1213_v38  ;;  %v1222_v38 = vld [vmem:[#allocation16 + $0xe8] sm:$0xff] }
 0x253   :  { %1129 = vmatpush1.bf16.msra.mxu0 %v1096_v3  ;;  %v1194_v3 = vld [vmem:[#allocation16 + $0x8] sm:$0xff] }
 0x254   :  { %v1410_v41 = vpack.c.bf16 %v1194_v3, %v1193_v26  ;;  %v1202_v26 = vld [vmem:[#allocation16 + $0x48] sm:$0xff] }
 0x255   :  { %1269 = vmatpush1.bf16.msra.mxu1 %v1241_v29  ;;  %v1197_v29 = vld [vmem:[#allocation16 + $0x20] sm:$0xff] }
 0x256   :  { %1131 = vmatmul.mubr.bf16.vlgmr.msra.gmra.mrb[0].mxu0 %v1032_v22  ;;  %2148 = vmatprep.subr.bf16.mxu1 %v1418_v37  ;;  %v1212_v22 = vld [vmem:[#allocation16 + $0x98] sm:$0xff]  ;;  %v1201_v37 = vld [vmem:[#allocation16 + $0x40] sm:$0xff] }
 0x257   :  { %v1419_v51 = vpack.c.bf16 %v1212_v22, %v1211_v21  ;;  %v1414_v3 = vpack.c.bf16 %v1202_v26, %v1201_v37  ;;  %v1220_v21 = vld [vmem:[#allocation16 + $0xd8] sm:$0xff] }
 0x258   :  { %v1476_v26 = vld [vmem:[#allocation19 + $0x18] sm:$0xff] }
 0x329   :  { %v1132_v1 = vpop.f32.mrb[0].mxu0 }
 0x32a   :  { %v1134_v45 = vpop.f32.mrb[1].mxu0  ;;  %v1148_v12 = vadd.f32 %v2142_v8, %v1132_v1 }
 0x32b   :  { %v3804_v46 = vadd.f32 %v1154_v35, %v1134_v45  ;;  %v1136_v11 = vpop.f32.mrb[2].mxu0  ;;  %v1216_v45 = vld [vmem:[#allocation16 + $0xb8] sm:$0xff] }
 0x32c   :  { %v1149_v55 = vadd.f32 %v2142_v8, %v1136_v11  ;;  %v1138_v56 = vpop.f32.mrb[3].mxu0  ;;  %v1215_v8 = vld [vmem:[#allocation16 + $0xb0] sm:$0xff] }
 0x32d   :  { %4314 = vst [vmem:[#allocation87_spill] sm:$0xff] %v3804_v46  ;;  %v3806_v24 = vadd.f32 %v1154_v35, %v1138_v56  ;;  %v1198_v35 = vld [vmem:[#allocation16 + $0x28] sm:$0xff]  ;;  %v1421_v11 = vpack.c.bf16 %v1216_v45, %v1215_v8  ;;  %v1224_v8 = vld [vmem:[#allocation16 + $0xf8] sm:$0xff]  ;;  %v1207_v45 = vld [vmem:[#allocation16 + $0x70] sm:$0xff] }
 0x32e   :  { %v1226_v28 = vpack.c.bf16 %v1149_v55, %v1148_v12  ;;  %v1412_v1 = vpack.c.bf16 %v1198_v35, %v1197_v29  ;;  %v1199_v12 = vld [vmem:[#allocation16 + $0x30] sm:$0xff]  ;;  %v1200_v55 = vld [vmem:[#allocation16 + $0x38] sm:$0xff]  ;;  %v1206_v29 = vld [vmem:[#allocation16 + $0x68] sm:$0xff] }
 0x32f   :  { %4315 = vst [vmem:[#allocation88_spill] sm:$0xff] %v3806_v24  ;;  %v1413_v56 = vpack.c.bf16 %v1200_v55, %v1199_v12  ;;  %v1223_v35 = vld [vmem:[#allocation16 + $0xf0] sm:$0xff] }
 0x330   :  { %1287 = vmatmul.mubr.bf16.vlgmr.msra.gmra.mrb[0].mxu1 %v1226_v28  ;;  %v1217_v28 = vld [vmem:[#allocation16 + $0xc0] sm:$0xff]  ;;  %v1425_v12 = vpack.c.bf16 %v1224_v8, %v1223_v35  ;;  %v3819_v8 = vsub.s32 1, %v3798_v7 }
 0x331   :  { %2149 = vmatpush3.bf16.msra.mxu1 %v1410_v41  ;;  %v1422_v10 = vpack.c.bf16 %v1218_v58, %v1217_v28  ;;  %v1219_v41 = vld [vmem:[#allocation16 + $0xd0] sm:$0xff] }
 0x332   :  { %2150 = vmatprep.subr.bf16.mxu1 %v1419_v51  ;;  %v1423_v22 = vpack.c.bf16 %v1220_v21, %v1219_v41  ;;  %v1203_v51 = vld [vmem:[#allocation16 + $0x50] sm:$0xff]  ;;  %v1477_v41 = vld [vmem:[#allocation19 + $0x20] sm:$0xff] }
 0x333   :  { %v1415_v57 = vpack.c.bf16 %v1204_v15, %v1203_v51  ;;  %v1474_v28 = vld [vmem:[#allocation19 + $0x8] sm:$0xff]  ;;  %v1475_v58 = vld [vmem:[#allocation19 + $0x10] sm:$0xff]  ;;  %v1480_v15 = vld [vmem:[#allocation19 + $0x38] sm:$0xff] }
 0x334   :  { %v1478_v21 = vld [vmem:[#allocation19 + $0x28] sm:$0xff]  ;;  %v1479_v51 = vld [vmem:[#allocation19 + $0x30] sm:$0xff] }
 0x335   :  { %2151 = vmatpush3.bf16.msra.mxu1 %v1411_v13  ;;  %v1221_v13 = vld [vmem:[#allocation16 + $0xe0] sm:$0xff] }
 0x336   :  { %2152 = vmatprep.subr.bf16.mxu1 %v1420_v2  ;;  %v1424_v63 = vpack.c.bf16 %v1222_v38, %v1221_v13  ;;  %v1205_v2 = vld [vmem:[#allocation16 + $0x60] sm:$0xff]  ;;  %v1482_v38 = vld [vmem:[#allocation19 + $0x48] sm:$0xff] }
 0x337   :  { %v1481_v13 = vld [vmem:[#allocation19 + $0x40] sm:$0xff] }
 0x339   :  { %2153 = vmatpush3.bf16.msra.mxu1 %v1412_v1  ;;  %v1416_v1 = vpack.c.bf16 %v1206_v29, %v1205_v2  ;;  %v1483_v2 = vld [vmem:[#allocation19 + $0x50] sm:$0xff]  ;;  %v1484_v29 = vld [vmem:[#allocation19 + $0x58] sm:$0xff] }
 0x33a   :  { %2154 = vmatprep.subr.bf16.mxu1 %v1421_v11  ;;  %v1208_v11 = vld [vmem:[#allocation16 + $0x78] sm:$0xff]  ;;  %v1515_v35 = vpack.c.bf16 %v1484_v29, %v1483_v2 }
 0x33b   :  { %v1417_v55 = vpack.c.bf16 %v1208_v11, %v1207_v45 }
 0x33d   :  { %2155 = vmatpush3.bf16.msra.mxu1 %v1413_v56  ;;  %v1473_v56 = vld [vmem:[#allocation19] sm:$0xff] }
 0x33e   :  { %2156 = vmatprep.subr.bf16.mxu1 %v1422_v10  ;;  %v4283_v10 = vmov 0.0   ;;  %v1510_v37 = vpack.c.bf16 %v1474_v28, %v1473_v56 }
 0x33f   :  { %2210 = vmatprep.subr.bf16.mxu0 %v4283_v10 }
 0x340   :  { %2211 = vmatpush3.bf16.msra.mxu0 %v1510_v37 }
 0x341   :  { %2157 = vmatpush3.bf16.msra.mxu1 %v1414_v3  ;;  %v1511_v3 = vpack.c.bf16 %v1476_v26, %v1475_v58  ;;  %2212 = vmatprep.subr.bf16.mxu0 %v4283_v10 }
 0x342   :  { %2158 = vmatprep.subr.bf16.mxu1 %v1423_v22  ;;  %v1512_v22 = vpack.c.bf16 %v1478_v21, %v1477_v41 }
 0x344   :  { %2213 = vmatpush3.bf16.msra.mxu0 %v1511_v3 }
 0x345   :  { %2159 = vmatpush3.bf16.msra.mxu1 %v1415_v57  ;;  %2214 = vmatprep.subr.bf16.mxu0 %v4283_v10  ;;  %v1513_v57 = vpack.c.bf16 %v1480_v15, %v1479_v51 }
 0x346   :  { %2160 = vmatprep.subr.bf16.mxu1 %v1424_v63  ;;  %v1514_v63 = vpack.c.bf16 %v1482_v38, %v1481_v13 }
 0x348   :  { %2215 = vmatpush3.bf16.msra.mxu0 %v1512_v22 }
 0x349   :  { %2161 = vmatpush3.bf16.msra.mxu1 %v1416_v1  ;;  %2216 = vmatprep.subr.bf16.mxu0 %v4283_v10  ;;  %v1190_v1 = vld [vmem:[#allocation11] sm:$0x3] }
 0x34a   :  { %2162 = vmatprep.subr.bf16.mxu1 %v1425_v12  ;;  %v1247_v45 = vrot.slane %v1190_v1, %v3801_v36  ;;  %v1251_v11 = vrot.slane %v1190_v1, %v3819_v8 }
 0x34c   :  { %2217 = vmatpush3.bf16.msra.mxu0 %v1513_v57 }
 0x34d   :  { %2163 = vmatpush3.bf16.msra.mxu1 %v1417_v55  ;;  %2218 = vmatprep.subr.bf16.mxu0 %v4283_v10 }
 0x34e   :  { %2230 = vmatprep.subr.bf16.mxu1 %v4283_v10 }
 0x350   :  { %2219 = vmatpush3.bf16.msra.mxu0 %v1514_v63 }
 0x351   :  { %2220 = vmatprep.subr.bf16.mxu0 %v4283_v10 }
 0x354   :  { %2221 = vmatpush3.bf16.msra.mxu0 %v1515_v35 }
 0x355   :  { %2222 = vmatprep.subr.bf16.mxu0 %v4283_v10 }
 0x403   :  { %v1288_v12 = vpop.f32.mrb[0].mxu1 }
 0x404   :  { %v1289_v55 = vadd.f32 %v1288_v12, %v1247_v45  ;;  %v1290_v56 = vpop.f32.mrb[1].mxu1 }
 0x405   :  { %v1291_v28 = vadd.f32 %v1290_v56, %v1251_v11  ;;  %v1292_v58 = vpop.f32.mrb[2].mxu1 }
 0x406   :  { %v1297_v37 = vrot.slane %v1289_v55, 4  ;;  %v1293_v26 = vadd.f32 %v1292_v58, %v1247_v45  ;;  %v1294_v3 = vpop.f32.mrb[3].mxu1 }
 0x407   :  { %v1303_v41 = vrot.slane %v1291_v28, 4  ;;  %v1295_v21 = vadd.f32 %v1294_v3, %v1251_v11 }
 0x408   :  { %v1298_v22 = vadd.f32 %v1297_v37, %v1289_v55  ;;  %v1364_v51 = vrot.slane %v1293_v26, 4 }
 0x409   :  { %v1304_v15 = vadd.f32 %v1303_v41, %v1291_v28  ;;  %v1370_v57 = vrot.slane %v1295_v21, 4 }
 0x40a   :  { %v1299_v7 = vrot.slane %v1298_v22, 2  ;;  %v1365_v13 = vadd.f32 %v1364_v51, %v1293_v26 }
 0x40b   :  { %v1305_v38 = vrot.slane %v1304_v15, 2  ;;  %v1371_v63 = vadd.f32 %v1370_v57, %v1295_v21 }
 0x40c   :  { %v1300_v2 = vadd.f32 %v1299_v7, %v1298_v22  ;;  %v1366_v29 = vrot.slane %v1365_v13, 2 }
 0x40d   :  { %v1306_v35 = vadd.f32 %v1305_v38, %v1304_v15  ;;  %v1372_v1 = vrot.slane %v1371_v63, 2 }
 0x40e   :  { %v1301_v12 = vrot.slane %v1300_v2, 1  ;;  %v1367_v56 = vadd.f32 %v1366_v29, %v1365_v13 }
 0x40f   :  { %v1307_v0 = vrot.slane %v1306_v35, 1  ;;  %v1373_v62 = vadd.f32 %v1372_v1, %v1371_v63 }
 0x410   :  { %v1302_v45 = vadd.f32 %v1301_v12, %v1300_v2  ;;  %v1368_v58 = vrot.slane %v1367_v56, 1 }
 0x411   :  { %v1308_v52 = vadd.f32 %v1307_v0, %v1306_v35  ;;  %v1374_v11 = vrot.slane %v1373_v62, 1 }
 0x412   :  { %v1310_v37 = vmul.f32 0.125, %v1302_v45  ;;  %v1369_v3 = vadd.f32 %v1368_v58, %v1367_v56 }
 0x413   :  { %v1311_v41 = vmul.f32 0.125, %v1308_v52  ;;  %v1375_v10 = vadd.f32 %v1374_v11, %v1373_v62 }
 0x414   :  { %v1312_v46 = vsub.f32 %v1289_v55, %v1310_v37  ;;  %v1376_v51 = vmul.f32 0.125, %v1369_v3 }
 0x415   :  { %v1313_v24 = vsub.f32 %v1291_v28, %v1311_v41  ;;  %v1377_v57 = vmul.f32 0.125, %v1375_v10 }
 0x416   :  { %v1314_v22 = vmul.f32 %v1312_v46, %v1312_v46  ;;  %v1378_v7 = vsub.f32 %v1293_v26, %v1376_v51 }
 0x417   :  { %v1315_v15 = vmul.f32 %v1313_v24, %v1313_v24  ;;  %v1379_v38 = vsub.f32 %v1295_v21, %v1377_v57 }
 0x418   :  { %v1316_v23 = vrot.slane %v1314_v22, 4  ;;  %v1380_v13 = vmul.f32 %v1378_v7, %v1378_v7 }
 0x419   :  { %v1322_v29 = vrot.slane %v1315_v15, 4  ;;  %v1381_v63 = vmul.f32 %v1379_v38, %v1379_v38 }
 0x41a   :  { %v1317_v2 = vadd.f32 %v1316_v23, %v1314_v22  ;;  %v1382_v1 = vrot.slane %v1380_v13, 4 }
 0x41b   :  { %v1323_v0 = vadd.f32 %v1322_v29, %v1315_v15  ;;  %v1388_v35 = vrot.slane %v1381_v63, 4 }
 0x41c   :  { %v1318_v12 = vrot.slane %v1317_v2, 2  ;;  %v1383_v56 = vadd.f32 %v1382_v1, %v1380_v13 }
 0x41d   :  { %v1324_v52 = vrot.slane %v1323_v0, 2  ;;  %v1389_v62 = vadd.f32 %v1388_v35, %v1381_v63  ;;  %v1191_v35 = vld [vmem:[#allocation13] sm:$0x3] }
 0x41e   :  { %v1319_v55 = vadd.f32 %v1318_v12, %v1317_v2  ;;  %v1384_v45 = vrot.slane %v1383_v56, 2  ;;  %v1192_v12 = vld [vmem:[#allocation14] sm:$0x3] }
 0x41f   :  { %v1325_v28 = vadd.f32 %v1324_v52, %v1323_v0  ;;  %v1390_v10 = vrot.slane %v1389_v62, 2 }
 0x420   :  { %v1320_v58 = vrot.slane %v1319_v55, 1  ;;  %v1385_v26 = vadd.f32 %v1384_v45, %v1383_v56  ;;  %v1340_v56 = vrot.slane %v1191_v35, %v3801_v36 }
 0x421   :  { %v1326_v11 = vrot.slane %v1325_v28, 1  ;;  %v1391_v21 = vadd.f32 %v1390_v10, %v1389_v62  ;;  %v1344_v62 = vrot.slane %v1191_v35, %v3819_v8  ;;  %v1486_v35 = vld [vmem:[#allocation19 + $0x68] sm:$0xff] }
 0x422   :  { %v1321_v37 = vadd.f32 %v1320_v58, %v1319_v55  ;;  %v1386_v3 = vrot.slane %v1385_v26, 1 }
 0x423   :  { %v1327_v41 = vadd.f32 %v1326_v11, %v1325_v28  ;;  %v1392_v51 = vrot.slane %v1391_v21, 1  ;;  %v1353_v28 = vrot.slane %v1192_v12, %v3801_v36 }
 0x424   :  { %v1328_v23 = vmul.f32 0.125, %v1321_v37  ;;  %v1387_v57 = vadd.f32 %v1386_v3, %v1385_v26  ;;  %v1357_v26 = vrot.slane %v1192_v12, %v3819_v8 }
 0x425   :  { %v1329_v22 = vmul.f32 0.125, %v1327_v41  ;;  %v1393_v15 = vadd.f32 %v1392_v51, %v1391_v21 }
 0x426   :  { %v1330_v29 = vadd.f32 1e-05, %v1328_v23  ;;  %v1394_v13 = vmul.f32 0.125, %v1387_v57 }
 0x427   :  { %v1331_v1 = vadd.f32 1e-05, %v1329_v22  ;;  %v1395_v63 = vmul.f32 0.125, %v1393_v15 }
 0x428   :  { %2322 = vrsqrt.f32 %v1330_v29  ;;  %v1396_v2 = vadd.f32 1e-05, %v1394_v13 }
 0x429   :  { %2324 = vrsqrt.f32 %v1331_v1  ;;  %v1397_v0 = vadd.f32 1e-05, %v1395_v63 }
 0x42a   :  { %2326 = vrsqrt.f32 %v1396_v2 }
 0x42b   :  { %2328 = vrsqrt.f32 %v1397_v0 }
 0x432   :  { %v2323_v52 = vpop.eup %2322 }
 0x433   :  { %v2325_v55 = vpop.eup %2324  ;;  %v1334_v45 = vmul.f32 %v2323_v52, %v1312_v46  ;;  %v1487_v52 = vld [vmem:[#allocation19 + $0x70] sm:$0xff] }
 0x434   :  { %v2327_v10 = vpop.eup %2326  ;;  %v1335_v58 = vmul.f32 %v2325_v55, %v1313_v24  ;;  %v1485_v24 = vld [vmem:[#allocation19 + $0x60] sm:$0xff] }
 0x435   :  { %v2329_v11 = vpop.eup %2328  ;;  %v1347_v21 = vmul.f32 %v1340_v56, %v1334_v45  ;;  %v1400_v37 = vmul.f32 %v2327_v10, %v1378_v7  ;;  %v1516_v12 = vpack.c.bf16 %v1486_v35, %v1485_v24  ;;  %v617_v7 = vld [vmem:[#allocation31 + $0x8] sm:$0xff]  ;;  %v713_v10 = vmul.f32 0.004, %v3667_v4 }
 0x436   :  { %v1401_v3 = vmul.f32 %v2329_v11, %v1379_v38  ;;  %v1348_v41 = vmul.f32 %v1344_v62, %v1335_v58  ;;  %v619_v38 = vld [vmem:[#allocation31 + $0x18] sm:$0xff]  ;;  %v649_v55 = vmul.f32 0.996, %v617_v7  ;;  %v715_v58 = vmul.f32 0.004, %v3669_v5  ;;  %v618_v11 = vld [vmem:[#allocation31 + $0x10] sm:$0xff] }
 0x437   :  { %v1402_v51 = vmul.f32 %v1400_v37, %v1340_v56  ;;  %v1360_v23 = vadd.f32 %v1353_v28, %v1347_v21  ;;  %2223 = vmatpush3.bf16.msra.mxu0 %v1516_v12  ;;  %v4316_v56 = vmov 0.0   ;;  %v651_v45 = vmul.f32 0.996, %v619_v38  ;;  %v625_v7 = vld [vmem:[#allocation31 + $0x48] sm:$0xff] }
 0x438   :  { %v1361_v57 = vadd.f32 %v1357_v26, %v1348_v41  ;;  %v1403_v22 = vmul.f32 %v1401_v3, %v1344_v62  ;;  %2224 = vmatprep.subr.bf16.mxu0 %v4316_v56  ;;  %v1488_v62 = vld [vmem:[#allocation19 + $0x78] sm:$0xff]  ;;  %v650_v37 = vmul.f32 0.996, %v618_v11  ;;  %v712_v3 = vmul.f32 0.004, %v3674_v42  ;;  %2226 = vmatprep.mubr.msk.bf16.mxu0 %vm3170_vm0, %v4316_v56 }
 0x439   :  { %v1404_v15 = vadd.f32 %v1402_v51, %v1353_v28  ;;  %v1362_v13 = vmax.f32 %v1360_v23, 0.0  ;;  %v1517_v28 = vpack.c.bf16 %v1488_v62, %v1487_v52  ;;  %v745_v41 = vadd.f32 %v713_v10, %v649_v55  ;;  %v626_v10 = vld [vmem:[#allocation31 + $0x50] sm:$0xff] }
 0x43a   :  { %v1405_v29 = vadd.f32 %v1403_v22, %v1357_v26  ;;  %v1363_v46 = vmax.f32 %v1361_v57, 0.0  ;;  %v616_v26 = vld [vmem:[#allocation31] sm:$0xff]  ;;  %v747_v51 = vadd.f32 %v715_v58, %v651_v45  ;;  %v714_v23 = vmul.f32 0.004, %v3676_v6  ;;  %v621_v22 = vld [vmem:[#allocation31 + $0x28] sm:$0xff] }
 0x43b   :  { %v1406_v1 = vmax.f32 %v1404_v15, 0.0  ;;  %v648_v21 = vmul.f32 0.996, %v616_v26  ;;  %2225 = vmatpush3.bf16.msra.mxu0 %v1517_v28  ;;  %v623_v15 = vld [vmem:[#allocation31 + $0x38] sm:$0xff]  ;;  %777 = vst [vmem:[#allocation44 + $0x8] sm:$0xff] %v745_v41 }
 0x43c   :  { %v1407_v63 = vmax.f32 %v1405_v29, 0.0  ;;  %779 = vst [vmem:[#allocation44 + $0x18] sm:$0xff] %v747_v51  ;;  %v1679_v4 = vpack.c.bf16 %v747_v51, %v745_v41  ;;  %v3834_v29 = vadd.f32 %v714_v23, %v650_v37  ;;  %v653_v5 = vmul.f32 0.996, %v621_v22  ;;  %v631_v41 = vld [vmem:[#allocation31 + $0x78] sm:$0xff] }
 0x43d   :  { %v1408_v2 = vpack.c.bf16 %v1406_v1, %v1362_v13  ;;  %v3832_v57 = vadd.f32 %v712_v3, %v648_v21  ;;  %v620_v13 = vld [vmem:[#allocation31 + $0x20] sm:$0xff]  ;;  %v622_v1 = vld [vmem:[#allocation31 + $0x30] sm:$0xff]  ;;  %v655_v42 = vmul.f32 0.996, %v623_v15  ;;  %v717_v6 = vmul.f32 0.004, %v3678_v9 }
 0x43e   :  { %v1409_v0 = vpack.c.bf16 %v1407_v63, %v1363_v46  ;;  %v719_v46 = vmul.f32 0.004, %v3686_v17  ;;  %1705 = vmatprep.subr.bf16.mxu0 %v1679_v4  ;;  %778 = vst [vmem:[#allocation44 + $0x10] sm:$0xff] %v3834_v29  ;;  %v716_v24 = vmul.f32 0.004, %v3688_v18  ;;  %v627_v17 = vld [vmem:[#allocation31 + $0x58] sm:$0xff] }
 0x43f   :  { %776 = vst [vmem:[#allocation44] sm:$0xff] %v3832_v57  ;;  %v1678_v63 = vpack.c.bf16 %v3834_v29, %v3832_v57  ;;  %v3845_v35 = vadd.f32 %v717_v6, %v653_v5  ;;  %v718_v9 = vmul.f32 0.004, %v3690_v16  ;;  %v657_v52 = vmul.f32 0.996, %v625_v7  ;;  %v624_v16 = vld [vmem:[#allocation31 + $0x40] sm:$0xff] }
 0x440   :  { %1464 = vmatprep.mubr.bf16.mxu1 %v1409_v0  ;;  %v654_v0 = vmul.f32 0.996, %v622_v1  ;;  %v3847_v12 = vadd.f32 %v719_v46, %v655_v42  ;;  %v659_v62 = vmul.f32 0.996, %v627_v17  ;;  %v721_v55 = vmul.f32 0.004, %v3696_v30 }
 0x441   :  { %1465 = vmatmul.mubr.bf16.vlgmr.msra.gmra.mrb[4].mxu1 %v1408_v2  ;;  %v652_v2 = vmul.f32 0.996, %v620_v13  ;;  %781 = vst [vmem:[#allocation44 + $0x28] sm:$0xff] %v3845_v35  ;;  %v723_v28 = vmul.f32 0.004, %v3698_v20  ;;  %v629_v20 = vld [vmem:[#allocation31 + $0x68] sm:$0xff] }
 0x442   :  { %2246 = vmatprep.mubr.msk.bf16.mxu1 %vm3170_vm0, %v4316_v56  ;;  %783 = vst [vmem:[#allocation44 + $0x38] sm:$0xff] %v3847_v12  ;;  %v1681_v18 = vpack.c.bf16 %v3847_v12, %v3845_v35  ;;  %v3857_v45 = vadd.f32 %v718_v9, %v654_v0  ;;  %v720_v58 = vmul.f32 0.004, %v3704_v31  ;;  %v3862_v26 = vadd.f32 %v721_v55, %v657_v52  ;;  %v628_v15 = vld [vmem:[#allocation31 + $0x60] sm:$0xff]  ;;  %v630_v4 = vld [vmem:[#allocation31 + $0x70] sm:$0xff]  ;;  %v635_v9 = vld [vmem:[#allocation31 + $0x98] sm:$0xff] }
 0x443   :  { %v3850_v38 = vadd.f32 %v716_v24, %v652_v2  ;;  %v656_v30 = vmul.f32 0.996, %v624_v16  ;;  %v658_v11 = vmul.f32 0.996, %v626_v10  ;;  %v722_v21 = vmul.f32 0.004, %v3706_v32 }
 0x444   :  { %782 = vst [vmem:[#allocation44 + $0x30] sm:$0xff] %v3857_v45  ;;  %v3868_v3 = vadd.f32 %v723_v28, %v659_v62  ;;  %785 = vst [vmem:[#allocation44 + $0x48] sm:$0xff] %v3862_v26  ;;  %v661_v23 = vmul.f32 0.996, %v629_v20  ;;  %v663_v22 = vmul.f32 0.996, %v631_v41 }
 0x445   :  { %780 = vst [vmem:[#allocation44 + $0x20] sm:$0xff] %v3850_v38  ;;  %v1680_v37 = vpack.c.bf16 %v3857_v45, %v3850_v38  ;;  %v3871_v31 = vadd.f32 %v720_v58, %v656_v30  ;;  %v3873_v51 = vadd.f32 %v722_v21, %v658_v11  ;;  %v725_v5 = vmul.f32 0.004, %v3710_v53  ;;  %v633_v53 = vld [vmem:[#allocation31 + $0x88] sm:$0xff]  ;;  %v632_v62 = vld [vmem:[#allocation31 + $0x80] sm:$0xff]  ;;  %v634_v55 = vld [vmem:[#allocation31 + $0x90] sm:$0xff] }
 0x446   :  { %787 = vst [vmem:[#allocation44 + $0x58] sm:$0xff] %v3868_v3  ;;  %v1683_v32 = vpack.c.bf16 %v3868_v3, %v3862_v26  ;;  %v727_v13 = vmul.f32 0.004, %v3712_v34  ;;  %v660_v1 = vmul.f32 0.996, %v628_v15  ;;  %v639_v41 = vld [vmem:[#allocation31 + $0xb8] sm:$0xff] }
 0x447   :  { %784 = vst [vmem:[#allocation44 + $0x40] sm:$0xff] %v3871_v31  ;;  %786 = vst [vmem:[#allocation44 + $0x50] sm:$0xff] %v3873_v51  ;;  %v1682_v42 = vpack.c.bf16 %v3873_v51, %v3871_v31  ;;  %v662_v6 = vmul.f32 0.996, %v630_v4  ;;  %v724_v46 = vmul.f32 0.004, %v3720_v40  ;;  %v3886_v0 = vadd.f32 %v725_v5, %v661_v23 }
 0x448   :  { %v726_v2 = vmul.f32 0.004, %v3722_v43  ;;  %v3888_v24 = vadd.f32 %v727_v13, %v663_v22  ;;  %v665_v17 = vmul.f32 0.996, %v633_v53  ;;  %v667_v52 = vmul.f32 0.996, %v635_v9 }
 0x449   :  { %v3890_v34 = vadd.f32 %v724_v46, %v660_v1  ;;  %789 = vst [vmem:[#allocation44 + $0x68] sm:$0xff] %v3886_v0  ;;  %v729_v43 = vmul.f32 0.004, %v3726_v39  ;;  %v731_v28 = vmul.f32 0.004, %v3728_v44  ;;  %v637_v39 = vld [vmem:[#allocation31 + $0xa8] sm:$0xff] }
 0x44a   :  { %v3892_v7 = vadd.f32 %v726_v2, %v662_v6  ;;  %791 = vst [vmem:[#allocation44 + $0x78] sm:$0xff] %v3888_v24  ;;  %v1685_v40 = vpack.c.bf16 %v3888_v24, %v3886_v0  ;;  %v664_v16 = vmul.f32 0.996, %v632_v62  ;;  %v666_v58 = vmul.f32 0.996, %v634_v55  ;;  %v636_v4 = vld [vmem:[#allocation31 + $0xa0] sm:$0xff] }
 0x44b   :  { %788 = vst [vmem:[#allocation44 + $0x60] sm:$0xff] %v3890_v34  ;;  %v728_v30 = vmul.f32 0.004, %v3736_v27  ;;  %v730_v11 = vmul.f32 0.004, %v3738_v47  ;;  %v3906_v21 = vadd.f32 %v729_v43, %v665_v17  ;;  %v3908_v20 = vadd.f32 %v731_v28, %v667_v52  ;;  %v638_v5 = vld [vmem:[#allocation31 + $0xb0] sm:$0xff] }
 0x44c   :  { %790 = vst [vmem:[#allocation44 + $0x70] sm:$0xff] %v3892_v7  ;;  %v1684_v10 = vpack.c.bf16 %v3892_v7, %v3890_v34  ;;  %v669_v22 = vmul.f32 0.996, %v637_v39  ;;  %v671_v15 = vmul.f32 0.996, %v639_v41  ;;  %v643_v52 = vld [vmem:[#allocation31 + $0xd8] sm:$0xff] }
 0x44d   :  { %v3910_v44 = vadd.f32 %v728_v30, %v664_v16  ;;  %v3912_v23 = vadd.f32 %v730_v11, %v666_v58  ;;  %793 = vst [vmem:[#allocation44 + $0x88] sm:$0xff] %v3906_v21  ;;  %795 = vst [vmem:[#allocation44 + $0x98] sm:$0xff] %v3908_v20  ;;  %v1687_v27 = vpack.c.bf16 %v3908_v20, %v3906_v21  ;;  %v733_v47 = vmul.f32 0.004, %v3742_v50  ;;  %v641_v50 = vld [vmem:[#allocation31 + $0xc8] sm:$0xff]  ;;  %v640_v28 = vld [vmem:[#allocation31 + $0xc0] sm:$0xff] }
 0x44e   :  { %v735_v13 = vmul.f32 0.004, %v3744_v54  ;;  %v668_v1 = vmul.f32 0.996, %v636_v4  ;;  %v670_v46 = vmul.f32 0.996, %v638_v5 }
 0x44f   :  { %792 = vst [vmem:[#allocation44 + $0x80] sm:$0xff] %v3910_v44  ;;  %794 = vst [vmem:[#allocation44 + $0x90] sm:$0xff] %v3912_v23  ;;  %v1686_v6 = vpack.c.bf16 %v3912_v23, %v3910_v44  ;;  %v732_v2 = vmul.f32 0.004, %v3752_v60  ;;  %v734_v53 = vmul.f32 0.004, %v3754_v14  ;;  %v3926_v9 = vadd.f32 %v733_v47, %v669_v22 }
 0x450   :  { %v3928_v17 = vadd.f32 %v735_v13, %v671_v15  ;;  %v673_v55 = vmul.f32 0.996, %v641_v50  ;;  %v675_v43 = vmul.f32 0.996, %v643_v52  ;;  %v642_v16 = vld [vmem:[#allocation31 + $0xd0] sm:$0xff]  ;;  %v645_v5 = vld [vmem:[#allocation31 + $0xe8] sm:$0xff] }
 0x451   :  { %v3930_v54 = vadd.f32 %v732_v2, %v668_v1  ;;  %v3932_v62 = vadd.f32 %v734_v53, %v670_v46  ;;  %797 = vst [vmem:[#allocation44 + $0xa8] sm:$0xff] %v3926_v9  ;;  %v737_v14 = vmul.f32 0.004, %v3758_v59  ;;  %v739_v58 = vmul.f32 0.004, %v3760_v61  ;;  %v647_v47 = vld [vmem:[#allocation31 + $0xf8] sm:$0xff] }
 0x452   :  { %799 = vst [vmem:[#allocation44 + $0xb8] sm:$0xff] %v3928_v17  ;;  %v1689_v60 = vpack.c.bf16 %v3928_v17, %v3926_v9  ;;  %v672_v30 = vmul.f32 0.996, %v640_v28  ;;  %v674_v39 = vmul.f32 0.996, %v642_v16  ;;  %v644_v46 = vld [vmem:[#allocation31 + $0xe0] sm:$0xff] }
 0x453   :  { %796 = vst [vmem:[#allocation44 + $0xa0] sm:$0xff] %v3930_v54  ;;  %798 = vst [vmem:[#allocation44 + $0xb0] sm:$0xff] %v3932_v62  ;;  %v1688_v11 = vpack.c.bf16 %v3932_v62, %v3930_v54  ;;  %v736_v41 = vmul.f32 0.004, %v3778_v19  ;;  %v738_v22 = vmul.f32 0.004, %v3780_v33  ;;  %v769_v15 = vadd.f32 %v737_v14, %v673_v55 }
 0x454   :  { %v771_v4 = vadd.f32 %v739_v58, %v675_v43  ;;  %v677_v61 = vmul.f32 0.996, %v645_v5  ;;  %v679_v1 = vmul.f32 0.996, %v647_v47  ;;  %v646_v2 = vld [vmem:[#allocation31 + $0xf0] sm:$0xff]  ;;  %v4318_v47 = vmov 0  }
 0x455   :  { %v768_v59 = vadd.f32 %v736_v41, %v672_v30  ;;  %v770_v13 = vadd.f32 %v738_v22, %v674_v39  ;;  %801 = vst [vmem:[#allocation44 + $0xc8] sm:$0xff] %v769_v15  ;;  %v741_v9 = vmul.f32 0.004, %v3784_v48  ;;  %v743_v17 = vmul.f32 0.004, %v3786_v49  ;;  %v4317_v54 = vld [vmem:[#allocation86_spill] sm:$0xff] }
 0x456   :  { %803 = vst [vmem:[#allocation44 + $0xd8] sm:$0xff] %v771_v4  ;;  %v1691_v53 = vpack.c.bf16 %v771_v4, %v769_v15  ;;  %v676_v19 = vmul.f32 0.996, %v644_v46  ;;  %v678_v50 = vmul.f32 0.996, %v646_v2  ;;  %v4319_v57 = vld [vmem:[#allocation88_spill] sm:$0xff] }
 0x457   :  { %800 = vst [vmem:[#allocation44 + $0xc0] sm:$0xff] %v768_v59  ;;  %802 = vst [vmem:[#allocation44 + $0xd0] sm:$0xff] %v770_v13  ;;  %v1690_v33 = vpack.c.bf16 %v770_v13, %v768_v59  ;;  %v740_v52 = vmul.f32 0.004, %v3790_v25  ;;  %v742_v62 = vmul.f32 0.004, %v4317_v54  ;;  %v773_v55 = vadd.f32 %v741_v9, %v677_v61 }
 0x458   :  { %v775_v43 = vadd.f32 %v743_v17, %v679_v1  ;;  %v2143_v41 = vld [vmem:[#allocation17] ss:$0 sm:$0xff]  ;;  %v4320_v29 = vld [vmem:[#allocation87_spill] sm:$0xff]  ;;  %v1493_v12 = vld [vmem:[#allocation25 + $0x8] sm:$0xff] }
 0x459   :  { %v772_v28 = vadd.f32 %v740_v52, %v676_v19  ;;  %v774_v16 = vadd.f32 %v742_v62, %v678_v50  ;;  %805 = vst [vmem:[#allocation44 + $0xe8] sm:$0xff] %v773_v55  ;;  %v1492_v35 = vld [vmem:[#allocation25] sm:$0xff]  ;;  %v1495_v45 = vld [vmem:[#allocation25 + $0x18] sm:$0xff]  ;;  %v1497_v3 = vld [vmem:[#allocation25 + $0x28] sm:$0xff] }
 0x45a   :  { %807 = vst [vmem:[#allocation44 + $0xf8] sm:$0xff] %v775_v43  ;;  %v1693_v14 = vpack.c.bf16 %v775_v43, %v773_v55  ;;  %v1622_v38 = vpack.c.bf16 %v1493_v12, %v1492_v35  ;;  %v1498_v51 = vld [vmem:[#allocation25 + $0x30] sm:$0xff]  ;;  %v1500_v0 = vld [vmem:[#allocation25 + $0x40] sm:$0xff]  ;;  %v1501_v24 = vld [vmem:[#allocation25 + $0x48] sm:$0xff] }
 0x45b   :  { %804 = vst [vmem:[#allocation44 + $0xe0] sm:$0xff] %v772_v28  ;;  %806 = vst [vmem:[#allocation44 + $0xf0] sm:$0xff] %v774_v16  ;;  %v1692_v48 = vpack.c.bf16 %v774_v16, %v772_v28  ;;  %v1626_v34 = vpack.c.bf16 %v1501_v24, %v1500_v0  ;;  %v1502_v7 = vld [vmem:[#allocation25 + $0x50] sm:$0xff]  ;;  %v1504_v21 = vld [vmem:[#allocation25 + $0x60] sm:$0xff] }
 0x45c   :  { %2231 = vmatpush3.bf16.msra.mxu1 %v1622_v38  ;;  %v1505_v20 = vld [vmem:[#allocation25 + $0x68] sm:$0xff]  ;;  %v1506_v23 = vld [vmem:[#allocation25 + $0x70] sm:$0xff]  ;;  %v910_v13 = vld [vmem:[#allocation16 + $0x80] sm:$0xff] }
 0x45d   :  { %2232 = vmatprep.subr.bf16.mxu1 %v4316_v56  ;;  %v1628_v44 = vpack.c.bf16 %v1505_v20, %v1504_v21  ;;  %v911_v61 = vld [vmem:[#allocation16 + $0x88] sm:$0xff]  ;;  %v942_v46 = vmul.f32 0.004, %v910_v13  ;;  %v831_v9 = vld [vmem:[#allocation37 + $0x8] sm:$0xff]  ;;  %v912_v28 = vld [vmem:[#allocation16 + $0x90] sm:$0xff] }
 0x45e   :  { %v943_v2 = vmul.f32 0.004, %v911_v61  ;;  %v894_v17 = vld [vmem:[#allocation16] sm:$0xff]  ;;  %v863_v52 = vmul.f32 0.996, %v831_v9  ;;  %v849_v43 = vld [vmem:[#allocation37 + $0x98] sm:$0xff] }
 0x45f   :  { %v848_v54 = vld [vmem:[#allocation37 + $0x90] sm:$0xff]  ;;  %v926_v62 = vmul.f32 0.004, %v894_v17  ;;  %v851_v38 = vld [vmem:[#allocation37 + $0xa8] sm:$0xff]  ;;  %v834_v0 = vld [vmem:[#allocation37 + $0x20] sm:$0xff] }
 0x460   :  { %v835_v24 = vld [vmem:[#allocation37 + $0x28] sm:$0xff]  ;;  %v899_v21 = vld [vmem:[#allocation16 + $0x28] sm:$0xff]  ;;  %v916_v61 = vld [vmem:[#allocation16 + $0xb0] sm:$0xff] }
 0x461   :  { %v948_v9 = vmul.f32 0.004, %v916_v61  ;;  %v836_v17 = vld [vmem:[#allocation37 + $0x30] sm:$0xff]  ;;  %v841_v61 = vld [vmem:[#allocation37 + $0x58] sm:$0xff] }
 0x514   :  { %v2164_v49 = vpop.f32.mrb[4].mxu1 }
 0x515   :  { %v2165_v58 = vpop.f32.mrb[5].mxu1 }
 0x516   :  { %v2166_v30 = vadd.f32 %v2165_v58, %v2164_v49  ;;  %v2167_v39 = vpop.f32.mrb[6].mxu1  ;;  %v913_v49 = vld [vmem:[#allocation16 + $0x98] sm:$0xff]  ;;  %v832_v58 = vld [vmem:[#allocation37 + $0x10] sm:$0xff] }
 0x517   :  { %v2168_v22 = vpop.f32.mrb[7].mxu1 }
 0x518   :  { %v2169_v15 = vadd.f32 %v2168_v22, %v2167_v39  ;;  %v1467_v25 = vadd.f32 %v2166_v30, %v2143_v41  ;;  %v945_v22 = vmul.f32 0.004, %v913_v49 }
 0x51a   :  { %v1470_v4 = vadd.f32 %v2169_v15, %v2143_v41  ;;  %v944_v41 = vmul.f32 0.004, %v912_v28  ;;  %v833_v15 = vld [vmem:[#allocation37 + $0x18] sm:$0xff]  ;;  %v854_v28 = vld [vmem:[#allocation37 + $0xc0] sm:$0xff] }
 0x51b   :  { %v886_v49 = vmul.f32 0.996, %v854_v28  ;;  %v859_v28 = vld [vmem:[#allocation37 + $0xe8] sm:$0xff] }
 0x51c   :  { %v1509_v5 = vpack.c.bf16 %v1470_v4, %v1467_v25  ;;  %v896_v25 = vld [vmem:[#allocation16 + $0x10] sm:$0xff]  ;;  %v864_v4 = vmul.f32 0.996, %v832_v58 }
 0x51d   :  { %v928_v12 = vmul.f32 0.004, %v896_v25  ;;  %v838_v25 = vld [vmem:[#allocation37 + $0x40] sm:$0xff] }
 0x51e   :  { %2227 = vmatmul.mubr.bf16.vlgmr.msra.gmra.mrb[4].mxu0 %v1509_v5  ;;  %v865_v5 = vmul.f32 0.996, %v833_v15  ;;  %v919_v15 = vld [vmem:[#allocation16 + $0xc8] sm:$0xff] }
 0x51f   :  { %1706 = vmatpush1.bf16.msra.mxu0 %v1678_v63  ;;  %1737 = vmatprep.mubr.bf16.mxu0 %v4318_v47  ;;  %v4321_v63 = vpack.c.bf16 %v4319_v57, %v4320_v29  ;;  %v897_v47 = vld [vmem:[#allocation16 + $0x18] sm:$0xff] }
 0x520   :  { %1707 = vmatprep.subr.bf16.mxu0 %v1681_v18  ;;  %v1494_v18 = vld [vmem:[#allocation25 + $0x10] sm:$0xff] }
 0x521   :  { %v1623_v26 = vpack.c.bf16 %v1495_v45, %v1494_v18  ;;  %v850_v57 = vld [vmem:[#allocation37 + $0xa0] sm:$0xff]  ;;  %v914_v18 = vld [vmem:[#allocation16 + $0xa0] sm:$0xff]  ;;  %v915_v45 = vld [vmem:[#allocation16 + $0xa8] sm:$0xff] }
 0x523   :  { %1708 = vmatpush1.bf16.msra.mxu0 %v1680_v37  ;;  %2233 = vmatpush3.bf16.msra.mxu1 %v1623_v26  ;;  %v1496_v37 = vld [vmem:[#allocation25 + $0x20] sm:$0xff]  ;;  %v929_v26 = vmul.f32 0.004, %v897_v47 }
 0x524   :  { %1709 = vmatprep.subr.bf16.mxu0 %v1683_v32  ;;  %2234 = vmatprep.subr.bf16.mxu1 %v4316_v56  ;;  %v1624_v31 = vpack.c.bf16 %v1497_v3, %v1496_v37  ;;  %v1499_v32 = vld [vmem:[#allocation25 + $0x38] sm:$0xff]  ;;  %v882_v37 = vmul.f32 0.996, %v850_v57  ;;  %v883_v3 = vmul.f32 0.996, %v851_v38 }
 0x525   :  { %v951_v57 = vmul.f32 0.004, %v919_v15  ;;  %v902_v38 = vld [vmem:[#allocation16 + $0x40] sm:$0xff] }
 0x527   :  { %1710 = vmatpush1.bf16.msra.mxu0 %v1682_v42  ;;  %2235 = vmatpush3.bf16.msra.mxu1 %v1624_v31  ;;  %v1625_v42 = vpack.c.bf16 %v1499_v32, %v1498_v51  ;;  %v4004_v51 = vadd.f32 %v928_v12, %v864_v4  ;;  %v946_v32 = vmul.f32 0.004, %v914_v18  ;;  %v839_v12 = vld [vmem:[#allocation37 + $0x48] sm:$0xff]  ;;  %v870_v18 = vmul.f32 0.996, %v838_v25 }
 0x528   :  { %1711 = vmatprep.subr.bf16.mxu0 %v1685_v40  ;;  %2236 = vmatprep.subr.bf16.mxu1 %v4316_v56  ;;  %v1503_v40 = vld [vmem:[#allocation25 + $0x58] sm:$0xff] }
 0x529   :  { %992 = vst [vmem:[#allocation50 + $0x10] sm:$0xff] %v4004_v51  ;;  %v4009_v20 = vadd.f32 %v946_v32, %v882_v37  ;;  %v856_v37 = vld [vmem:[#allocation37 + $0xd0] sm:$0xff] }
 0x52b   :  { %1712 = vmatpush1.bf16.msra.mxu0 %v1684_v10  ;;  %2237 = vmatpush3.bf16.msra.mxu1 %v1625_v42  ;;  %v1627_v10 = vpack.c.bf16 %v1503_v40, %v1502_v7  ;;  %v947_v42 = vmul.f32 0.004, %v915_v45  ;;  %v866_v7 = vmul.f32 0.996, %v834_v0  ;;  %v867_v40 = vmul.f32 0.996, %v835_v24 }
 0x52c   :  { %1713 = vmatprep.subr.bf16.mxu0 %v1687_v27  ;;  %2238 = vmatprep.subr.bf16.mxu1 %v4316_v56  ;;  %v1507_v27 = vld [vmem:[#allocation25 + $0x78] sm:$0xff]  ;;  %1010 = vst [vmem:[#allocation50 + $0xa0] sm:$0xff] %v4009_v20  ;;  %v871_v45 = vmul.f32 0.996, %v839_v12  ;;  %v934_v0 = vmul.f32 0.004, %v902_v38 }
 0x52d   :  { %v857_v24 = vld [vmem:[#allocation37 + $0xd8] sm:$0xff]  ;;  %v842_v12 = vld [vmem:[#allocation37 + $0x60] sm:$0xff]  ;;  %v843_v38 = vld [vmem:[#allocation37 + $0x68] sm:$0xff] }
 0x52f   :  { %1714 = vmatpush1.bf16.msra.mxu0 %v1686_v6  ;;  %2239 = vmatpush3.bf16.msra.mxu1 %v1626_v34  ;;  %v846_v6 = vld [vmem:[#allocation37 + $0x80] sm:$0xff]  ;;  %v4006_v34 = vadd.f32 %v929_v26, %v865_v5  ;;  %v903_v26 = vld [vmem:[#allocation16 + $0x48] sm:$0xff] }
 0x530   :  { %1715 = vmatprep.subr.bf16.mxu0 %v1689_v60  ;;  %2240 = vmatprep.subr.bf16.mxu1 %v4316_v56  ;;  %v1629_v60 = vpack.c.bf16 %v1507_v27, %v1506_v23  ;;  %v878_v59 = vmul.f32 0.996, %v846_v6  ;;  %v931_v27 = vmul.f32 0.004, %v899_v21  ;;  %v852_v6 = vld [vmem:[#allocation37 + $0xb0] sm:$0xff] }
 0x531   :  { %993 = vst [vmem:[#allocation50 + $0x18] sm:$0xff] %v4006_v34  ;;  %v888_v21 = vmul.f32 0.996, %v856_v37  ;;  %v875_v37 = vmul.f32 0.996, %v843_v38 }
 0x532   :  { %v974_v19 = vadd.f32 %v942_v46, %v878_v59  ;;  %v884_v59 = vmul.f32 0.996, %v852_v6  ;;  %v4052_v6 = vadd.f32 %v934_v0, %v870_v18  ;;  %v906_v18 = vld [vmem:[#allocation16 + $0x60] sm:$0xff]  ;;  %v810_v0 = vld [vmem:[#allocation11] sm:$0x3] }
 0x533   :  { %1716 = vmatpush1.bf16.msra.mxu0 %v1688_v11  ;;  %2241 = vmatpush3.bf16.msra.mxu1 %v1627_v10  ;;  %v847_v11 = vld [vmem:[#allocation37 + $0x88] sm:$0xff] }
 0x534   :  { %1717 = vmatprep.subr.bf16.mxu0 %v1691_v53  ;;  %2242 = vmatprep.subr.bf16.mxu1 %v4316_v56  ;;  %v879_v1 = vmul.f32 0.996, %v847_v11  ;;  %v830_v53 = vld [vmem:[#allocation37] sm:$0xff]  ;;  %1006 = vst [vmem:[#allocation50 + $0x80] sm:$0xff] %v974_v19  ;;  %v898_v10 = vld [vmem:[#allocation16 + $0x20] sm:$0xff]  ;;  %998 = vst [vmem:[#allocation50 + $0x40] sm:$0xff] %v4052_v6 }
 0x535   :  { %v862_v50 = vmul.f32 0.996, %v830_v53  ;;  %v930_v23 = vmul.f32 0.004, %v898_v10  ;;  %v4022_v53 = vadd.f32 %v931_v27, %v867_v40  ;;  %v921_v40 = vld [vmem:[#allocation16 + $0xd8] sm:$0xff] }
 0x536   :  { %v935_v10 = vmul.f32 0.004, %v903_v26  ;;  %v874_v26 = vmul.f32 0.996, %v842_v12 }
 0x537   :  { %1718 = vmatpush1.bf16.msra.mxu0 %v1690_v33  ;;  %2243 = vmatpush3.bf16.msra.mxu1 %v1628_v44  ;;  %v975_v33 = vadd.f32 %v943_v2, %v879_v1  ;;  %v3988_v30 = vadd.f32 %v926_v62, %v862_v50  ;;  %v4011_v44 = vadd.f32 %v947_v42, %v883_v3  ;;  %v917_v1 = vld [vmem:[#allocation16 + $0xb8] sm:$0xff] }
 0x538   :  { %1719 = vmatprep.subr.bf16.mxu0 %v1693_v14  ;;  %2244 = vmatprep.subr.bf16.mxu1 %v4316_v56  ;;  %v895_v56 = vld [vmem:[#allocation16 + $0x8] sm:$0xff]  ;;  %v880_v14 = vmul.f32 0.996, %v848_v54  ;;  %v4020_v2 = vadd.f32 %v930_v23, %v866_v7  ;;  %v949_v50 = vmul.f32 0.004, %v917_v1  ;;  %995 = vst [vmem:[#allocation50 + $0x28] sm:$0xff] %v4022_v53  ;;  %v4028_v62 = vadd.f32 %v948_v9, %v884_v59 }
 0x539   :  { %v927_v55 = vmul.f32 0.004, %v895_v56  ;;  %1007 = vst [vmem:[#allocation50 + $0x88] sm:$0xff] %v975_v33  ;;  %v1868_v16 = vpack.c.bf16 %v975_v33, %v974_v19  ;;  %990 = vst [vmem:[#allocation50] sm:$0xff] %v3988_v30  ;;  %v837_v19 = vld [vmem:[#allocation37 + $0x38] sm:$0xff]  ;;  %v4054_v1 = vadd.f32 %v935_v10, %v871_v45  ;;  %v860_v10 = vld [vmem:[#allocation37 + $0xf0] sm:$0xff] }
 0x53a   :  { %1011 = vst [vmem:[#allocation50 + $0xa8] sm:$0xff] %v4011_v44  ;;  %v900_v33 = vld [vmem:[#allocation16 + $0x30] sm:$0xff]  ;;  %v869_v56 = vmul.f32 0.996, %v837_v19  ;;  %994 = vst [vmem:[#allocation50 + $0x20] sm:$0xff] %v4020_v2 }
 0x53b   :  { %1720 = vmatpush1.bf16.msra.mxu0 %v1692_v48  ;;  %2245 = vmatpush3.bf16.msra.mxu1 %v1629_v60  ;;  %v881_v48 = vmul.f32 0.996, %v849_v43  ;;  %v3990_v39 = vadd.f32 %v927_v55, %v863_v52  ;;  %v853_v60 = vld [vmem:[#allocation37 + $0xb8] sm:$0xff]  ;;  %v868_v52 = vmul.f32 0.996, %v836_v17  ;;  %v901_v55 = vld [vmem:[#allocation16 + $0x38] sm:$0xff] }
 0x53c   :  { %2188 = vmatprep.subr.bf16.mxu1 %v1868_v16  ;;  %v885_v13 = vmul.f32 0.996, %v853_v60  ;;  %v932_v43 = vmul.f32 0.004, %v900_v33  ;;  %v855_v16 = vld [vmem:[#allocation37 + $0xc8] sm:$0xff]  ;;  %1012 = vst [vmem:[#allocation50 + $0xb0] sm:$0xff] %v4028_v62 }
 0x53d   :  { %991 = vst [vmem:[#allocation50 + $0x8] sm:$0xff] %v3990_v39  ;;  %v3998_v35 = vadd.f32 %v945_v22, %v881_v48  ;;  %v933_v48 = vmul.f32 0.004, %v901_v55  ;;  %v887_v58 = vmul.f32 0.996, %v855_v16  ;;  %v918_v22 = vld [vmem:[#allocation16 + $0xc0] sm:$0xff] }
 0x53e   :  { %1738 = vmatmul.mubr.bf16.vlgmr.msra.gmra.mrb[8].mxu0 %v4321_v63  ;;  %v3996_v63 = vadd.f32 %v944_v41, %v880_v14  ;;  %v4030_v14 = vadd.f32 %v949_v50, %v885_v13  ;;  %v4033_v41 = vadd.f32 %v932_v43, %v868_v52  ;;  %v950_v47 = vmul.f32 0.004, %v918_v22  ;;  %v920_v7 = vld [vmem:[#allocation16 + $0xd0] sm:$0xff]  ;;  %v840_v13 = vld [vmem:[#allocation37 + $0x50] sm:$0xff]  ;;  %v905_v33 = vld [vmem:[#allocation16 + $0x58] sm:$0xff]  ;;  %999 = vst [vmem:[#allocation50 + $0x48] sm:$0xff] %v4054_v1 }
 0x53f   :  { %1009 = vst [vmem:[#allocation50 + $0x98] sm:$0xff] %v3998_v35  ;;  %v4038_v5 = vadd.f32 %v933_v48, %v869_v56  ;;  %v4046_v42 = vadd.f32 %v951_v57, %v887_v58  ;;  %v889_v23 = vmul.f32 0.996, %v857_v24  ;;  %v952_v60 = vmul.f32 0.004, %v920_v7  ;;  %v904_v19 = vld [vmem:[#allocation16 + $0x50] sm:$0xff] }
 0x540   :  { %1008 = vst [vmem:[#allocation50 + $0x90] sm:$0xff] %v3996_v63  ;;  %1013 = vst [vmem:[#allocation50 + $0xb8] sm:$0xff] %v4030_v14  ;;  %v4044_v32 = vadd.f32 %v950_v47, %v886_v49  ;;  %v953_v59 = vmul.f32 0.004, %v921_v40  ;;  %v872_v9 = vmul.f32 0.996, %v840_v13 }
 0x541   :  { %996 = vst [vmem:[#allocation50 + $0x30] sm:$0xff] %v4033_v41  ;;  %997 = vst [vmem:[#allocation50 + $0x38] sm:$0xff] %v4038_v5  ;;  %v873_v17 = vmul.f32 0.996, %v841_v61  ;;  %v4057_v50 = vadd.f32 %v952_v60, %v888_v21  ;;  %v936_v56 = vmul.f32 0.004, %v904_v19 }
 0x542   :  { %1014 = vst [vmem:[#allocation50 + $0xc0] sm:$0xff] %v4044_v32  ;;  %1015 = vst [vmem:[#allocation50 + $0xc8] sm:$0xff] %v4046_v42  ;;  %v4059_v52 = vadd.f32 %v953_v59, %v889_v23  ;;  %v937_v55 = vmul.f32 0.004, %v905_v33  ;;  %v858_v43 = vld [vmem:[#allocation37 + $0xe0] sm:$0xff]  ;;  %v922_v58 = vld [vmem:[#allocation16 + $0xe0] sm:$0xff] }
 0x543   :  { %v890_v48 = vmul.f32 0.996, %v858_v43  ;;  %v891_v49 = vmul.f32 0.996, %v859_v28  ;;  %v923_v22 = vld [vmem:[#allocation16 + $0xe8] sm:$0xff]  ;;  %1016 = vst [vmem:[#allocation50 + $0xd0] sm:$0xff] %v4057_v50  ;;  %v4068_v25 = vadd.f32 %v936_v56, %v872_v9 }
 0x544   :  { %1017 = vst [vmem:[#allocation50 + $0xd8] sm:$0xff] %v4059_v52  ;;  %v4070_v47 = vadd.f32 %v937_v55, %v873_v17  ;;  %v954_v57 = vmul.f32 0.004, %v922_v58  ;;  %v955_v45 = vmul.f32 0.004, %v923_v22  ;;  %v907_v7 = vld [vmem:[#allocation16 + $0x68] sm:$0xff] }
 0x545   :  { %1000 = vst [vmem:[#allocation50 + $0x50] sm:$0xff] %v4068_v25  ;;  %v938_v40 = vmul.f32 0.004, %v906_v18  ;;  %v861_v21 = vld [vmem:[#allocation37 + $0xf8] sm:$0xff]  ;;  %v939_v60 = vmul.f32 0.004, %v907_v7 }
 0x546   :  { %1001 = vst [vmem:[#allocation50 + $0x58] sm:$0xff] %v4070_v47  ;;  %v4076_v24 = vadd.f32 %v954_v57, %v890_v48  ;;  %v4078_v23 = vadd.f32 %v955_v45, %v891_v49  ;;  %v892_v59 = vmul.f32 0.996, %v860_v10  ;;  %v893_v13 = vmul.f32 0.996, %v861_v21  ;;  %v924_v9 = vld [vmem:[#allocation16 + $0xf0] sm:$0xff] }
 0x547   :  { %v4081_v61 = vadd.f32 %v938_v40, %v874_v26  ;;  %v925_v17 = vld [vmem:[#allocation16 + $0xf8] sm:$0xff]  ;;  %v844_v19 = vld [vmem:[#allocation37 + $0x70] sm:$0xff]  ;;  %v4086_v56 = vadd.f32 %v939_v60, %v875_v37  ;;  %v956_v55 = vmul.f32 0.004, %v924_v9  ;;  %v845_v28 = vld [vmem:[#allocation37 + $0x78] sm:$0xff] }
 0x548   :  { %1018 = vst [vmem:[#allocation50 + $0xe0] sm:$0xff] %v4076_v24  ;;  %1019 = vst [vmem:[#allocation50 + $0xe8] sm:$0xff] %v4078_v23  ;;  %v957_v43 = vmul.f32 0.004, %v925_v17  ;;  %v908_v48 = vld [vmem:[#allocation16 + $0x70] sm:$0xff]  ;;  %v909_v22 = vld [vmem:[#allocation16 + $0x78] sm:$0xff] }
 0x549   :  { %1002 = vst [vmem:[#allocation50 + $0x60] sm:$0xff] %v4081_v61  ;;  %v876_v49 = vmul.f32 0.996, %v844_v19  ;;  %v877_v58 = vmul.f32 0.996, %v845_v28  ;;  %1003 = vst [vmem:[#allocation50 + $0x68] sm:$0xff] %v4086_v56  ;;  %v4092_v12 = vadd.f32 %v956_v55, %v892_v59 }
 0x54a   :  { %v4094_v38 = vadd.f32 %v957_v43, %v893_v13  ;;  %v940_v18 = vmul.f32 0.004, %v908_v48  ;;  %v941_v45 = vmul.f32 0.004, %v909_v22  ;;  %v2144_v10 = vld [vmem:[#allocation20] ss:$0 sm:$0xff] }
 0x54b   :  { %1020 = vst [vmem:[#allocation50 + $0xf0] sm:$0xff] %v4092_v12 }
 0x54c   :  { %1021 = vst [vmem:[#allocation50 + $0xf8] sm:$0xff] %v4094_v38  ;;  %v4100_v37 = vadd.f32 %v940_v18, %v876_v49  ;;  %v4102_v7 = vadd.f32 %v941_v45, %v877_v58 }
 0x54e   :  { %1004 = vst [vmem:[#allocation50 + $0x70] sm:$0xff] %v4100_v37  ;;  %1005 = vst [vmem:[#allocation50 + $0x78] sm:$0xff] %v4102_v7 }
 0x5f1   :  { %v1558_v21 = vpop.f32.mrb[4].mxu0 }
 0x5f2   :  { %v1559_v60 = vadd.f32 %v2144_v10, %v1558_v21  ;;  %v2228_v59 = vpop.f32.mrb[5].mxu0 }
 0x5f3   :  { %v1561_v13 = vpop.f32.mrb[6].mxu0  ;;  %v808_v59 = vld [vmem:[#allocation32] sm:$0x3] }
 0x5f4   :  { %v1565_v9 = vrot.slane %v1559_v60, 4  ;;  %v1562_v17 = vadd.f32 %v2144_v10, %v1561_v13  ;;  %v2229_v19 = vpop.f32.mrb[7].mxu0 }
 0x5f6   :  { %v1566_v55 = vadd.f32 %v1565_v9, %v1559_v60  ;;  %v1599_v43 = vrot.slane %v1562_v17, 4 }
 0x5f8   :  { %v1567_v28 = vrot.slane %v1566_v55, 2  ;;  %v1600_v48 = vadd.f32 %v1599_v43, %v1562_v17  ;;  %v811_v43 = vmul.f32 0.004, %v810_v0 }
 0x5fa   :  { %v1568_v49 = vadd.f32 %v1567_v28, %v1566_v55  ;;  %v1601_v58 = vrot.slane %v1600_v48, 2  ;;  %v809_v55 = vmul.f32 0.996, %v808_v59 }
 0x5fc   :  { %v1569_v22 = vrot.slane %v1568_v49, 1  ;;  %v1602_v18 = vadd.f32 %v1601_v58, %v1600_v48 }
 0x5fe   :  { %v1570_v45 = vadd.f32 %v1569_v22, %v1568_v49  ;;  %v1603_v26 = vrot.slane %v1602_v18, 1 }
 0x600   :  { %v1571_v57 = vmul.f32 0.125, %v1570_v45  ;;  %v1604_v40 = vadd.f32 %v1603_v26, %v1602_v18 }
 0x602   :  { %v4108_v33 = vsub.f32 %v1559_v60, %v1571_v57  ;;  %v1605_v21 = vmul.f32 0.125, %v1604_v40  ;;  %v4116_v57 = vadd.f32 %v811_v43, %v809_v55 }
 0x604   :  { %v1573_v10 = vmul.f32 %v4108_v33, %v4108_v33  ;;  %v4112_v13 = vsub.f32 %v1562_v17, %v1605_v21  ;;  %v1698_v17 = vrot.slane %v4116_v57, %v3801_v36  ;;  %v1702_v18 = vrot.slane %v4116_v57, %v3819_v8 }
 0x606   :  { %v1574_v9 = vrot.slane %v1573_v10, 4  ;;  %v1607_v19 = vmul.f32 %v4112_v13, %v4112_v13 }
 0x608   :  { %v1575_v28 = vadd.f32 %v1574_v9, %v1573_v10  ;;  %v1608_v48 = vrot.slane %v1607_v19, 4 }
 0x60a   :  { %v1576_v49 = vrot.slane %v1575_v28, 2  ;;  %v1609_v26 = vadd.f32 %v1608_v48, %v1607_v19 }
 0x60c   :  { %v1577_v40 = vadd.f32 %v1576_v49, %v1575_v28  ;;  %v1610_v60 = vrot.slane %v1609_v26, 2 }
 0x60e   :  { %v1578_v58 = vrot.slane %v1577_v40, 1  ;;  %v1611_v22 = vadd.f32 %v1610_v60, %v1609_v26 }
 0x610   :  { %v1579_v45 = vadd.f32 %v1578_v58, %v1577_v40  ;;  %v1612_v21 = vrot.slane %v1611_v22, 1 }
 0x611   :  { %v1739_v59 = vpop.f32.mrb[8].mxu0 }
 0x612   :  { %v1580_v0 = vmul.f32 0.125, %v1579_v45  ;;  %v1613_v10 = vadd.f32 %v1612_v21, %v1611_v22  ;;  %v1740_v9 = vadd.f32 %v1739_v59, %v1698_v17  ;;  %v1741_v15 = vpop.f32.mrb[9].mxu0 }
 0x613   :  { %v1742_v19 = vadd.f32 %v1741_v15, %v1702_v18  ;;  %v1743_v55 = vpop.f32.mrb[10].mxu0 }
 0x614   :  { %v1581_v43 = vadd.f32 1e-05, %v1580_v0  ;;  %v1614_v28 = vmul.f32 0.125, %v1613_v10  ;;  %v1748_v48 = vrot.slane %v1740_v9, 4  ;;  %v1744_v49 = vadd.f32 %v1743_v55, %v1698_v17  ;;  %v1745_v26 = vpop.f32.mrb[11].mxu0 }
 0x615   :  { %v1754_v60 = vrot.slane %v1742_v19, 4  ;;  %v1746_v16 = vadd.f32 %v1745_v26, %v1702_v18 }
 0x616   :  { %2330 = vrsqrt.f32 %v1581_v43  ;;  %v1615_v27 = vadd.f32 1e-05, %v1614_v28  ;;  %v1749_v3 = vadd.f32 %v1748_v48, %v1740_v9  ;;  %v1814_v4 = vrot.slane %v1744_v49, 4 }
 0x617   :  { %v1755_v40 = vadd.f32 %v1754_v60, %v1742_v19  ;;  %v1820_v58 = vrot.slane %v1746_v16, 4  ;;  %v2145_v60 = vld [vmem:[#allocation22] ss:$0 sm:$0xff] }
 0x618   :  { %2332 = vrsqrt.f32 %v1615_v27  ;;  %v1750_v45 = vrot.slane %v1749_v3, 2  ;;  %v1815_v22 = vadd.f32 %v1814_v4, %v1744_v49 }
 0x619   :  { %v1756_v21 = vrot.slane %v1755_v40, 2  ;;  %v1821_v59 = vadd.f32 %v1820_v58, %v1746_v16 }
 0x61a   :  { %v1751_v15 = vadd.f32 %v1750_v45, %v1749_v3  ;;  %v1816_v54 = vrot.slane %v1815_v22, 2 }
 0x61b   :  { %v1757_v0 = vadd.f32 %v1756_v21, %v1755_v40  ;;  %v1822_v10 = vrot.slane %v1821_v59, 2  ;;  %v2146_v21 = vld [vmem:[#allocation23] ss:$0 sm:$0xff] }
 0x61c   :  { %v1752_v46 = vrot.slane %v1751_v15, 1  ;;  %v1817_v17 = vadd.f32 %v1816_v54, %v1815_v22 }
 0x61d   :  { %v1758_v55 = vrot.slane %v1757_v0, 1  ;;  %v1823_v11 = vadd.f32 %v1822_v10, %v1821_v59 }
 0x61e   :  { %v1753_v18 = vadd.f32 %v1752_v46, %v1751_v15  ;;  %v1818_v43 = vrot.slane %v1817_v17, 1 }
 0x61f   :  { %v1759_v28 = vadd.f32 %v1758_v55, %v1757_v0  ;;  %v1824_v48 = vrot.slane %v1823_v11, 1 }
 0x620   :  { %v2331_v26 = vpop.eup %2330  ;;  %v1760_v31 = vmul.f32 0.125, %v1753_v18  ;;  %v1819_v27 = vadd.f32 %v1818_v43, %v1817_v17 }
 0x621   :  { %v1583_v4 = vmul.f32 %v2331_v26, %v4108_v33  ;;  %v1761_v29 = vmul.f32 0.125, %v1759_v28  ;;  %v1825_v58 = vadd.f32 %v1824_v48, %v1823_v11 }
 0x622   :  { %v2333_v3 = vpop.eup %2332  ;;  %v4123_v45 = vsub.f32 %v1740_v9, %v1760_v31  ;;  %v1826_v40 = vmul.f32 0.125, %v1819_v27 }
 0x623   :  { %v1590_v54 = vmul.f32 %v2145_v60, %v1583_v4  ;;  %v1617_v22 = vmul.f32 %v2333_v3, %v4112_v13  ;;  %v4126_v46 = vsub.f32 %v1742_v19, %v1761_v29  ;;  %v1827_v59 = vmul.f32 0.125, %v1825_v58 }
 0x624   :  { %v1764_v15 = vmul.f32 %v4123_v45, %v4123_v45  ;;  %v4130_v0 = vsub.f32 %v1744_v49, %v1826_v40 }
 0x625   :  { %v1618_v10 = vmul.f32 %v2145_v60, %v1617_v22  ;;  %v1765_v11 = vmul.f32 %v4126_v46, %v4126_v46  ;;  %v4134_v33 = vsub.f32 %v1746_v16, %v1827_v59  ;;  %v1597_v31 = vadd.f32 %v2146_v21, %v1590_v54 }
 0x626   :  { %v1766_v9 = vrot.slane %v1764_v15, 4  ;;  %v1830_v17 = vmul.f32 %v4130_v0, %v4130_v0 }
 0x627   :  { %v1772_v13 = vrot.slane %v1765_v11, 4  ;;  %v1831_v29 = vmul.f32 %v4134_v33, %v4134_v33  ;;  %v1619_v19 = vadd.f32 %v2146_v21, %v1618_v10  ;;  %v1598_v28 = vmax.f32 %v1597_v31, 0.0 }
 0x628   :  { %v1767_v55 = vadd.f32 %v1766_v9, %v1764_v15  ;;  %v1832_v18 = vrot.slane %v1830_v17, 4  ;;  %v4322_v21 = vpack.c.bf16 %v3990_v39, %v3988_v30  ;;  %v4325_v39 = vpack.c.bf16 %v4011_v44, %v4009_v20 }
 0x629   :  { %v1773_v49 = vadd.f32 %v1772_v13, %v1765_v11  ;;  %v1838_v43 = vrot.slane %v1831_v29, 4  ;;  %v1620_v48 = vmax.f32 %v1619_v19, 0.0  ;;  %v4323_v11 = vpack.c.bf16 %v3998_v35, %v3996_v63 }
 0x62a   :  { %v1768_v26 = vrot.slane %v1767_v55, 2  ;;  %v1833_v60 = vadd.f32 %v1832_v18, %v1830_v17  ;;  %v818_v18 = vld [vmem:[#allocation34] sm:$0x3]  ;;  %v4327_v20 = vpack.c.bf16 %v4030_v14, %v4028_v62  ;;  %v4330_v62 = vpack.c.bf16 %v4054_v1, %v4052_v6 }
 0x62b   :  { %v1774_v16 = vrot.slane %v1773_v49, 2  ;;  %v1839_v27 = vadd.f32 %v1838_v43, %v1831_v29  ;;  %v1621_v4 = vpack.c.bf16 %v1620_v48, %v1598_v28  ;;  %v820_v43 = vld [vmem:[#allocation13] sm:$0x3]  ;;  %v4332_v1 = vpack.c.bf16 %v4070_v47, %v4068_v25 }
 0x62c   :  { %v1769_v58 = vadd.f32 %v1768_v26, %v1767_v55  ;;  %v1834_v3 = vrot.slane %v1833_v60, 2  ;;  %v4324_v55 = vpack.c.bf16 %v4006_v34, %v4004_v51  ;;  %v824_v51 = vld [vmem:[#allocation35] sm:$0x3]  ;;  %v826_v34 = vld [vmem:[#allocation14] sm:$0x3]  ;;  %v4334_v25 = vpack.c.bf16 %v4086_v56, %v4081_v61 }
 0x62d   :  { %v1775_v40 = vadd.f32 %v1774_v16, %v1773_v49  ;;  %v1840_v54 = vrot.slane %v1839_v27, 2  ;;  %2247 = vmatmul.mubr.bf16.vlgmr.msra.gmra.mrb[8].mxu1 %v1621_v4  ;;  %v819_v16 = vmul.f32 0.996, %v818_v18  ;;  %v825_v44 = vmul.f32 0.996, %v824_v51 }
 0x62e   :  { %v1770_v22 = vrot.slane %v1769_v58, 1  ;;  %v1835_v59 = vadd.f32 %v1834_v3, %v1833_v60  ;;  %2189 = vmatpush3.bf16.msra.mxu1 %v4322_v21  ;;  %v4326_v60 = vpack.c.bf16 %v4022_v53, %v4020_v2  ;;  %v4328_v3 = vpack.c.bf16 %v4038_v5, %v4033_v41  ;;  %v1022_v61 = vld [vmem:[#allocation38] sm:$0x1]  ;;  %v1024_v56 = vld [vmem:[#allocation17] sm:$0x1] }
 0x62f   :  { %v1776_v15 = vrot.slane %v1775_v40, 1  ;;  %v1841_v10 = vadd.f32 %v1840_v54, %v1839_v27  ;;  %2190 = vmatprep.subr.bf16.mxu1 %v4323_v11  ;;  %v821_v27 = vmul.f32 0.004, %v820_v43  ;;  %v4329_v53 = vpack.c.bf16 %v4046_v42, %v4044_v32 }
 0x630   :  { %v1771_v31 = vadd.f32 %v1770_v22, %v1769_v58  ;;  %v1836_v9 = vrot.slane %v1835_v59, 1  ;;  %v827_v58 = vmul.f32 0.004, %v826_v34  ;;  %v4331_v54 = vpack.c.bf16 %v4059_v52, %v4057_v50 }
 0x631   :  { %v1777_v17 = vadd.f32 %v1776_v15, %v1775_v40  ;;  %v1842_v13 = vrot.slane %v1841_v10, 1  ;;  %v4161_v2 = vadd.f32 %v821_v27, %v819_v16  ;;  %v1023_v18 = vmul.f32 0.996, %v1022_v61 }
 0x632   :  { %v1778_v29 = vmul.f32 0.125, %v1771_v31  ;;  %v1837_v19 = vadd.f32 %v1836_v9, %v1835_v59  ;;  %2191 = vmatpush3.bf16.msra.mxu1 %v4324_v55  ;;  %v4166_v40 = vadd.f32 %v827_v58, %v825_v44 }
 0x633   :  { %v1779_v49 = vmul.f32 0.125, %v1777_v17  ;;  %v1843_v30 = vadd.f32 %v1842_v13, %v1841_v10  ;;  %2192 = vmatprep.subr.bf16.mxu1 %v4325_v39  ;;  %v1790_v14 = vrot.slane %v4161_v2, %v3801_v36  ;;  %v1794_v5 = vrot.slane %v4161_v2, %v3819_v8 }
 0x634   :  { %v1780_v63 = vadd.f32 1e-05, %v1778_v29  ;;  %v1844_v35 = vmul.f32 0.125, %v1837_v19  ;;  %v1803_v42 = vrot.slane %v4166_v40, %v3801_v36  ;;  %v1807_v50 = vrot.slane %v4166_v40, %v3819_v8 }
 0x635   :  { %v1781_v28 = vadd.f32 1e-05, %v1779_v49  ;;  %v1845_v48 = vmul.f32 0.125, %v1843_v30  ;;  %v4335_v8 = vpack.c.bf16 %v4094_v38, %v4092_v12  ;;  %v1025_v49 = vmul.f32 0.004, %v1024_v56 }
 0x636   :  { %2334 = vrsqrt.f32 %v1780_v63  ;;  %v1846_v26 = vadd.f32 1e-05, %v1844_v35  ;;  %2193 = vmatpush3.bf16.msra.mxu1 %v4326_v60  ;;  %v2147_v38 = vld [vmem:[#allocation26] ss:$0 sm:$0xff] }
 0x637   :  { %2336 = vrsqrt.f32 %v1781_v28  ;;  %v1847_v4 = vadd.f32 1e-05, %v1845_v48  ;;  %2194 = vmatprep.subr.bf16.mxu1 %v4327_v20  ;;  %v1026_v12 = vadd.f32 %v1025_v49, %v1023_v18 }
 0x638   :  { %2338 = vrsqrt.f32 %v1846_v26 }
 0x639   :  { %2340 = vrsqrt.f32 %v1847_v4  ;;  %1027 = vst [vmem:[#allocation52] sm:$0x1] %v1026_v12  ;;  %v1880_v26 = vrot.slane %v1026_v12, %v3801_v36 }
 0x63a   :  { %2195 = vmatpush3.bf16.msra.mxu1 %v4328_v3 }
 0x63b   :  { %2196 = vmatprep.subr.bf16.mxu1 %v4329_v53 }
 0x63e   :  { %2197 = vmatpush3.bf16.msra.mxu1 %v4330_v62  ;;  %v4337_v62 = vlaneseq }
 0x63f   :  { %2198 = vmatprep.subr.bf16.mxu1 %v4331_v54 }
 0x640   :  { %v2335_v41 = vpop.eup %2334  ;;  %vm815_vm1 = vcmp.lt.s32.totalorder %v4337_v62, 256 }
 0x641   :  { %v2337_v22 = vpop.eup %2336  ;;  %v1784_v32 = vmul.f32 %v2335_v41, %v4123_v45  ;;  %v4333_v45 = vpack.c.bf16 %v4078_v23, %v4076_v24  ;;  %v4336_v23 = vpack.c.bf16 %v4102_v7, %v4100_v37  ;;  %823 = vst.msk [vmem:[#allocation47] sm:$0x3] %vm815_vm1, %v4161_v2  ;;  %817 = vst.msk [vmem:[#allocation46] sm:$0x3] %vm815_vm1, %v4116_v57 }
 0x642   :  { %v2339_v59 = vpop.eup %2338  ;;  %v1785_v6 = vmul.f32 %v2337_v22, %v4126_v46  ;;  %2199 = vmatpush3.bf16.msra.mxu1 %v4332_v1  ;;  %829 = vst.msk [vmem:[#allocation49] sm:$0x3] %vm815_vm1, %v4166_v40 }
 0x643   :  { %v2341_v52 = vpop.eup %2340  ;;  %v1797_v21 = vmul.f32 %v1790_v14, %v1784_v32  ;;  %v1850_v15 = vmul.f32 %v2339_v59, %v4130_v0  ;;  %2200 = vmatprep.subr.bf16.mxu1 %v4333_v45 }
 0x644   :  { %v1851_v10 = vmul.f32 %v2341_v52, %v4134_v33  ;;  %v1798_v11 = vmul.f32 %v1794_v5, %v1785_v6 }
 0x645   :  { %v1852_v31 = vmul.f32 %v1850_v15, %v1790_v14  ;;  %v1810_v46 = vadd.f32 %v1803_v42, %v1797_v21 }
 0x646   :  { %2201 = vmatpush3.bf16.msra.mxu1 %v4334_v25  ;;  %v1811_v47 = vadd.f32 %v1807_v50, %v1798_v11  ;;  %v1853_v9 = vmul.f32 %v1851_v10, %v1794_v5 }
 0x647   :  { %2202 = vmatprep.subr.bf16.mxu1 %v4335_v8  ;;  %v1854_v0 = vadd.f32 %v1852_v31, %v1803_v42  ;;  %v1812_v13 = vmax.f32 %v1810_v46, 0.0 }
 0x648   :  { %v1855_v17 = vadd.f32 %v1853_v9, %v1807_v50  ;;  %v1813_v33 = vmax.f32 %v1811_v47, 0.0 }
 0x649   :  { %v1856_v24 = vmax.f32 %v1854_v0, 0.0 }
 0x64a   :  { %2203 = vmatpush3.bf16.msra.mxu1 %v4336_v23  ;;  %v1857_v29 = vmax.f32 %v1855_v17, 0.0 }
 0x64b   :  { %v1858_v19 = vpack.c.bf16 %v1856_v24, %v1812_v13 }
 0x64c   :  { %v1859_v55 = vpack.c.bf16 %v1857_v29, %v1813_v33 }
 0x64e   :  { %1914 = vmatprep.mubr.bf16.mxu1 %v1859_v55 }
 0x64f   :  { %1915 = vmatmul.mubr.bf16.vlgmr.msra.gmra.mrb[12].mxu1 %v1858_v19 }
 0x700   :  { %v1670_v30 = vpop.f32.mrb[8].mxu1 }
 0x701   :  { %v1671_v39 = vadd.f32 %v2147_v38, %v1670_v30  ;;  %v2248_v43 = vpop.f32.mrb[9].mxu1 }
 0x702   :  { %v1673_v63 = vpop.f32.mrb[10].mxu1 }
 0x703   :  { %v1674_v35 = vadd.f32 %v2147_v38, %v1673_v63  ;;  %v2249_v37 = vpop.f32.mrb[11].mxu1  ;;  %v1926_v7 = vmul.f32 %v1671_v39, %v1671_v39 }
 0x705   :  { %1927 = vadd.xlane.f32.xlu0 %v1926_v7  ;;  %v1947_v28 = vmul.f32 %v1674_v35, %v1674_v35 }
 0x707   :  { %1948 = vadd.xlane.f32.xlu1 %v1947_v28 }
 0x722   :  { %v2204_v48 = vpop.f32.mrb[12].mxu1 }
 0x723   :  { %v2205_v60 = vpop.f32.mrb[13].mxu1 }
 0x724   :  { %v2206_v51 = vadd.f32 %v2205_v60, %v2204_v48  ;;  %v2207_v34 = vpop.f32.mrb[14].mxu1 }
 0x725   :  { %v2208_v16 = vpop.f32.mrb[15].mxu1 }
 0x726   :  { %v1917_v27 = vadd.f32 %v2206_v51, %v1880_v26  ;;  %v2209_v4 = vadd.f32 %v2208_v16, %v2207_v34 }
 0x728   :  { %v1920_v20 = vadd.f32 %v2209_v4, %v1880_v26  ;;  %v1950_v44 = vmul.f32 %v1917_v27, %v1917_v27  ;;  %v1944_v58 = vmul.f32 %v1917_v27, %v1674_v35 }
 0x72a   :  { %1951 = vadd.xlane.f32.xlu1 %v1950_v44  ;;  %v1929_v3 = vmul.f32 %v1920_v20, %v1920_v20  ;;  %v1923_v53 = vmul.f32 %v1920_v20, %v1671_v39 }
 0x72c   :  { %1930 = vadd.xlane.f32.xlu0 %v1929_v3 }
 0x72e   :  { %1945 = vadd.xlane.f32.xlu1 %v1944_v58 }
 0x730   :  { %1924 = vadd.xlane.f32.xlu0 %v1923_v53 }
 0x731   :  { %2885 = shalt.err (!%p2882_p0)
}
 0x732   :  { %s4338_s14 = sld [smem:[#allocation82_spill]] }
 0x738   :  { %s2886_s22 = scalar_lea.hbm %s4338_s14, 4096 }
 0x739   :  { %p2887_p1 = scmp.ne.s32.totalorder %s4338_s14, %s2886_s22  ;;  %p2890_p2 = scmp.lt.u32.totalorder %s2886_s22, %s4338_s14 }
 0x73b   :  { %p2892_p3 = pnand %p2890_p2, %p2887_p1 }
 0x73d   :  { %2895 = shalt.err (!%p2892_p3)
}
 0x73e   :  { %1990 = dma.vmem_to_hbm [thread:$0]  %s1985_s21, 4096, %s4338_s14, [#allocation42], %s3153_s24, %s3153_s24, %s3154_s5  }
 0x73f   :  { %s2896_s30 = scalar_lea.vmem %s4206_s4, 4096  ;;  %p2901_p5 = scmp.lt.s32.totalorder %s4206_s4, %s4206_s4 }
 0x740   :  { %p2897_p4 = scmp.ne.s32.totalorder %s4206_s4, %s2896_s30  ;;  %p2902_p6 = scmp.lt.s32.totalorder %s2896_s30, %s2896_s30 }
 0x742   :  { %p2903_p7 = por %p2902_p6, %p2901_p5 }
 0x744   :  { %p2904_p8 = pnand %p2903_p7, %p2897_p4 }
 0x746   :  { %2907 = shalt.err (!%p2904_p8)
}
 0x747   :  { %s4339_s23 = sld [smem:[#allocation84_spill]] }
 0x74d   :  { %s2908_s26 = scalar_lea.hbm %s4339_s23, 4096 }
 0x74e   :  { %p2909_p9 = scmp.ne.s32.totalorder %s4339_s23, %s2908_s26  ;;  %p2912_p10 = scmp.lt.u32.totalorder %s2908_s26, %s4339_s23 }
 0x750   :  { %p2914_p11 = pnand %p2912_p10, %p2909_p9 }
 0x752   :  { %2917 = shalt.err (!%p2914_p11)
}
 0x753   :  { %2012 = dma.vmem_to_hbm [thread:$0]  %s4206_s4, 4096, %s4339_s23, [#allocation45], %s3156_s25, %s3156_s25, %s3157_s13  }
 0x754   :  { %s3173_s0 = smov [#allocation47]   ;;  %s3174_s17 = smov [#allocation50]  }
 0x755   :  { %s2029_s19 = sshll.u32 %s3173_s0, 4  ;;  %s2048_s28 = sshll.u32 %s3174_s17, 4  ;;  %s2030_s19 = int_to_ptr.vmem [resolvable:$true] %s2029_s19  ;;  %s4227_s28 = int_to_ptr.vmem [resolvable:$true] %s2048_s28 }
 0x756   :  { %s2918_s1 = scalar_lea.vmem %s2030_s19, 32  ;;  %p2923_p13 = scmp.lt.s32.totalorder %s2030_s19, %s2030_s19 }
 0x757   :  { %p2919_p12 = scmp.ne.s32.totalorder %s2030_s19, %s2918_s1  ;;  %p2924_p0 = scmp.lt.s32.totalorder %s2918_s1, %s2918_s1 }
 0x759   :  { %p2925_p1 = por %p2924_p0, %p2923_p13 }
 0x75b   :  { %p2926_p2 = pnand %p2925_p1, %p2919_p12 }
 0x75d   :  { %2929 = shalt.err (!%p2926_p2)
}
 0x75e   :  { %s2930_s2 = scalar_lea.hbm %s3333_s29, 32 }
 0x75f   :  { %p2931_p3 = scmp.ne.s32.totalorder %s3333_s29, %s2930_s2  ;;  %p2934_p4 = scmp.lt.u32.totalorder %s2930_s2, %s3333_s29 }
 0x761   :  { %p2936_p5 = pnand %p2934_p4, %p2931_p3 }
 0x763   :  { %2939 = shalt.err (!%p2936_p5)
}
 0x764   :  { %2032 = dma.vmem_to_hbm [thread:$0]  %s2030_s19, 32, %s3333_s29, [#allocation48]  }
 0x765   :  { %s2940_s25 = scalar_lea.vmem %s4227_s28, 4096  ;;  %p2945_p7 = scmp.lt.s32.totalorder %s4227_s28, %s4227_s28 }
 0x766   :  { %p2941_p6 = scmp.ne.s32.totalorder %s4227_s28, %s2940_s25  ;;  %p2946_p8 = scmp.lt.s32.totalorder %s2940_s25, %s2940_s25 }
 0x768   :  { %p2947_p9 = por %p2946_p8, %p2945_p7 }
 0x76a   :  { %p2948_p10 = pnand %p2947_p9, %p2941_p6 }
 0x76c   :  { %2951 = shalt.err (!%p2948_p10)
}
 0x76d   :  { %s2952_s13 = scalar_lea.hbm %s3343_s8, 4096 }
 0x76e   :  { %p2953_p11 = scmp.ne.s32.totalorder %s3343_s8, %s2952_s13  ;;  %p2956_p12 = scmp.lt.u32.totalorder %s2952_s13, %s3343_s8 }
 0x770   :  { %p2958_p13 = pnand %p2956_p12, %p2953_p11 }
 0x772   :  { %2961 = shalt.err (!%p2958_p13)
}
 0x773   :  { %2054 = dma.vmem_to_hbm [thread:$0]  %s4227_s28, 4096, %s3343_s8, [#allocation51], %s3153_s24, %s3153_s24, %s3154_s5  }
 0x774   :  { %s3175_s29 = smov [#allocation43]  }
 0x775   :  { %s1997_s6 = sshll.u32 %s3175_s29, 4  ;;  %s1998_s6 = int_to_ptr.vmem [resolvable:$true] %s1997_s6 }
 0x776   :  { %s2962_s7 = scalar_lea.vmem %s1998_s6, 16  ;;  %s2966_s10 = scalar_lea.vmem %s1998_s6, 32 }
 0x777   :  { %p2963_p0 = scmp.ne.s32.totalorder %s1998_s6, %s2962_s7  ;;  %p2967_p1 = scmp.lt.s32.totalorder %s1998_s6, %s1998_s6 }
 0x778   :  { %p2968_p2 = scmp.lt.s32.totalorder %s2966_s10, %s2962_s7 }
 0x77a   :  { %p2969_p3 = por %p2968_p2, %p2967_p1 }
 0x77c   :  { %p2970_p4 = pnand %p2969_p3, %p2963_p0 }
 0x77e   :  { %2973 = shalt.err (!%p2970_p4)
}
 0x77f   :  { %s4340_s11 = sld [smem:[#allocation83_spill]] }
 0x785   :  { %s2974_s15 = scalar_lea.hbm %s4340_s11, 16 }
 0x786   :  { %p2975_p5 = scmp.ne.s32.totalorder %s4340_s11, %s2974_s15  ;;  %p2978_p6 = scmp.lt.u32.totalorder %s2974_s15, %s4340_s11 }
 0x788   :  { %p2980_p7 = pnand %p2978_p6, %p2975_p5 }
 0x78a   :  { %2983 = shalt.err (!%p2980_p7)
}
 0x78b   :  { %2000 = dma.vmem_to_hbm [thread:$0]  %s1998_s6, 16, %s4340_s11, [#allocation42]  }
 0x78c   :  { %s3176_s8 = smov [#allocation46]   ;;  %s3177_s5 = smov [#allocation49]  }
 0x78d   :  { %s2019_s24 = sshll.u32 %s3176_s8, 4  ;;  %s2039_s20 = sshll.u32 %s3177_s5, 4  ;;  %s2020_s24 = int_to_ptr.vmem [resolvable:$true] %s2019_s24  ;;  %s2040_s20 = int_to_ptr.vmem [resolvable:$true] %s2039_s20 }
 0x78e   :  { %s2984_s3 = scalar_lea.vmem %s2020_s24, 32  ;;  %p2989_p9 = scmp.lt.s32.totalorder %s2020_s24, %s2020_s24 }
 0x78f   :  { %p2985_p8 = scmp.ne.s32.totalorder %s2020_s24, %s2984_s3  ;;  %p2990_p10 = scmp.lt.s32.totalorder %s2984_s3, %s2984_s3 }
 0x791   :  { %p2991_p11 = por %p2990_p10, %p2989_p9 }
 0x793   :  { %p2992_p12 = pnand %p2991_p11, %p2985_p8 }
 0x795   :  { %2995 = shalt.err (!%p2992_p12)
}
 0x796   :  { %s4341_s16 = sld [smem:[#allocation85_spill]] }
 0x79c   :  { %s2996_s21 = scalar_lea.hbm %s4341_s16, 32 }
 0x79d   :  { %p2997_p13 = scmp.ne.s32.totalorder %s4341_s16, %s2996_s21  ;;  %p3000_p0 = scmp.lt.u32.totalorder %s2996_s21, %s4341_s16 }
 0x79f   :  { %p3002_p1 = pnand %p3000_p0, %p2997_p13 }
 0x7a1   :  { %3005 = shalt.err (!%p3002_p1)
}
 0x7a2   :  { %2022 = dma.vmem_to_hbm [thread:$0]  %s2020_s24, 32, %s4341_s16, [#allocation45]  }
 0x7a3   :  { %s3006_s18 = scalar_lea.vmem %s2040_s20, 32  ;;  %p3011_p3 = scmp.lt.s32.totalorder %s2040_s20, %s2040_s20 }
 0x7a4   :  { %p3007_p2 = scmp.ne.s32.totalorder %s2040_s20, %s3006_s18  ;;  %p3012_p4 = scmp.lt.s32.totalorder %s3006_s18, %s3006_s18 }
 0x7a6   :  { %p3013_p5 = por %p3012_p4, %p3011_p3 }
 0x7a8   :  { %p3014_p6 = pnand %p3013_p5, %p3007_p2 }
 0x7aa   :  { %3017 = shalt.err (!%p3014_p6)
}
 0x7ab   :  { %s3018_s4 = scalar_lea.hbm %s3338_s12, 32 }
 0x7ac   :  { %p3019_p7 = scmp.ne.s32.totalorder %s3338_s12, %s3018_s4  ;;  %p3022_p8 = scmp.lt.u32.totalorder %s3018_s4, %s3338_s12 }
 0x7ae   :  { %p3024_p9 = pnand %p3022_p8, %p3019_p7 }
 0x7b0   :  { %3027 = shalt.err (!%p3024_p9)
}
 0x7b1   :  { %2042 = dma.vmem_to_hbm [thread:$0]  %s2040_s20, 32, %s3338_s12, [#allocation48]  }
 0x7b2   :  { %s3178_s9 = smov [#allocation52]  }
 0x7b3   :  { %s2061_s14 = sshll.u32 %s3178_s9, 4  ;;  %s2062_s14 = int_to_ptr.vmem [resolvable:$true] %s2061_s14 }
 0x7b4   :  { %s3028_s22 = scalar_lea.vmem %s2062_s14, 16  ;;  %s3032_s30 = scalar_lea.vmem %s2062_s14, 32 }
 0x7b5   :  { %p3029_p10 = scmp.ne.s32.totalorder %s2062_s14, %s3028_s22  ;;  %p3033_p11 = scmp.lt.s32.totalorder %s2062_s14, %s2062_s14 }
 0x7b6   :  { %p3034_p12 = scmp.lt.s32.totalorder %s3032_s30, %s3028_s22 }
 0x7b8   :  { %p3035_p13 = por %p3034_p12, %p3033_p11 }
 0x7ba   :  { %p3036_p0 = pnand %p3035_p13, %p3029_p10 }
 0x7bc   :  { %3039 = shalt.err (!%p3036_p0)
}
 0x7bd   :  { %s3040_s23 = scalar_lea.hbm %s3348_s27, 16 }
 0x7be   :  { %p3041_p1 = scmp.ne.s32.totalorder %s3348_s27, %s3040_s23  ;;  %p3044_p2 = scmp.lt.u32.totalorder %s3040_s23, %s3348_s27 }
 0x7c0   :  { %p3046_p3 = pnand %p3044_p2, %p3041_p1 }
 0x7c2   :  { %3049 = shalt.err (!%p3046_p3)
}
 0x7c3   :  { %2064 = dma.vmem_to_hbm [thread:$0]  %s2062_s14, 16, %s3348_s27, [#allocation51]   ;;  %v1949_v36 = vpop.xlane.xlu1 %1948  ;;  %v1928_v57 = vpop.xlane.xlu0 %1927  ;;  %vm1967_vm2 = vcmask 0  }
 0x7c4   :  { %s3179_s12 = smov [#allocation40]  }
 0x7c5   :  { %s1975_s27 = sshll.u32 %s3179_s12, 4  ;;  %s1976_s27 = int_to_ptr.vmem [resolvable:$true] %s1975_s27 }
 0x7c6   :  { %s3050_s26 = scalar_lea.vmem %s1976_s27, 16  ;;  %s3054_s0 = scalar_lea.vmem %s1976_s27, 32 }
 0x7c7   :  { %v1952_v2 = vpop.xlane.xlu1 %1951  ;;  %v1931_v14 = vpop.xlane.xlu0 %1930  ;;  %p3051_p4 = scmp.ne.s32.totalorder %s1976_s27, %s3050_s26  ;;  %p3055_p5 = scmp.lt.s32.totalorder %s1976_s27, %s1976_s27 }
 0x7c8   :  { %v1953_v40 = vmul.f32 %v1952_v2, %v1949_v36  ;;  %v1932_v41 = vmul.f32 %v1931_v14, %v1928_v57  ;;  %p3056_p6 = scmp.lt.s32.totalorder %s3054_s0, %s3050_s26 }
 0x7ca   :  { %v1954_v54 = vmax.f32 %v1953_v40, 1e-24  ;;  %v1933_v5 = vmax.f32 %v1932_v41, 1e-24  ;;  %p3057_p7 = por %p3056_p6, %p3055_p5 }
 0x7cb   :  { %v1946_v32 = vpop.xlane.xlu1 %1945  ;;  %v1925_v6 = vpop.xlane.xlu0 %1924 }
 0x7cc   :  { %2342 = vrsqrt.f32 %v1954_v54  ;;  %p3058_p8 = pnand %p3057_p7, %p3051_p4 }
 0x7cd   :  { %2344 = vrsqrt.f32 %v1933_v5 }
 0x7d6   :  { %v2343_v22 = vpop.eup %2342 }
 0x7d7   :  { %v1956_v42 = vmul.f32 %v2343_v22, %v1946_v32  ;;  %v2345_v59 = vpop.eup %2344 }
 0x7d8   :  { %v1935_v50 = vmul.f32 %v2345_v59, %v1925_v6 }
 0x7d9   :  { %v1957_v1 = vrot.slane %v1956_v42, 4 }
 0x7da   :  { %v1936_v21 = vrot.slane %v1935_v50, 4 }
 0x7db   :  { %v1958_v52 = vadd.f32 %v1957_v1, %v1956_v42 }
 0x7dc   :  { %v1937_v45 = vadd.f32 %v1936_v21, %v1935_v50 }
 0x7dd   :  { %v1959_v15 = vrot.slane %v1958_v52, 2 }
 0x7de   :  { %v1938_v11 = vrot.slane %v1937_v45, 2 }
 0x7df   :  { %v1960_v10 = vadd.f32 %v1959_v15, %v1958_v52 }
 0x7e0   :  { %v1939_v46 = vadd.f32 %v1938_v11, %v1937_v45 }
 0x7e1   :  { %v1961_v31 = vrot.slane %v1960_v10, 1 }
 0x7e2   :  { %v1940_v47 = vrot.slane %v1939_v46, 1 }
 0x7e3   :  { %v1962_v25 = vadd.f32 %v1961_v31, %v1960_v10 }
 0x7e4   :  { %v1941_v8 = vadd.f32 %v1940_v47, %v1939_v46 }
 0x7e5   :  { %v1963_v9 = vmul.f32 0.125, %v1962_v25 }
 0x7e6   :  { %v1942_v0 = vmul.f32 0.125, %v1941_v8 }
 0x7e7   :  { %v1964_v17 = vsub.f32 0.0, %v1963_v9 }
 0x7e8   :  { %v1943_v13 = vsub.f32 0.0, %v1942_v0 }
 0x7ea   :  { %v1965_v24 = vadd.f32 %v1964_v17, %v1943_v13 }
 0x7ec   :  { %v1966_v23 = vmul.f32 0.5, %v1965_v24 }
 0x7ee   :  { %1968 = vst.msk [vmem:[#allocation40] sm:$0x1] %vm1967_vm2, %v1966_v23 }
 0x7ef   :  { %3061 = shalt.err (!%p3058_p8)
}
 0x7f0   :  { %s4342_s19 = sld [smem:[#allocation81_spill]] }
 0x7f6   :  { %s3062_s17 = scalar_lea.hbm %s4342_s19, 16 }
 0x7f7   :  { %p3063_p9 = scmp.ne.s32.totalorder %s4342_s19, %s3062_s17  ;;  %p3066_p10 = scmp.lt.u32.totalorder %s3062_s17, %s4342_s19 }
 0x7f9   :  { %p3068_p11 = pnand %p3066_p10, %p3063_p9 }
 0x7fb   :  { %3071 = shalt.err (!%p3068_p11)
}
 0x7fc   :  { %1978 = dma.vmem_to_hbm [thread:$0]  %s1976_s27, 16, %s4342_s19, [#allocation4]  }
 0x7fd   :  { %3098 = dma.done.wait [#allocation4], 16  }
 0x7fe   :  { %3099 = vsyncadd [#allocation4], 4294967280 }
 0x7ff   :  { %3100 = dma.done.wait [#allocation42], 4112  }
 0x800   :  { %3101 = vsyncadd [#allocation42], 4294963184 }
 0x801   :  { %3102 = dma.done.wait [#allocation45], 4128  }
 0x802   :  { %3103 = vsyncadd [#allocation45], 4294963168 }
 0x803   :  { %3104 = dma.done.wait [#allocation48], 64  }
 0x804   :  { %3105 = vsyncadd [#allocation48], 4294967232 }
 0x805   :  { %3106 = dma.done.wait [#allocation51], 4112  }
 0x806   :  { %3107 = vsyncadd [#allocation51], 4294963184 }
 0x807   :  { %2092 = vsyncpa [#allocation3], 1 }
 0x808   :  { %2093 = vsyncpa [#allocation6], 1 }
 0x809   :  { %2094 = vsyncpa [#allocation9], 1 }
 0x80a   :  { %2095 = vsyncpa [#allocation12], 1 }
 0x80b   :  { %2096 = vsyncpa [#allocation15], 1 }
 0x80c   :  { %2097 = vsyncpa [#allocation18], 1 }
 0x80d   :  { %2098 = vsyncpa [#allocation21], 1 }
 0x80e   :  { %2099 = vsyncpa [#allocation24], 1 }
 0x80f   :  { %2100 = vsyncpa [#allocation27], 1 }
 0x810   :  { %2101 = vsyncpa [#allocation30], 1 }
 0x811   :  { %2102 = vsyncpa [#allocation33], 1 }
 0x812   :  { %2103 = vsyncpa [#allocation36], 1 }
 0x813   :  { %2104 = vsyncpa [#allocation39], 1 }
 0x814   :  { %2105 = vsyncpa [#allocation4], 1 }
 0x815   :  { %2106 = vsyncpa [#allocation42], 1 }
 0x816   :  { %2107 = vsyncpa [#allocation45], 1 }
 0x817   :  { %2108 = vsyncpa [#allocation48], 1 }
 0x818   :  { %2109 = vsyncpa [#allocation51], 1 }

</bundles_post_ra>
